<compile_context>
chip_gen: v7x
topology: tpu7x:2x2x1
jax: 0.10.0
libtpu: 0.0.40
codegen_flags: <defaults>
</compile_context>

<pallas_src>
import math
from functools import partial

import jax
import jax.numpy as jnp
from jax.experimental import pallas as pl
from jax.experimental.pallas import tpu as pltpu


# ----------------------------------------------------------------------------
# Helpers
# ----------------------------------------------------------------------------
def _group_matrix(c, num_groups, reduce_count):
    """(C, C) matrix M with M[i, j] = [group(i) == group(j)] / (reduce_count * C/G).

    (per-channel sums) @ M == per-channel broadcast of the per-group mean."""
    cg = c // num_groups
    g = jnp.arange(c, dtype=jnp.int32) // cg
    m = (g[:, None] == g[None, :]).astype(jnp.float32)
    return m / float(reduce_count * cg)


def _group_norm_relu(x, gamma, beta, gmat, eps):
    """GroupNorm + ReLU on an (rows, C) f32 tile, channels on lanes (two-pass stats)."""
    ch_sum = jnp.sum(x, axis=0, keepdims=True)                           # (1, C)
    mean = jnp.dot(ch_sum, gmat, preferred_element_type=jnp.float32)     # group mean / channel
    d = x - mean
    ch_ss = jnp.sum(d * d, axis=0, keepdims=True)                        # (1, C)
    var = jnp.dot(ch_ss, gmat, preferred_element_type=jnp.float32)       # group var / channel
    y = d * jax.lax.rsqrt(var + eps) * gamma + beta
    return jnp.maximum(y, 0.0)


def _zero_halo(ref, hh, ww, c):
    """Zero only the 1-pixel halo strips of an (hh+2, ww+2, c) staging image."""
    zrow = jnp.zeros((ww + 2, c), ref.dtype)
    zcol = jnp.zeros((hh + 2, c), ref.dtype)
    ref[0] = zrow
    ref[hh + 1] = zrow
    ref[:, 0] = zcol
    ref[:, ww + 1] = zcol


# ----------------------------------------------------------------------------
# Fused kernel
# ----------------------------------------------------------------------------
def _decoder_block_kernel(x_ref, gmat1_ref, gamma1_ref, beta1_ref, w1_ref, b1_ref,
                          gmat2_ref, gamma2_ref, beta2_ref, w2_ref, b2_ref,
                          o_ref,
                          xp1_ref, xp2_ref, pat1_ref, pat2_ref,
                          *, h, w, cin, cmid, cout, eps):
    hw = h * w

    # Halo-only zeroing, every step (batch axis is "parallel": cannot gate on step 0).
    _zero_halo(xp1_ref, h, w, cin)
    _zero_halo(xp2_ref, h, w, cmid)

    # ---- GroupNorm(8) + ReLU #1 ---------------------------------------------
    x = x_ref[0].astype(jnp.float32).T                          # (HW, Cin), C on lanes
    y1 = _group_norm_relu(x, gamma1_ref[...], beta1_ref[...], gmat1_ref[...], eps)

    # ---- Conv1 3x3 pad=1: bf16 zero-halo staging + ONE contiguous-K matmul ---
    xp1_ref[pl.ds(1, h), pl.ds(1, w), :] = y1.reshape(h, w, cin).astype(xp1_ref.dtype)
    xp1 = xp1_ref[...]                                          # (H+2, W+2, Cin) bf16
    for k in range(9):
        dy, dx = k // 3, k % 3
        pat1_ref[:, k * cin:(k + 1) * cin] = (
            xp1[dy:dy + h, dx:dx + w, :].reshape(hw, cin))
    z = jnp.dot(pat1_ref[...], w1_ref[...],                     # (HW, 9*Cin)@(9*Cin, Cmid)
                preferred_element_type=jnp.float32) + b1_ref[...]

    # ---- GroupNorm(8) + ReLU #2: stats on the PRE-upsample tensor ------------
    # (nearest 2x upsample replicates values -> identical group mean / var)
    y2 = _group_norm_relu(z, gamma2_ref[...], beta2_ref[...], gmat2_ref[...], eps)

    # ---- Conv2 via sub-pixel decomposition -----------------------------------
    # 3x3 conv on the nearest-2x upsampled image == 4 parity convs with collapsed
    # 2x2 kernels on the pre-upsample image, followed by a 2x2 pixel shuffle.
    xp2_ref[pl.ds(1, h), pl.ds(1, w), :] = y2.reshape(h, w, cmid).astype(xp2_ref.dtype)
    xp2 = xp2_ref[...]                                          # (H+2, W+2, Cmid) bf16
    parts = []
    for r in (0, 1):            # output row parity
        for s in (0, 1):        # output column parity
            for a in (0, 1):    # 2x2 collapsed-kernel taps
                for b in (0, 1):
                    t = 2 * a + b
                    pat2_ref[:, t * cmid:(t + 1) * cmid] = (
                        xp2[r + a:r + a + h, s + b:s + b + w, :].reshape(hw, cmid))
            p = jnp.dot(pat2_ref[...], w2_ref[2 * r + s],       # (HW, 4*Cmid)@(4*Cmid, Cout)
                        preferred_element_type=jnp.float32) + b2_ref[...]
            parts.append(p)

    # ---- 2x2 pixel-shuffle interleave + channels-first, lane-dense store -----
    p00, p01, p10, p11 = parts                                  # each (HW, Cout) f32
    q0 = jnp.stack([p00, p01], axis=1).reshape(h, 2 * w, cout)  # even output rows
    q1 = jnp.stack([p10, p11], axis=1).reshape(h, 2 * w, cout)  # odd  output rows
    out = jnp.stack([q0, q1], axis=1).reshape(4 * hw, cout)     # (2H*2W, Cout)
    # TODO(synk): channels-major conv orientation would avoid this transpose.
    o_ref[0] = out.T.astype(o_ref.dtype)                        # (Cout, 4*HW) slab


# ----------------------------------------------------------------------------
# Wrapper
# ----------------------------------------------------------------------------
def _vmem_capacity_bytes():
    try:
        info = pltpu.get_tpu_info()
        cap = getattr(info, "vmem_capacity_bytes", None)
        if cap:
            return int(cap)
    except Exception:
        pass
    return 64 * 1024 * 1024     # safe lower bound (v7x physical VMEM per core)


def _vmem_limit_bytes(h, w, cin, cmid, cout):
    hw = h * w
    scratch = 2 * ((h + 2) * (w + 2) * (cin + cmid) + hw * (9 * cin + 4 * cmid))  # bf16
    io = 2 * 4 * (cin * hw + cout * 4 * hw)                                        # double-buffered f32
    consts = 2 * (2 * (9 * cin * cmid + 16 * cmid * cout)
                  + 4 * (cin * cin + cmid * cmid + 3 * cin + 4 * cmid + 2 * cout))
    need = scratch + io + consts
    cap = _vmem_capacity_bytes()
    return int(max(16 * 1024 * 1024, min(2 * need + (4 << 20), int(cap * 0.85))))


def unet_decoder_block(x_nchw, params, *, num_groups=8, eps=1e-5):
    n, cin, h, w = x_nchw.shape
    cmid = int(params["b1"].shape[-1])
    cout = int(params["b2"].shape[-1])
    assert cin % num_groups == 0 and cmid % num_groups == 0, \
        "GroupNorm(8) requires channel counts divisible by 8"
    hw = h * w
    hw_u = 4 * hw

    gmat1 = _group_matrix(cin, num_groups, hw)
    gmat2 = _group_matrix(cmid, num_groups, hw)     # GN2 stats taken pre-upsample

    x3 = x_nchw.reshape(n, cin, hw)                 # free: NCHW is already (C, HW)-major

    kernel = partial(_decoder_block_kernel, h=h, w=w, cin=cin, cmid=cmid, cout=cout,
                     eps=eps)
    c2 = lambda i: (0, 0)
    c3 = lambda i: (0, 0, 0)

    out = pl.pallas_call(
        kernel,
        out_shape=jax.ShapeDtypeStruct((n, cout, hw_u), x_nchw.dtype),
        grid=(n,),
        in_specs=[
            pl.BlockSpec((1, cin, hw), lambda i: (i, 0, 0)),    # x (one image / step)
            pl.BlockSpec((cin, cin), c2),                       # gmat1   (resident)
            pl.BlockSpec((1, cin), c2),                         # gamma1
            pl.BlockSpec((1, cin), c2),                         # beta1
            pl.BlockSpec((9 * cin, cmid), c2),                  # w1 bf16 (resident)
            pl.BlockSpec((1, cmid), c2),                        # b1
            pl.BlockSpec((cmid, cmid), c2),                     # gmat2   (resident)
            pl.BlockSpec((1, cmid), c2),                        # gamma2
            pl.BlockSpec((1, cmid), c2),                        # beta2
            pl.BlockSpec((4, 4 * cmid, cout), c3),              # w2 sub-pixel bf16
            pl.BlockSpec((1, cout), c2),                        # b2
        ],
        out_specs=pl.BlockSpec((1, cout, hw_u), lambda i: (i, 0, 0)),
        scratch_shapes=[
            pltpu.VMEM((h + 2, w + 2, cin), jnp.bfloat16),      # conv1 zero-halo image
            pltpu.VMEM((h + 2, w + 2, cmid), jnp.bfloat16),     # conv2 zero-halo image (LOW res)
            pltpu.VMEM((hw, 9 * cin), jnp.bfloat16),            # conv1 im2col patches
            pltpu.VMEM((hw, 4 * cmid), jnp.bfloat16),           # conv2 per-parity patches
        ],
        compiler_params=pltpu.CompilerParams(
            dimension_semantics=("parallel",),                  # batch -> both TCs
            vmem_limit_bytes=_vmem_limit_bytes(h, w, cin, cmid, cout),
        ),
    )(x3, gmat1, params["gn1_gamma"], params["gn1_beta"], params["w1_k"], params["b1"],
      gmat2, params["gn2_gamma"], params["gn2_beta"], params["w2_sub"], params["b2"])
    return out.reshape(n, cout, 2 * h, 2 * w)


# ----------------------------------------------------------------------------
# Parameter construction (PyTorch-style init) and a pure-JAX f32 reference.
# ----------------------------------------------------------------------------
def _pack_w1(w_oihw):
    """OIHW -> (9*I, O) bf16, contiguous K (tap-major, channel-minor)."""
    o, i, kh, kw = w_oihw.shape
    w_hwio = jnp.transpose(w_oihw, (2, 3, 1, 0))                  # (3, 3, I, O)
    return w_hwio.reshape(kh * kw * i, o).astype(jnp.bfloat16)


def _pack_w2_subpixel(w_oihw):
    """OIHW 3x3 -> (4, 4*I, O) bf16: one collapsed 2x2 kernel per output parity.

    Parity index = 2*r + s (r = output-row parity, s = output-col parity).
    Row index within a pack = (2*a + b)*I + c for the 2x2 tap (a, b)."""
    o, i, _, _ = w_oihw.shape
    wk = jnp.transpose(w_oihw, (2, 3, 1, 0)).astype(jnp.float32)  # (ky, kx, I, O)
    packs = []
    for r in (0, 1):
        rows = ((0,), (1, 2)) if r == 0 else ((0, 1), (2,))
        for s in (0, 1):
            cols = ((0,), (1, 2)) if s == 0 else ((0, 1), (2,))
            taps = []
            for a in (0, 1):
                for b in (0, 1):
                    ksum = sum(wk[ky, kx] for ky in rows[a] for kx in cols[b])  # (I, O)
                    taps.append(ksum)
            packs.append(jnp.concatenate(taps, axis=0))           # (4*I, O)
    return jnp.stack(packs, axis=0).astype(jnp.bfloat16)          # (4, 4*I, O)


def make_params(key, in_channels, mid_channels, out_channels):
    k1, k2, k3, k4, k5, k6, k7, k8 = jax.random.split(key, 8)
    # Conv2d weights: kaiming_normal_ (fan_in, gain=sqrt(2)) like the module.
    std1 = math.sqrt(2.0 / (in_channels * 9))
    std2 = math.sqrt(2.0 / (mid_channels * 9))
    w1_oihw = jax.random.normal(k1, (mid_channels, in_channels, 3, 3), jnp.float32) * std1
    w2_oihw = jax.random.normal(k2, (out_channels, mid_channels, 3, 3), jnp.float32) * std2
    # The module init uses gamma=1 / beta=0 / bias=0; small random values are used
    # here instead so the affine and bias code paths are genuinely exercised.
    return {
        "gn1_gamma": 1.0 + 0.1 * jax.random.normal(k3, (1, in_channels), jnp.float32),
        "gn1_beta": 0.1 * jax.random.normal(k4, (1, in_channels), jnp.float32),
        "gn2_gamma": 1.0 + 0.1 * jax.random.normal(k5, (1, mid_channels), jnp.float32),
        "gn2_beta": 0.1 * jax.random.normal(k6, (1, mid_channels), jnp.float32),
        "b1": 0.1 * jax.random.normal(k7, (1, mid_channels), jnp.float32),
        "b2": 0.1 * jax.random.normal(k8, (1, out_channels), jnp.float32),
        "w1_oihw": w1_oihw,
        "w2_oihw": w2_oihw,
        "w1_k": _pack_w1(w1_oihw),
        "w2_sub": _pack_w2_subpixel(w2_oihw),
    }


def reference(x_nchw, params, *, num_groups=8, eps=1e-5):
    def gn(x, gamma, beta):
        n, c, hh, ww = x.shape
        xg = x.reshape(n, num_groups, c // num_groups, hh, ww)
        mean = xg.mean(axis=(2, 3, 4), keepdims=True)
        var = ((xg - mean) ** 2).mean(axis=(2, 3, 4), keepdims=True)
        xn = ((xg - mean) / jnp.sqrt(var + eps)).reshape(n, c, hh, ww)
        return xn * gamma.reshape(1, c, 1, 1) + beta.reshape(1, c, 1, 1)

    def conv(x, w_oihw, b):
        out = jax.lax.conv_general_dilated(
            x, w_oihw, (1, 1), ((1, 1), (1, 1)),
            dimension_numbers=("NCHW", "OIHW", "NCHW"))
        return out + b.reshape(1, -1, 1, 1)

    y = jax.nn.relu(gn(x_nchw, params["gn1_gamma"][0], params["gn1_beta"][0]))
    y = conv(y, params["w1_oihw"], params["b1"][0])
    y = jnp.repeat(jnp.repeat(y, 2, axis=2), 2, axis=3)     # nearest 2x upsample
    y = jax.nn.relu(gn(y, params["gn2_gamma"][0], params["gn2_beta"][0]))
    y = conv(y, params["w2_oihw"], params["b2"][0])
    return y


if __name__ == "__main__":
    batch, in_ch, mid_ch, out_ch, h, w = 2, 16, 16, 8, 8, 8

    key = jax.random.PRNGKey(0)
    kx, kp = jax.random.split(key)
    x = jax.random.normal(kx, (batch, in_ch, h, w), jnp.float32)   # NCHW like PyTorch
    params = make_params(kp, in_ch, mid_ch, out_ch)

    out = jax.block_until_ready(jax.jit(unet_decoder_block)(x, params))
    ref = jax.block_until_ready(reference(x, params))

    assert out.shape == (batch, out_ch, 2 * h, 2 * w), out.shape
    err = jnp.abs(out - ref)
    max_err = float(jnp.max(err))
    rel_rms = float(jnp.sqrt(jnp.mean(err * err) / (jnp.mean(ref * ref) + 1e-12)))
    # Conv operands are bf16 on the MXU (f32 accumulation), so compare against the
    # pure-f32 reference with a bf16-appropriate tolerance.
    assert max_err < 5e-2 and rel_rms < 2e-2, (max_err, rel_rms)
    print("KERNEL_OK")
</pallas_src>

<mosaic_0001>
module attributes {stable_mosaic.version = 11 : i64} {
  func.func @_decoder_block_kernel(%arg0: i32, %arg1: memref<1x16x64xf32, #tpu.memory_space<vmem>>, %arg2: memref<16x16xf32, #tpu.memory_space<vmem>>, %arg3: memref<1x16xf32, #tpu.memory_space<vmem>>, %arg4: memref<1x16xf32, #tpu.memory_space<vmem>>, %arg5: memref<144x16xbf16, #tpu.memory_space<vmem>>, %arg6: memref<1x16xf32, #tpu.memory_space<vmem>>, %arg7: memref<16x16xf32, #tpu.memory_space<vmem>>, %arg8: memref<1x16xf32, #tpu.memory_space<vmem>>, %arg9: memref<1x16xf32, #tpu.memory_space<vmem>>, %arg10: memref<4x64x8xbf16, #tpu.memory_space<vmem>>, %arg11: memref<1x8xf32, #tpu.memory_space<vmem>>, %arg12: memref<1x8x256xf32, #tpu.memory_space<vmem>>, %arg13: memref<10x10x16xbf16, #tpu.memory_space<vmem>>, %arg14: memref<10x10x16xbf16, #tpu.memory_space<vmem>>, %arg15: memref<64x144xbf16, #tpu.memory_space<vmem>>, %arg16: memref<64x64xbf16, #tpu.memory_space<vmem>>) attributes {dimension_semantics = [#tpu.dimension_semantics<parallel>], iteration_bounds = array<i64: 2>, scalar_prefetch = 0 : i64, scratch_operands = 4 : i64, tpu.core_type = #tpu.core_type<tc>, window_params = [{transform_indices = @transform_0, window_bounds = array<i64: 1, 16, 64>}, {pipeline_mode = #tpu.pipeline_mode<synchronous>, transform_indices = @transform_1, window_bounds = array<i64: 16, 16>}, {pipeline_mode = #tpu.pipeline_mode<synchronous>, transform_indices = @transform_2, window_bounds = array<i64: 1, 16>}, {pipeline_mode = #tpu.pipeline_mode<synchronous>, transform_indices = @transform_3, window_bounds = array<i64: 1, 16>}, {pipeline_mode = #tpu.pipeline_mode<synchronous>, transform_indices = @transform_4, window_bounds = array<i64: 144, 16>}, {pipeline_mode = #tpu.pipeline_mode<synchronous>, transform_indices = @transform_5, window_bounds = array<i64: 1, 16>}, {pipeline_mode = #tpu.pipeline_mode<synchronous>, transform_indices = @transform_6, window_bounds = array<i64: 16, 16>}, {pipeline_mode = #tpu.pipeline_mode<synchronous>, transform_indices = @transform_7, window_bounds = array<i64: 1, 16>}, {pipeline_mode = #tpu.pipeline_mode<synchronous>, transform_indices = @transform_8, window_bounds = array<i64: 1, 16>}, {pipeline_mode = #tpu.pipeline_mode<synchronous>, transform_indices = @transform_9, window_bounds = array<i64: 4, 64, 8>}, {pipeline_mode = #tpu.pipeline_mode<synchronous>, transform_indices = @transform_10, window_bounds = array<i64: 1, 8>}, {transform_indices = @transform_11, window_bounds = array<i64: 1, 8, 256>}]} {
    %cst = arith.constant 0.000000e+00 : bf16
    %0 = vector.broadcast %cst : bf16 to vector<10x16xbf16>
    %cst_0 = arith.constant 0.000000e+00 : bf16
    %1 = vector.broadcast %cst_0 : bf16 to vector<10x16xbf16>
    %c0 = arith.constant 0 : index
    %c0_1 = arith.constant 0 : index
    %c0_2 = arith.constant 0 : index
    %2 = vector.load %arg13[%c0, %c0_1, %c0_2] : memref<10x10x16xbf16, #tpu.memory_space<vmem>>, vector<1x10x16xbf16>
    %3 = vector.shape_cast %2 : vector<1x10x16xbf16> to vector<10x16xbf16>
    %4 = vector.shape_cast %0 : vector<10x16xbf16> to vector<1x10x16xbf16>
    tpu.vector_store %arg13[%c0, %c0_1, %c0_2], %4 {strides = array<i32>} : memref<10x10x16xbf16, #tpu.memory_space<vmem>>, vector<1x10x16xbf16>,
    %c9 = arith.constant 9 : index
    %c0_3 = arith.constant 0 : index
    %c0_4 = arith.constant 0 : index
    %5 = vector.load %arg13[%c9, %c0_3, %c0_4] : memref<10x10x16xbf16, #tpu.memory_space<vmem>>, vector<1x10x16xbf16>
    %6 = vector.shape_cast %5 : vector<1x10x16xbf16> to vector<10x16xbf16>
    %7 = vector.shape_cast %0 : vector<10x16xbf16> to vector<1x10x16xbf16>
    tpu.vector_store %arg13[%c9, %c0_3, %c0_4], %7 {strides = array<i32>} : memref<10x10x16xbf16, #tpu.memory_space<vmem>>, vector<1x10x16xbf16>,
    %c0_5 = arith.constant 0 : index
    %c0_6 = arith.constant 0 : index
    %c0_7 = arith.constant 0 : index
    %8 = vector.load %arg13[%c0_5, %c0_6, %c0_7] : memref<10x10x16xbf16, #tpu.memory_space<vmem>>, vector<10x1x16xbf16>
    %9 = vector.shape_cast %8 : vector<10x1x16xbf16> to vector<10x16xbf16>
    %10 = vector.shape_cast %1 : vector<10x16xbf16> to vector<10x1x16xbf16>
    tpu.vector_store %arg13[%c0_5, %c0_6, %c0_7], %10 {strides = array<i32>} : memref<10x10x16xbf16, #tpu.memory_space<vmem>>, vector<10x1x16xbf16>,
    %c0_8 = arith.constant 0 : index
    %c9_9 = arith.constant 9 : index
    %c0_10 = arith.constant 0 : index
    %11 = vector.load %arg13[%c0_8, %c9_9, %c0_10] : memref<10x10x16xbf16, #tpu.memory_space<vmem>>, vector<10x1x16xbf16>
    %12 = vector.shape_cast %11 : vector<10x1x16xbf16> to vector<10x16xbf16>
    %13 = vector.shape_cast %1 : vector<10x16xbf16> to vector<10x1x16xbf16>
    tpu.vector_store %arg13[%c0_8, %c9_9, %c0_10], %13 {strides = array<i32>} : memref<10x10x16xbf16, #tpu.memory_space<vmem>>, vector<10x1x16xbf16>,
    %cst_11 = arith.constant 0.000000e+00 : bf16
    %14 = vector.broadcast %cst_11 : bf16 to vector<10x16xbf16>
    %cst_12 = arith.constant 0.000000e+00 : bf16
    %15 = vector.broadcast %cst_12 : bf16 to vector<10x16xbf16>
    %c0_13 = arith.constant 0 : index
    %c0_14 = arith.constant 0 : index
    %c0_15 = arith.constant 0 : index
    %16 = vector.load %arg14[%c0_13, %c0_14, %c0_15] : memref<10x10x16xbf16, #tpu.memory_space<vmem>>, vector<1x10x16xbf16>
    %17 = vector.shape_cast %16 : vector<1x10x16xbf16> to vector<10x16xbf16>
    %18 = vector.shape_cast %14 : vector<10x16xbf16> to vector<1x10x16xbf16>
    tpu.vector_store %arg14[%c0_13, %c0_14, %c0_15], %18 {strides = array<i32>} : memref<10x10x16xbf16, #tpu.memory_space<vmem>>, vector<1x10x16xbf16>,
    %c9_16 = arith.constant 9 : index
    %c0_17 = arith.constant 0 : index
    %c0_18 = arith.constant 0 : index
    %19 = vector.load %arg14[%c9_16, %c0_17, %c0_18] : memref<10x10x16xbf16, #tpu.memory_space<vmem>>, vector<1x10x16xbf16>
    %20 = vector.shape_cast %19 : vector<1x10x16xbf16> to vector<10x16xbf16>
    %21 = vector.shape_cast %14 : vector<10x16xbf16> to vector<1x10x16xbf16>
    tpu.vector_store %arg14[%c9_16, %c0_17, %c0_18], %21 {strides = array<i32>} : memref<10x10x16xbf16, #tpu.memory_space<vmem>>, vector<1x10x16xbf16>,
    %c0_19 = arith.constant 0 : index
    %c0_20 = arith.constant 0 : index
    %c0_21 = arith.constant 0 : index
    %22 = vector.load %arg14[%c0_19, %c0_20, %c0_21] : memref<10x10x16xbf16, #tpu.memory_space<vmem>>, vector<10x1x16xbf16>
    %23 = vector.shape_cast %22 : vector<10x1x16xbf16> to vector<10x16xbf16>
    %24 = vector.shape_cast %15 : vector<10x16xbf16> to vector<10x1x16xbf16>
    tpu.vector_store %arg14[%c0_19, %c0_20, %c0_21], %24 {strides = array<i32>} : memref<10x10x16xbf16, #tpu.memory_space<vmem>>, vector<10x1x16xbf16>,
    %c0_22 = arith.constant 0 : index
    %c9_23 = arith.constant 9 : index
    %c0_24 = arith.constant 0 : index
    %25 = vector.load %arg14[%c0_22, %c9_23, %c0_24] : memref<10x10x16xbf16, #tpu.memory_space<vmem>>, vector<10x1x16xbf16>
    %26 = vector.shape_cast %25 : vector<10x1x16xbf16> to vector<10x16xbf16>
    %27 = vector.shape_cast %15 : vector<10x16xbf16> to vector<10x1x16xbf16>
    tpu.vector_store %arg14[%c0_22, %c9_23, %c0_24], %27 {strides = array<i32>} : memref<10x10x16xbf16, #tpu.memory_space<vmem>>, vector<10x1x16xbf16>,
    %c0_25 = arith.constant 0 : index
    %c0_26 = arith.constant 0 : index
    %c0_27 = arith.constant 0 : index
    %28 = vector.load %arg1[%c0_25, %c0_26, %c0_27] : memref<1x16x64xf32, #tpu.memory_space<vmem>>, vector<1x16x64xf32>
    %29 = vector.shape_cast %28 : vector<1x16x64xf32> to vector<16x64xf32>
    %30 = tpu.transpose %29, [1, 0] : vector<16x64xf32> -> vector<64x16xf32>
    %c0_28 = arith.constant 0 : index
    %c0_29 = arith.constant 0 : index
    %31 = vector.load %arg3[%c0_28, %c0_29] : memref<1x16xf32, #tpu.memory_space<vmem>>, vector<1x16xf32>
    %c0_30 = arith.constant 0 : index
    %c0_31 = arith.constant 0 : index
    %32 = vector.load %arg4[%c0_30, %c0_31] : memref<1x16xf32, #tpu.memory_space<vmem>>, vector<1x16xf32>
    %c0_32 = arith.constant 0 : index
    %c0_33 = arith.constant 0 : index
    %33 = vector.load %arg2[%c0_32, %c0_33] : memref<16x16xf32, #tpu.memory_space<vmem>>, vector<16x16xf32>
    %cst_34 = arith.constant dense<0.000000e+00> : vector<16xf32>
    %34 = vector.multi_reduction <add>, %30, %cst_34 [0] : vector<64x16xf32> to vector<16xf32>
    %35 = vector.shape_cast %34 : vector<16xf32> to vector<1x16xf32>
    %cst_35 = arith.constant dense<0.000000e+00> : vector<1x16xf32>
    %36 = tpu.matmul %35, %33, %cst_35 {dimension_numbers = #tpu.dot_dimension_numbers<[1], [0], [0], [1], [0, 0, 1, 1], [], []>} : vector<1x16xf32>, vector<16x16xf32>, vector<1x16xf32> -> vector<1x16xf32>
    %37 = vector.broadcast %36 : vector<1x16xf32> to vector<64x16xf32>
    %38 = arith.subf %30, %37 : vector<64x16xf32>
    %39 = arith.mulf %38, %38 : vector<64x16xf32>
    %cst_36 = arith.constant dense<0.000000e+00> : vector<16xf32>
    %40 = vector.multi_reduction <add>, %39, %cst_36 [0] : vector<64x16xf32> to vector<16xf32>
    %41 = vector.shape_cast %40 : vector<16xf32> to vector<1x16xf32>
    %cst_37 = arith.constant dense<0.000000e+00> : vector<1x16xf32>
    %42 = tpu.matmul %41, %33, %cst_37 {dimension_numbers = #tpu.dot_dimension_numbers<[1], [0], [0], [1], [0, 0, 1, 1], [], []>} : vector<1x16xf32>, vector<16x16xf32>, vector<1x16xf32> -> vector<1x16xf32>
    %cst_38 = arith.constant 9.99999974E-6 : f32
    %43 = vector.broadcast %cst_38 : f32 to vector<1x16xf32>
    %44 = arith.addf %42, %43 : vector<1x16xf32>
    %45 = math.rsqrt %44 : vector<1x16xf32>
    %46 = vector.broadcast %45 : vector<1x16xf32> to vector<64x16xf32>
    %47 = arith.mulf %38, %46 : vector<64x16xf32>
    %48 = vector.broadcast %31 : vector<1x16xf32> to vector<64x16xf32>
    %49 = arith.mulf %47, %48 : vector<64x16xf32>
    %50 = vector.broadcast %32 : vector<1x16xf32> to vector<64x16xf32>
    %51 = arith.addf %49, %50 : vector<64x16xf32>
    %cst_39 = arith.constant 0.000000e+00 : f32
    %52 = vector.broadcast %cst_39 : f32 to vector<64x16xf32>
    %53 = arith.maximumf %51, %52 : vector<64x16xf32>
    %54 = vector.shape_cast %53 : vector<64x16xf32> to vector<8x8x16xf32>
    %55 = arith.truncf %54 : vector<8x8x16xf32> to vector<8x8x16xbf16>
    %c1 = arith.constant 1 : index
    %c1_40 = arith.constant 1 : index
    %c0_41 = arith.constant 0 : index
    %56 = vector.load %arg13[%c1, %c1_40, %c0_41] : memref<10x10x16xbf16, #tpu.memory_space<vmem>>, vector<8x8x16xbf16>
    tpu.vector_store %arg13[%c1, %c1_40, %c0_41], %55 {strides = array<i32>} : memref<10x10x16xbf16, #tpu.memory_space<vmem>>, vector<8x8x16xbf16>,
    %c0_42 = arith.constant 0 : index
    %c0_43 = arith.constant 0 : index
    %c0_44 = arith.constant 0 : index
    %57 = vector.load %arg13[%c0_42, %c0_43, %c0_44] : memref<10x10x16xbf16, #tpu.memory_space<vmem>>, vector<10x10x16xbf16>
    %58 = vector.extract_strided_slice %57 {offsets = [0, 0, 0], sizes = [8, 8, 16], strides = [1, 1, 1]} : vector<10x10x16xbf16> to vector<8x8x16xbf16>
    %59 = vector.shape_cast %58 : vector<8x8x16xbf16> to vector<64x16xbf16>
    %c0_45 = arith.constant 0 : index
    %c0_46 = arith.constant 0 : index
    %60 = vector.load %arg15[%c0_45, %c0_46] : memref<64x144xbf16, #tpu.memory_space<vmem>>, vector<64x16xbf16>
    tpu.vector_store %arg15[%c0_45, %c0_46], %59 {strides = array<i32>} : memref<64x144xbf16, #tpu.memory_space<vmem>>, vector<64x16xbf16>,
    %61 = vector.extract_strided_slice %57 {offsets = [0, 1, 0], sizes = [8, 8, 16], strides = [1, 1, 1]} : vector<10x10x16xbf16> to vector<8x8x16xbf16>
    %62 = vector.shape_cast %61 : vector<8x8x16xbf16> to vector<64x16xbf16>
    %c0_47 = arith.constant 0 : index
    %c16 = arith.constant 16 : index
    %63 = vector.load %arg15[%c0_47, %c16] : memref<64x144xbf16, #tpu.memory_space<vmem>>, vector<64x16xbf16>
    tpu.vector_store %arg15[%c0_47, %c16], %62 {strides = array<i32>} : memref<64x144xbf16, #tpu.memory_space<vmem>>, vector<64x16xbf16>,
    %64 = vector.extract_strided_slice %57 {offsets = [0, 2, 0], sizes = [8, 8, 16], strides = [1, 1, 1]} : vector<10x10x16xbf16> to vector<8x8x16xbf16>
    %65 = vector.shape_cast %64 : vector<8x8x16xbf16> to vector<64x16xbf16>
    %c0_48 = arith.constant 0 : index
    %c32 = arith.constant 32 : index
    %66 = vector.load %arg15[%c0_48, %c32] : memref<64x144xbf16, #tpu.memory_space<vmem>>, vector<64x16xbf16>
    tpu.vector_store %arg15[%c0_48, %c32], %65 {strides = array<i32>} : memref<64x144xbf16, #tpu.memory_space<vmem>>, vector<64x16xbf16>,
    %67 = vector.extract_strided_slice %57 {offsets = [1, 0, 0], sizes = [8, 8, 16], strides = [1, 1, 1]} : vector<10x10x16xbf16> to vector<8x8x16xbf16>
    %68 = vector.shape_cast %67 : vector<8x8x16xbf16> to vector<64x16xbf16>
    %c0_49 = arith.constant 0 : index
    %c48 = arith.constant 48 : index
    %69 = vector.load %arg15[%c0_49, %c48] : memref<64x144xbf16, #tpu.memory_space<vmem>>, vector<64x16xbf16>
    tpu.vector_store %arg15[%c0_49, %c48], %68 {strides = array<i32>} : memref<64x144xbf16, #tpu.memory_space<vmem>>, vector<64x16xbf16>,
    %70 = vector.extract_strided_slice %57 {offsets = [1, 1, 0], sizes = [8, 8, 16], strides = [1, 1, 1]} : vector<10x10x16xbf16> to vector<8x8x16xbf16>
    %71 = vector.shape_cast %70 : vector<8x8x16xbf16> to vector<64x16xbf16>
    %c0_50 = arith.constant 0 : index
    %c64 = arith.constant 64 : index
    %72 = vector.load %arg15[%c0_50, %c64] : memref<64x144xbf16, #tpu.memory_space<vmem>>, vector<64x16xbf16>
    tpu.vector_store %arg15[%c0_50, %c64], %71 {strides = array<i32>} : memref<64x144xbf16, #tpu.memory_space<vmem>>, vector<64x16xbf16>,
    %73 = vector.extract_strided_slice %57 {offsets = [1, 2, 0], sizes = [8, 8, 16], strides = [1, 1, 1]} : vector<10x10x16xbf16> to vector<8x8x16xbf16>
    %74 = vector.shape_cast %73 : vector<8x8x16xbf16> to vector<64x16xbf16>
    %c0_51 = arith.constant 0 : index
    %c80 = arith.constant 80 : index
    %75 = vector.load %arg15[%c0_51, %c80] : memref<64x144xbf16, #tpu.memory_space<vmem>>, vector<64x16xbf16>
    tpu.vector_store %arg15[%c0_51, %c80], %74 {strides = array<i32>} : memref<64x144xbf16, #tpu.memory_space<vmem>>, vector<64x16xbf16>,
    %76 = vector.extract_strided_slice %57 {offsets = [2, 0, 0], sizes = [8, 8, 16], strides = [1, 1, 1]} : vector<10x10x16xbf16> to vector<8x8x16xbf16>
    %77 = vector.shape_cast %76 : vector<8x8x16xbf16> to vector<64x16xbf16>
    %c0_52 = arith.constant 0 : index
    %c96 = arith.constant 96 : index
    %78 = vector.load %arg15[%c0_52, %c96] : memref<64x144xbf16, #tpu.memory_space<vmem>>, vector<64x16xbf16>
    tpu.vector_store %arg15[%c0_52, %c96], %77 {strides = array<i32>} : memref<64x144xbf16, #tpu.memory_space<vmem>>, vector<64x16xbf16>,
    %79 = vector.extract_strided_slice %57 {offsets = [2, 1, 0], sizes = [8, 8, 16], strides = [1, 1, 1]} : vector<10x10x16xbf16> to vector<8x8x16xbf16>
    %80 = vector.shape_cast %79 : vector<8x8x16xbf16> to vector<64x16xbf16>
    %c0_53 = arith.constant 0 : index
    %c112 = arith.constant 112 : index
    %81 = vector.load %arg15[%c0_53, %c112] : memref<64x144xbf16, #tpu.memory_space<vmem>>, vector<64x16xbf16>
    tpu.vector_store %arg15[%c0_53, %c112], %80 {strides = array<i32>} : memref<64x144xbf16, #tpu.memory_space<vmem>>, vector<64x16xbf16>,
    %82 = vector.extract_strided_slice %57 {offsets = [2, 2, 0], sizes = [8, 8, 16], strides = [1, 1, 1]} : vector<10x10x16xbf16> to vector<8x8x16xbf16>
    %83 = vector.shape_cast %82 : vector<8x8x16xbf16> to vector<64x16xbf16>
    %c0_54 = arith.constant 0 : index
    %c128 = arith.constant 128 : index
    %84 = vector.load %arg15[%c0_54, %c128] : memref<64x144xbf16, #tpu.memory_space<vmem>>, vector<64x16xbf16>
    tpu.vector_store %arg15[%c0_54, %c128], %83 {strides = array<i32>} : memref<64x144xbf16, #tpu.memory_space<vmem>>, vector<64x16xbf16>,
    %c0_55 = arith.constant 0 : index
    %c0_56 = arith.constant 0 : index
    %85 = vector.load %arg15[%c0_55, %c0_56] : memref<64x144xbf16, #tpu.memory_space<vmem>>, vector<64x144xbf16>
    %c0_57 = arith.constant 0 : index
    %c0_58 = arith.constant 0 : index
    %86 = vector.load %arg5[%c0_57, %c0_58] : memref<144x16xbf16, #tpu.memory_space<vmem>>, vector<144x16xbf16>
    %cst_59 = arith.constant dense<0.000000e+00> : vector<64x16xf32>
    %87 = tpu.matmul %85, %86, %cst_59 {dimension_numbers = #tpu.dot_dimension_numbers<[1], [0], [0], [1], [0, 0, 1, 1], [], []>} : vector<64x144xbf16>, vector<144x16xbf16>, vector<64x16xf32> -> vector<64x16xf32>
    %c0_60 = arith.constant 0 : index
    %c0_61 = arith.constant 0 : index
    %88 = vector.load %arg6[%c0_60, %c0_61] : memref<1x16xf32, #tpu.memory_space<vmem>>, vector<1x16xf32>
    %89 = vector.broadcast %88 : vector<1x16xf32> to vector<64x16xf32>
    %90 = arith.addf %87, %89 : vector<64x16xf32>
    %c0_62 = arith.constant 0 : index
    %c0_63 = arith.constant 0 : index
    %91 = vector.load %arg8[%c0_62, %c0_63] : memref<1x16xf32, #tpu.memory_space<vmem>>, vector<1x16xf32>
    %c0_64 = arith.constant 0 : index
    %c0_65 = arith.constant 0 : index
    %92 = vector.load %arg9[%c0_64, %c0_65] : memref<1x16xf32, #tpu.memory_space<vmem>>, vector<1x16xf32>
    %c0_66 = arith.constant 0 : index
    %c0_67 = arith.constant 0 : index
    %93 = vector.load %arg7[%c0_66, %c0_67] : memref<16x16xf32, #tpu.memory_space<vmem>>, vector<16x16xf32>
    %cst_68 = arith.constant dense<0.000000e+00> : vector<16xf32>
    %94 = vector.multi_reduction <add>, %90, %cst_68 [0] : vector<64x16xf32> to vector<16xf32>
    %95 = vector.shape_cast %94 : vector<16xf32> to vector<1x16xf32>
    %cst_69 = arith.constant dense<0.000000e+00> : vector<1x16xf32>
    %96 = tpu.matmul %95, %93, %cst_69 {dimension_numbers = #tpu.dot_dimension_numbers<[1], [0], [0], [1], [0, 0, 1, 1], [], []>} : vector<1x16xf32>, vector<16x16xf32>, vector<1x16xf32> -> vector<1x16xf32>
    %97 = vector.broadcast %96 : vector<1x16xf32> to vector<64x16xf32>
    %98 = arith.subf %90, %97 : vector<64x16xf32>
    %99 = arith.mulf %98, %98 : vector<64x16xf32>
    %cst_70 = arith.constant dense<0.000000e+00> : vector<16xf32>
    %100 = vector.multi_reduction <add>, %99, %cst_70 [0] : vector<64x16xf32> to vector<16xf32>
    %101 = vector.shape_cast %100 : vector<16xf32> to vector<1x16xf32>
    %cst_71 = arith.constant dense<0.000000e+00> : vector<1x16xf32>
    %102 = tpu.matmul %101, %93, %cst_71 {dimension_numbers = #tpu.dot_dimension_numbers<[1], [0], [0], [1], [0, 0, 1, 1], [], []>} : vector<1x16xf32>, vector<16x16xf32>, vector<1x16xf32> -> vector<1x16xf32>
    %cst_72 = arith.constant 9.99999974E-6 : f32
    %103 = vector.broadcast %cst_72 : f32 to vector<1x16xf32>
    %104 = arith.addf %102, %103 : vector<1x16xf32>
    %105 = math.rsqrt %104 : vector<1x16xf32>
    %106 = vector.broadcast %105 : vector<1x16xf32> to vector<64x16xf32>
    %107 = arith.mulf %98, %106 : vector<64x16xf32>
    %108 = vector.broadcast %91 : vector<1x16xf32> to vector<64x16xf32>
    %109 = arith.mulf %107, %108 : vector<64x16xf32>
    %110 = vector.broadcast %92 : vector<1x16xf32> to vector<64x16xf32>
    %111 = arith.addf %109, %110 : vector<64x16xf32>
    %cst_73 = arith.constant 0.000000e+00 : f32
    %112 = vector.broadcast %cst_73 : f32 to vector<64x16xf32>
    %113 = arith.maximumf %111, %112 : vector<64x16xf32>
    %114 = vector.shape_cast %113 : vector<64x16xf32> to vector<8x8x16xf32>
    %115 = arith.truncf %114 : vector<8x8x16xf32> to vector<8x8x16xbf16>
    %c1_74 = arith.constant 1 : index
    %c1_75 = arith.constant 1 : index
    %c0_76 = arith.constant 0 : index
    %116 = vector.load %arg14[%c1_74, %c1_75, %c0_76] : memref<10x10x16xbf16, #tpu.memory_space<vmem>>, vector<8x8x16xbf16>
    tpu.vector_store %arg14[%c1_74, %c1_75, %c0_76], %115 {strides = array<i32>} : memref<10x10x16xbf16, #tpu.memory_space<vmem>>, vector<8x8x16xbf16>,
    %c0_77 = arith.constant 0 : index
    %c0_78 = arith.constant 0 : index
    %c0_79 = arith.constant 0 : index
    %117 = vector.load %arg14[%c0_77, %c0_78, %c0_79] : memref<10x10x16xbf16, #tpu.memory_space<vmem>>, vector<10x10x16xbf16>
    %118 = vector.extract_strided_slice %117 {offsets = [0, 0, 0], sizes = [8, 8, 16], strides = [1, 1, 1]} : vector<10x10x16xbf16> to vector<8x8x16xbf16>
    %119 = vector.shape_cast %118 : vector<8x8x16xbf16> to vector<64x16xbf16>
    %c0_80 = arith.constant 0 : index
    %c0_81 = arith.constant 0 : index
    %120 = vector.load %arg16[%c0_80, %c0_81] : memref<64x64xbf16, #tpu.memory_space<vmem>>, vector<64x16xbf16>
    tpu.vector_store %arg16[%c0_80, %c0_81], %119 {strides = array<i32>} : memref<64x64xbf16, #tpu.memory_space<vmem>>, vector<64x16xbf16>,
    %121 = vector.extract_strided_slice %117 {offsets = [0, 1, 0], sizes = [8, 8, 16], strides = [1, 1, 1]} : vector<10x10x16xbf16> to vector<8x8x16xbf16>
    %122 = vector.shape_cast %121 : vector<8x8x16xbf16> to vector<64x16xbf16>
    %c0_82 = arith.constant 0 : index
    %c16_83 = arith.constant 16 : index
    %123 = vector.load %arg16[%c0_82, %c16_83] : memref<64x64xbf16, #tpu.memory_space<vmem>>, vector<64x16xbf16>
    tpu.vector_store %arg16[%c0_82, %c16_83], %122 {strides = array<i32>} : memref<64x64xbf16, #tpu.memory_space<vmem>>, vector<64x16xbf16>,
    %124 = vector.extract_strided_slice %117 {offsets = [1, 0, 0], sizes = [8, 8, 16], strides = [1, 1, 1]} : vector<10x10x16xbf16> to vector<8x8x16xbf16>
    %125 = vector.shape_cast %124 : vector<8x8x16xbf16> to vector<64x16xbf16>
    %c0_84 = arith.constant 0 : index
    %c32_85 = arith.constant 32 : index
    %126 = vector.load %arg16[%c0_84, %c32_85] : memref<64x64xbf16, #tpu.memory_space<vmem>>, vector<64x16xbf16>
    tpu.vector_store %arg16[%c0_84, %c32_85], %125 {strides = array<i32>} : memref<64x64xbf16, #tpu.memory_space<vmem>>, vector<64x16xbf16>,
    %127 = vector.extract_strided_slice %117 {offsets = [1, 1, 0], sizes = [8, 8, 16], strides = [1, 1, 1]} : vector<10x10x16xbf16> to vector<8x8x16xbf16>
    %128 = vector.shape_cast %127 : vector<8x8x16xbf16> to vector<64x16xbf16>
    %c0_86 = arith.constant 0 : index
    %c48_87 = arith.constant 48 : index
    %129 = vector.load %arg16[%c0_86, %c48_87] : memref<64x64xbf16, #tpu.memory_space<vmem>>, vector<64x16xbf16>
    tpu.vector_store %arg16[%c0_86, %c48_87], %128 {strides = array<i32>} : memref<64x64xbf16, #tpu.memory_space<vmem>>, vector<64x16xbf16>,
    %c0_88 = arith.constant 0 : index
    %c0_89 = arith.constant 0 : index
    %130 = vector.load %arg16[%c0_88, %c0_89] : memref<64x64xbf16, #tpu.memory_space<vmem>>, vector<64x64xbf16>
    %c0_90 = arith.constant 0 : index
    %c0_91 = arith.constant 0 : index
    %c0_92 = arith.constant 0 : index
    %131 = vector.load %arg10[%c0_90, %c0_91, %c0_92] : memref<4x64x8xbf16, #tpu.memory_space<vmem>>, vector<1x64x8xbf16>
    %132 = vector.shape_cast %131 : vector<1x64x8xbf16> to vector<64x8xbf16>
    %cst_93 = arith.constant dense<0.000000e+00> : vector<64x8xf32>
    %133 = tpu.matmul %130, %132, %cst_93 {dimension_numbers = #tpu.dot_dimension_numbers<[1], [0], [0], [1], [0, 0, 1, 1], [], []>} : vector<64x64xbf16>, vector<64x8xbf16>, vector<64x8xf32> -> vector<64x8xf32>
    %c0_94 = arith.constant 0 : index
    %c0_95 = arith.constant 0 : index
    %134 = vector.load %arg11[%c0_94, %c0_95] : memref<1x8xf32, #tpu.memory_space<vmem>>, vector<1x8xf32>
    %135 = vector.broadcast %134 : vector<1x8xf32> to vector<64x8xf32>
    %136 = arith.addf %133, %135 : vector<64x8xf32>
    %137 = vector.extract_strided_slice %117 {offsets = [0, 1, 0], sizes = [8, 8, 16], strides = [1, 1, 1]} : vector<10x10x16xbf16> to vector<8x8x16xbf16>
    %138 = vector.shape_cast %137 : vector<8x8x16xbf16> to vector<64x16xbf16>
    %c0_96 = arith.constant 0 : index
    %c0_97 = arith.constant 0 : index
    %139 = vector.load %arg16[%c0_96, %c0_97] : memref<64x64xbf16, #tpu.memory_space<vmem>>, vector<64x16xbf16>
    tpu.vector_store %arg16[%c0_96, %c0_97], %138 {strides = array<i32>} : memref<64x64xbf16, #tpu.memory_space<vmem>>, vector<64x16xbf16>,
    %140 = vector.extract_strided_slice %117 {offsets = [0, 2, 0], sizes = [8, 8, 16], strides = [1, 1, 1]} : vector<10x10x16xbf16> to vector<8x8x16xbf16>
    %141 = vector.shape_cast %140 : vector<8x8x16xbf16> to vector<64x16xbf16>
    %c0_98 = arith.constant 0 : index
    %c16_99 = arith.constant 16 : index
    %142 = vector.load %arg16[%c0_98, %c16_99] : memref<64x64xbf16, #tpu.memory_space<vmem>>, vector<64x16xbf16>
    tpu.vector_store %arg16[%c0_98, %c16_99], %141 {strides = array<i32>} : memref<64x64xbf16, #tpu.memory_space<vmem>>, vector<64x16xbf16>,
    %143 = vector.extract_strided_slice %117 {offsets = [1, 1, 0], sizes = [8, 8, 16], strides = [1, 1, 1]} : vector<10x10x16xbf16> to vector<8x8x16xbf16>
    %144 = vector.shape_cast %143 : vector<8x8x16xbf16> to vector<64x16xbf16>
    %c0_100 = arith.constant 0 : index
    %c32_101 = arith.constant 32 : index
    %145 = vector.load %arg16[%c0_100, %c32_101] : memref<64x64xbf16, #tpu.memory_space<vmem>>, vector<64x16xbf16>
    tpu.vector_store %arg16[%c0_100, %c32_101], %144 {strides = array<i32>} : memref<64x64xbf16, #tpu.memory_space<vmem>>, vector<64x16xbf16>,
    %146 = vector.extract_strided_slice %117 {offsets = [1, 2, 0], sizes = [8, 8, 16], strides = [1, 1, 1]} : vector<10x10x16xbf16> to vector<8x8x16xbf16>
    %147 = vector.shape_cast %146 : vector<8x8x16xbf16> to vector<64x16xbf16>
    %c0_102 = arith.constant 0 : index
    %c48_103 = arith.constant 48 : index
    %148 = vector.load %arg16[%c0_102, %c48_103] : memref<64x64xbf16, #tpu.memory_space<vmem>>, vector<64x16xbf16>
    tpu.vector_store %arg16[%c0_102, %c48_103], %147 {strides = array<i32>} : memref<64x64xbf16, #tpu.memory_space<vmem>>, vector<64x16xbf16>,
    %c0_104 = arith.constant 0 : index
    %c0_105 = arith.constant 0 : index
    %149 = vector.load %arg16[%c0_104, %c0_105] : memref<64x64xbf16, #tpu.memory_space<vmem>>, vector<64x64xbf16>
    %c1_106 = arith.constant 1 : index
    %c0_107 = arith.constant 0 : index
    %c0_108 = arith.constant 0 : index
    %150 = vector.load %arg10[%c1_106, %c0_107, %c0_108] : memref<4x64x8xbf16, #tpu.memory_space<vmem>>, vector<1x64x8xbf16>
    %151 = vector.shape_cast %150 : vector<1x64x8xbf16> to vector<64x8xbf16>
    %cst_109 = arith.constant dense<0.000000e+00> : vector<64x8xf32>
    %152 = tpu.matmul %149, %151, %cst_109 {dimension_numbers = #tpu.dot_dimension_numbers<[1], [0], [0], [1], [0, 0, 1, 1], [], []>} : vector<64x64xbf16>, vector<64x8xbf16>, vector<64x8xf32> -> vector<64x8xf32>
    %c0_110 = arith.constant 0 : index
    %c0_111 = arith.constant 0 : index
    %153 = vector.load %arg11[%c0_110, %c0_111] : memref<1x8xf32, #tpu.memory_space<vmem>>, vector<1x8xf32>
    %154 = vector.broadcast %153 : vector<1x8xf32> to vector<64x8xf32>
    %155 = arith.addf %152, %154 : vector<64x8xf32>
    %156 = vector.extract_strided_slice %117 {offsets = [1, 0, 0], sizes = [8, 8, 16], strides = [1, 1, 1]} : vector<10x10x16xbf16> to vector<8x8x16xbf16>
    %157 = vector.shape_cast %156 : vector<8x8x16xbf16> to vector<64x16xbf16>
    %c0_112 = arith.constant 0 : index
    %c0_113 = arith.constant 0 : index
    %158 = vector.load %arg16[%c0_112, %c0_113] : memref<64x64xbf16, #tpu.memory_space<vmem>>, vector<64x16xbf16>
    tpu.vector_store %arg16[%c0_112, %c0_113], %157 {strides = array<i32>} : memref<64x64xbf16, #tpu.memory_space<vmem>>, vector<64x16xbf16>,
    %159 = vector.extract_strided_slice %117 {offsets = [1, 1, 0], sizes = [8, 8, 16], strides = [1, 1, 1]} : vector<10x10x16xbf16> to vector<8x8x16xbf16>
    %160 = vector.shape_cast %159 : vector<8x8x16xbf16> to vector<64x16xbf16>
    %c0_114 = arith.constant 0 : index
    %c16_115 = arith.constant 16 : index
    %161 = vector.load %arg16[%c0_114, %c16_115] : memref<64x64xbf16, #tpu.memory_space<vmem>>, vector<64x16xbf16>
    tpu.vector_store %arg16[%c0_114, %c16_115], %160 {strides = array<i32>} : memref<64x64xbf16, #tpu.memory_space<vmem>>, vector<64x16xbf16>,
    %162 = vector.extract_strided_slice %117 {offsets = [2, 0, 0], sizes = [8, 8, 16], strides = [1, 1, 1]} : vector<10x10x16xbf16> to vector<8x8x16xbf16>
    %163 = vector.shape_cast %162 : vector<8x8x16xbf16> to vector<64x16xbf16>
    %c0_116 = arith.constant 0 : index
    %c32_117 = arith.constant 32 : index
    %164 = vector.load %arg16[%c0_116, %c32_117] : memref<64x64xbf16, #tpu.memory_space<vmem>>, vector<64x16xbf16>
    tpu.vector_store %arg16[%c0_116, %c32_117], %163 {strides = array<i32>} : memref<64x64xbf16, #tpu.memory_space<vmem>>, vector<64x16xbf16>,
    %165 = vector.extract_strided_slice %117 {offsets = [2, 1, 0], sizes = [8, 8, 16], strides = [1, 1, 1]} : vector<10x10x16xbf16> to vector<8x8x16xbf16>
    %166 = vector.shape_cast %165 : vector<8x8x16xbf16> to vector<64x16xbf16>
    %c0_118 = arith.constant 0 : index
    %c48_119 = arith.constant 48 : index
    %167 = vector.load %arg16[%c0_118, %c48_119] : memref<64x64xbf16, #tpu.memory_space<vmem>>, vector<64x16xbf16>
    tpu.vector_store %arg16[%c0_118, %c48_119], %166 {strides = array<i32>} : memref<64x64xbf16, #tpu.memory_space<vmem>>, vector<64x16xbf16>,
    %c0_120 = arith.constant 0 : index
    %c0_121 = arith.constant 0 : index
    %168 = vector.load %arg16[%c0_120, %c0_121] : memref<64x64xbf16, #tpu.memory_space<vmem>>, vector<64x64xbf16>
    %c2 = arith.constant 2 : index
    %c0_122 = arith.constant 0 : index
    %c0_123 = arith.constant 0 : index
    %169 = vector.load %arg10[%c2, %c0_122, %c0_123] : memref<4x64x8xbf16, #tpu.memory_space<vmem>>, vector<1x64x8xbf16>
    %170 = vector.shape_cast %169 : vector<1x64x8xbf16> to vector<64x8xbf16>
    %cst_124 = arith.constant dense<0.000000e+00> : vector<64x8xf32>
    %171 = tpu.matmul %168, %170, %cst_124 {dimension_numbers = #tpu.dot_dimension_numbers<[1], [0], [0], [1], [0, 0, 1, 1], [], []>} : vector<64x64xbf16>, vector<64x8xbf16>, vector<64x8xf32> -> vector<64x8xf32>
    %c0_125 = arith.constant 0 : index
    %c0_126 = arith.constant 0 : index
    %172 = vector.load %arg11[%c0_125, %c0_126] : memref<1x8xf32, #tpu.memory_space<vmem>>, vector<1x8xf32>
    %173 = vector.broadcast %172 : vector<1x8xf32> to vector<64x8xf32>
    %174 = arith.addf %171, %173 : vector<64x8xf32>
    %175 = vector.extract_strided_slice %117 {offsets = [1, 1, 0], sizes = [8, 8, 16], strides = [1, 1, 1]} : vector<10x10x16xbf16> to vector<8x8x16xbf16>
    %176 = vector.shape_cast %175 : vector<8x8x16xbf16> to vector<64x16xbf16>
    %c0_127 = arith.constant 0 : index
    %c0_128 = arith.constant 0 : index
    %177 = vector.load %arg16[%c0_127, %c0_128] : memref<64x64xbf16, #tpu.memory_space<vmem>>, vector<64x16xbf16>
    tpu.vector_store %arg16[%c0_127, %c0_128], %176 {strides = array<i32>} : memref<64x64xbf16, #tpu.memory_space<vmem>>, vector<64x16xbf16>,
    %178 = vector.extract_strided_slice %117 {offsets = [1, 2, 0], sizes = [8, 8, 16], strides = [1, 1, 1]} : vector<10x10x16xbf16> to vector<8x8x16xbf16>
    %179 = vector.shape_cast %178 : vector<8x8x16xbf16> to vector<64x16xbf16>
    %c0_129 = arith.constant 0 : index
    %c16_130 = arith.constant 16 : index
    %180 = vector.load %arg16[%c0_129, %c16_130] : memref<64x64xbf16, #tpu.memory_space<vmem>>, vector<64x16xbf16>
    tpu.vector_store %arg16[%c0_129, %c16_130], %179 {strides = array<i32>} : memref<64x64xbf16, #tpu.memory_space<vmem>>, vector<64x16xbf16>,
    %181 = vector.extract_strided_slice %117 {offsets = [2, 1, 0], sizes = [8, 8, 16], strides = [1, 1, 1]} : vector<10x10x16xbf16> to vector<8x8x16xbf16>
    %182 = vector.shape_cast %181 : vector<8x8x16xbf16> to vector<64x16xbf16>
    %c0_131 = arith.constant 0 : index
    %c32_132 = arith.constant 32 : index
    %183 = vector.load %arg16[%c0_131, %c32_132] : memref<64x64xbf16, #tpu.memory_space<vmem>>, vector<64x16xbf16>
    tpu.vector_store %arg16[%c0_131, %c32_132], %182 {strides = array<i32>} : memref<64x64xbf16, #tpu.memory_space<vmem>>, vector<64x16xbf16>,
    %184 = vector.extract_strided_slice %117 {offsets = [2, 2, 0], sizes = [8, 8, 16], strides = [1, 1, 1]} : vector<10x10x16xbf16> to vector<8x8x16xbf16>
    %185 = vector.shape_cast %184 : vector<8x8x16xbf16> to vector<64x16xbf16>
    %c0_133 = arith.constant 0 : index
    %c48_134 = arith.constant 48 : index
    %186 = vector.load %arg16[%c0_133, %c48_134] : memref<64x64xbf16, #tpu.memory_space<vmem>>, vector<64x16xbf16>
    tpu.vector_store %arg16[%c0_133, %c48_134], %185 {strides = array<i32>} : memref<64x64xbf16, #tpu.memory_space<vmem>>, vector<64x16xbf16>,
    %c0_135 = arith.constant 0 : index
    %c0_136 = arith.constant 0 : index
    %187 = vector.load %arg16[%c0_135, %c0_136] : memref<64x64xbf16, #tpu.memory_space<vmem>>, vector<64x64xbf16>
    %c3 = arith.constant 3 : index
    %c0_137 = arith.constant 0 : index
    %c0_138 = arith.constant 0 : index
    %188 = vector.load %arg10[%c3, %c0_137, %c0_138] : memref<4x64x8xbf16, #tpu.memory_space<vmem>>, vector<1x64x8xbf16>
    %189 = vector.shape_cast %188 : vector<1x64x8xbf16> to vector<64x8xbf16>
    %cst_139 = arith.constant dense<0.000000e+00> : vector<64x8xf32>
    %190 = tpu.matmul %187, %189, %cst_139 {dimension_numbers = #tpu.dot_dimension_numbers<[1], [0], [0], [1], [0, 0, 1, 1], [], []>} : vector<64x64xbf16>, vector<64x8xbf16>, vector<64x8xf32> -> vector<64x8xf32>
    %c0_140 = arith.constant 0 : index
    %c0_141 = arith.constant 0 : index
    %191 = vector.load %arg11[%c0_140, %c0_141] : memref<1x8xf32, #tpu.memory_space<vmem>>, vector<1x8xf32>
    %192 = vector.broadcast %191 : vector<1x8xf32> to vector<64x8xf32>
    %193 = arith.addf %190, %192 : vector<64x8xf32>
    %194 = vector.shape_cast %136 : vector<64x8xf32> to vector<64x1x8xf32>
    %195 = vector.shape_cast %155 : vector<64x8xf32> to vector<64x1x8xf32>
    %196 = tpu.concatenate %194, %195 in 1 : vector<64x1x8xf32>, vector<64x1x8xf32> -> vector<64x2x8xf32>
    %197 = vector.shape_cast %196 : vector<64x2x8xf32> to vector<8x16x8xf32>
    %198 = vector.shape_cast %174 : vector<64x8xf32> to vector<64x1x8xf32>
    %199 = vector.shape_cast %193 : vector<64x8xf32> to vector<64x1x8xf32>
    %200 = tpu.concatenate %198, %199 in 1 : vector<64x1x8xf32>, vector<64x1x8xf32> -> vector<64x2x8xf32>
    %201 = vector.shape_cast %200 : vector<64x2x8xf32> to vector<8x16x8xf32>
    %202 = vector.shape_cast %197 : vector<8x16x8xf32> to vector<8x1x16x8xf32>
    %203 = vector.shape_cast %201 : vector<8x16x8xf32> to vector<8x1x16x8xf32>
    %204 = tpu.concatenate %202, %203 in 1 : vector<8x1x16x8xf32>, vector<8x1x16x8xf32> -> vector<8x2x16x8xf32>
    %205 = vector.shape_cast %204 : vector<8x2x16x8xf32> to vector<256x8xf32>
    %206 = tpu.transpose %205, [1, 0] : vector<256x8xf32> -> vector<8x256xf32>
    %c0_142 = arith.constant 0 : index
    %c0_143 = arith.constant 0 : index
    %c0_144 = arith.constant 0 : index
    %207 = vector.load %arg12[%c0_142, %c0_143, %c0_144] : memref<1x8x256xf32, #tpu.memory_space<vmem>>, vector<1x8x256xf32>
    %208 = vector.shape_cast %207 : vector<1x8x256xf32> to vector<8x256xf32>
    %209 = vector.shape_cast %206 : vector<8x256xf32> to vector<1x8x256xf32>
    tpu.vector_store %arg12[%c0_142, %c0_143, %c0_144], %209 {strides = array<i32>} : memref<1x8x256xf32, #tpu.memory_space<vmem>>, vector<1x8x256xf32>,
    return
  }
  func.func @transform_0(%arg0: i32) -> (i32, i32, i32) {
    %c0_i32 = arith.constant 0 : i32
    %c0_i32_0 = arith.constant 0 : i32
    %c0_i32_1 = arith.constant 0 : i32
    return %arg0, %c0_i32, %c0_i32_0 : i32, i32, i32
  }
  func.func @transform_1(%arg0: i32) -> (i32, i32) {
    %c0_i32 = arith.constant 0 : i32
    %c0_i32_0 = arith.constant 0 : i32
    %c0_i32_1 = arith.constant 0 : i32
    return %c0_i32, %c0_i32_0 : i32, i32
  }
  func.func @transform_2(%arg0: i32) -> (i32, i32) {
    %c0_i32 = arith.constant 0 : i32
    %c0_i32_0 = arith.constant 0 : i32
    %c0_i32_1 = arith.constant 0 : i32
    return %c0_i32, %c0_i32_0 : i32, i32
  }
  func.func @transform_3(%arg0: i32) -> (i32, i32) {
    %c0_i32 = arith.constant 0 : i32
    %c0_i32_0 = arith.constant 0 : i32
    %c0_i32_1 = arith.constant 0 : i32
    return %c0_i32, %c0_i32_0 : i32, i32
  }
  func.func @transform_4(%arg0: i32) -> (i32, i32) {
    %c0_i32 = arith.constant 0 : i32
    %c0_i32_0 = arith.constant 0 : i32
    %c0_i32_1 = arith.constant 0 : i32
    return %c0_i32, %c0_i32_0 : i32, i32
  }
  func.func @transform_5(%arg0: i32) -> (i32, i32) {
    %c0_i32 = arith.constant 0 : i32
    %c0_i32_0 = arith.constant 0 : i32
    %c0_i32_1 = arith.constant 0 : i32
    return %c0_i32, %c0_i32_0 : i32, i32
  }
  func.func @transform_6(%arg0: i32) -> (i32, i32) {
    %c0_i32 = arith.constant 0 : i32
    %c0_i32_0 = arith.constant 0 : i32
    %c0_i32_1 = arith.constant 0 : i32
    return %c0_i32, %c0_i32_0 : i32, i32
  }
  func.func @transform_7(%arg0: i32) -> (i32, i32) {
    %c0_i32 = arith.constant 0 : i32
    %c0_i32_0 = arith.constant 0 : i32
    %c0_i32_1 = arith.constant 0 : i32
    return %c0_i32, %c0_i32_0 : i32, i32
  }
  func.func @transform_8(%arg0: i32) -> (i32, i32) {
    %c0_i32 = arith.constant 0 : i32
    %c0_i32_0 = arith.constant 0 : i32
    %c0_i32_1 = arith.constant 0 : i32
    return %c0_i32, %c0_i32_0 : i32, i32
  }
  func.func @transform_9(%arg0: i32) -> (i32, i32, i32) {
    %c0_i32 = arith.constant 0 : i32
    %c0_i32_0 = arith.constant 0 : i32
    %c0_i32_1 = arith.constant 0 : i32
    %c0_i32_2 = arith.constant 0 : i32
    return %c0_i32, %c0_i32_0, %c0_i32_1 : i32, i32, i32
  }
  func.func @transform_10(%arg0: i32) -> (i32, i32) {
    %c0_i32 = arith.constant 0 : i32
    %c0_i32_0 = arith.constant 0 : i32
    %c0_i32_1 = arith.constant 0 : i32
    return %c0_i32, %c0_i32_0 : i32, i32
  }
  func.func @transform_11(%arg0: i32) -> (i32, i32, i32) {
    %c0_i32 = arith.constant 0 : i32
    %c0_i32_0 = arith.constant 0 : i32
    %c0_i32_1 = arith.constant 0 : i32
    return %arg0, %c0_i32, %c0_i32_0 : i32, i32, i32
  }
}

</mosaic_0001>

<bundles_post_ra>
// kernel: unet_decoder_block.1
= control target key start
LH: loop header
LB: loop body
LE: loop exit
PB: predicated region body
PF: predicated region fallthrough
CT: control target
= control target key end

     0   :  { %s6781_s17 = smov 0   ;;  %s9740_s0 = inlined_call_operand.vmem [shape: f32[2,16,64], index: 0, kind: input, shape index: {}]   ;;  %s9741_s1 = inlined_call_operand.vmem [shape: f32[16,16], index: 1, kind: input, shape index: {}, may-alias: {1,6}]   ;;  %s9742_s2 = inlined_call_operand.vmem [shape: f32[1,16], index: 2, kind: input, shape index: {}]   ;;  %s9743_s3 = inlined_call_operand.vmem [shape: f32[1,16], index: 3, kind: input, shape index: {}]   ;;  %s9744_s4 = inlined_call_operand.vmem [shape: bf16[144,16], index: 4, kind: input, shape index: {}]   ;;  %s9745_s5 = inlined_call_operand.vmem [shape: f32[1,16], index: 5, kind: input, shape index: {}]   ;;  %s9746_s6 = inlined_call_operand.vmem [shape: f32[16,16], index: 6, kind: input, shape index: {}, may-alias: {1,6}]   ;;  %s9747_s7 = inlined_call_operand.vmem [shape: f32[1,16], index: 7, kind: input, shape index: {}]   ;;  %s9748_s8 = inlined_call_operand.vmem [shape: f32[1,16], index: 8, kind: input, shape index: {}]   ;;  %s9749_s9 = inlined_call_operand.vmem [shape: bf16[4,64,8], index: 9, kind: input, shape index: {}]   ;;  %s9750_s10 = inlined_call_operand.vmem [shape: f32[1,8], index: 10, kind: input, shape index: {}]   ;;  %s9751_s11 = inlined_call_operand.vmem [shape: f32[2,8,256], index: 11, kind: output, shape index: {}]  }
   0x1 LB: > { %s6295_s18 = sadd.s32 4294967295, %s6706_s17   ;;  %p6299_p0 = scmp.ge.s32.totalorder %s6706_s17, 1  ;;  %s6706_s17 = sphi %s6781_s17, %s21_s17  }
   0x2   : > { %p337_p1 = scmp.lt.s32.totalorder %s6706_s17, 3 }
   0x4   : > { %p338_p2 = pnand %p6299_p0, %p337_p1 }
   0x6   : > { %341 = sbr.rel (%p338_p2) target bundleno = 2325 (0x915), region = 64 }
   0xd   : > { %p377_p3 = scmp.lt.s32.totalorder %s6295_s18, 1  ;;  %v561_v2 = vld [vmem:[%s9741_s1] sm:$0xff]  ;;  %v562_v3 = vld [vmem:[%s9741_s1 + $0x8] sm:$0xff]  ;;  %v6708_v5 = vmov 0.0|0.0   ;;  %vm6709_vm0 = vmmov 0   ;;  %v6710_v6 = vmov 0.0   ;;  %v658_v36 = vlaneseq }
   0xe   : > { %v6633_v4 = vpack.c.bf16 %v562_v3, %v561_v2  ;;  %6632 = vmatprep.subr.bf16.mxu1 %v6708_v5  ;;  %6544 = vmatprep.mubr.msk.f32.mxu1 %vm6709_vm0, %v6710_v6  ;;  %vm563_vm1 = vcmask 130048   ;;  %vm390_vm2 = vcmask 122880   ;;  %vm396_vm3 = vsmask.f32 256  ;;  %s6712_s12 = smov 96   ;;  %s6713_s13 = smov 48  }
   0xf   : > { %s10219_s18 = smov (!%p377_p3, %s6295_s18), 1  ;;  %v6819_v37 = vshrl.u32 %v658_v36, 7  ;;  %vm428_vm4 = vsmask.f32 7938  ;;  %vm6869_vm5 = vmand %vm390_vm2, %vm396_vm3  ;;  %vm388_vm7 = vcmask 125952   ;;  %vm1184_vm9 = vcmask 1042432  }
  0x10   : > { %s6478_s19 = sshll.u32 %s10219_s18, 4  ;;  %6634 = vmatpush3.bf16.msra.mxu1 %v6633_v4  ;;  %vm6879_vm6 = vmand %vm390_vm2, %vm428_vm4  ;;  %vm1185_vm10 = vcmask 1046532   ;;  %vm1032_vm12 = vsmask.f32 3328  ;;  %vm1033_vm13 = vsmask.f32 7440 }
  0x11   : > { %s381_s22 = scalar_lea.vmem %s9740_s0, %s6478_s19  ;;  %6635 = vmatprep.subr.bf16.mxu1 %v6708_v5  ;;  %v6822_v38 = vsub.s32 0, %v6819_v37  ;;  %vm6906_vm8 = vmand %vm388_vm7, %vm428_vm4  ;;  %s6714_s14 = smov 32   ;;  %vm1171_vm15 = vcmask 261248   ;;  %vm1266_vm3 = vcmask 523648   ;;  %vm1302_vm4 = vcmask 654848  }
  0x12   : > { %v525_v0 = vld [vmem:[%s381_s22] sm:$0xff]  ;;  %v526_v1 = vld [vmem:[%s381_s22 + $0x8] sm:$0xff]  ;;  %vm7006_vm11 = vmor %vm1184_vm9, %vm1185_vm10  ;;  %s6715_s20 = smov 112   ;;  %s6716_s23 = smov 64   ;;  %vm1349_vm9 = vcmask 917248   ;;  %vm1382_vm10 = vcmask 1048448  }
  0x13   : > { %527 = vxpose.xlu0.b32.start [1/2] (short) (narrow) %v525_v0, 64  ;;  %vm7094_vm14 = vmor %vm1032_vm12, %vm1033_vm13  ;;  %s6717_s28 = smov 80   ;;  %s6718_s25 = smov 16  }
  0x14   : > { %s386_s29 = scalar_lea.vmem %s9751_s11, %s6478_s19 }
  0x17   : > { %528 = vxpose.xlu0.b32.end [2/2] (short) (narrow) %v526_v1, 64 }
  0x93   : > { %v543_v7 = vpop.trf.xlu0 }
  0x94   : > { %v564_v13 = vsel %vm563_vm1, %v543_v7, 0.0 }
  0x97   : > { %v544_v8 = vpop.trf.xlu0 }
  0x98   : > { %v565_v11 = vsel %vm563_vm1, %v544_v8, 0.0 }
  0x99   : > { %v566_v15 = vadd.f32 %v565_v11, %v564_v13 }
  0x9b   : > { %v545_v9 = vpop.trf.xlu0 }
  0x9c   : > { %v567_v14 = vsel %vm563_vm1, %v545_v9, 0.0 }
  0x9d   : > { %v568_v17 = vadd.f32 %v567_v14, %v566_v15 }
  0x9f   : > { %v546_v10 = vpop.trf.xlu0 }
  0xa0   : > { %v569_v16 = vsel %vm563_vm1, %v546_v10, 0.0 }
  0xa1   : > { %v570_v20 = vadd.f32 %v569_v16, %v568_v17 }
  0xa3   : > { %v547_v12 = vpop.trf.xlu0 }
  0xa4   : > { %v571_v19 = vsel %vm563_vm1, %v547_v12, 0.0 }
  0xa5   : > { %v572_v22 = vadd.f32 %v571_v19, %v570_v20  ;;  %v407_v19 = vld [vmem:[#allocation2 + $0x18] sm:$0x1] }
  0xa7   : > { %v548_v18 = vpop.trf.xlu0 }
  0xa8   : > { %v573_v21 = vsel %vm563_vm1, %v548_v18, 0.0 }
  0xa9   : > { %v574_v25 = vadd.f32 %v573_v21, %v572_v22  ;;  %v408_v21 = vsel %vm6869_vm5, 0, %v407_v19 }
  0xaa   : > { %409 = vst [vmem:[#allocation2 + $0x18] sm:$0x1] %v408_v21 }
  0xab   : > { %v549_v23 = vpop.trf.xlu0 }
  0xac   : > { %v575_v24 = vsel %vm563_vm1, %v549_v23, 0.0 }
  0xad   : > { %v576_v26 = vadd.f32 %v575_v24, %v574_v25  ;;  %v439_v25 = vld [vmem:[#allocation2 + $0x1c] sm:$0x1] }
  0xaf   : > { %v550_v27 = vpop.trf.xlu0 }
  0xb0   : > { %v577_v28 = vsel %vm563_vm1, %v550_v27, 0.0 }
  0xb1   : > { %v578_v29 = vadd.f32 %v577_v28, %v576_v26  ;;  %v401_v26 = vld [vmem:[#allocation2 + $0x8] sm:$0x1] }
  0xb2   : > { %v402_v28 = vsel %vm6869_vm5, 0, %v401_v26 }
  0xb3   : > { %v579_v30 = vrot.slane %v578_v29, 4  ;;  %403 = vst [vmem:[#allocation2 + $0x8] sm:$0x1] %v402_v28 }
  0xb5   : > { %v580_v31 = vadd.f32 %v579_v30, %v578_v29  ;;  %v410_v29 = vld [vmem:[#allocation2 + $0x20] sm:$0x1]  ;;  %v416_v30 = vld [vmem:[#allocation2 + $0x30] sm:$0x1] }
  0xb7   : > { %v581_v32 = vrot.slane %v580_v31, 2 }
  0xb9   : > { %v582_v33 = vadd.f32 %v581_v32, %v580_v31  ;;  %v411_v31 = vsel %vm6869_vm5, 0, %v410_v29  ;;  %v417_v32 = vsel %vm6869_vm5, 0, %v416_v30 }
  0xba   : > { %412 = vst [vmem:[#allocation2 + $0x20] sm:$0x1] %v411_v31  ;;  %418 = vst [vmem:[#allocation2 + $0x30] sm:$0x1] %v417_v32 }
  0xbb   : > { %v583_v34 = vrot.slane %v582_v33, 1 }
  0xbd   : > { %v584_v35 = vadd.f32 %v583_v34, %v582_v33  ;;  %v419_v33 = vld [vmem:[#allocation2 + $0x38] sm:$0x1]  ;;  %v448_v34 = vld [vmem:[#allocation2 + $0x34] sm:$0x1] }
  0xbe   : > { %v449_v36 = vsel %vm6879_vm6, 0, %v448_v34 }
  0xbf   : > { %6545 = vmatmul.mubr.msk.f32.vlgmr.msra.gmra.mrb[0].mxu1 %vm563_vm1, %v584_v35  ;;  %v420_v35 = vsel %vm6869_vm5, 0, %v419_v33  ;;  %450 = vst [vmem:[#allocation2 + $0x34] sm:$0x1] %v449_v36 }
  0xc0   : > { %6637 = vmatpush3.bf16.msra.mxu1 %v6633_v4  ;;  %6551 = vmatprep.mubr.msk.f32.mxu1 %vm6709_vm0, %v6710_v6  ;;  %421 = vst [vmem:[#allocation2 + $0x38] sm:$0x1] %v420_v35 }
  0xc1   : > { %6638 = vmatprep.subr.bf16.mxu1 %v6708_v5 }
 0x192   : > { %v654_v39 = vpop.f32.mrb[0].mxu1 }
 0x193   : > { %v661_v40 = vrot.slane %v654_v39, %v6822_v38  ;;  %v6546_v41 = vpop.f32.mrb[1].mxu1  ;;  %v451_v39 = vld [vmem:[#allocation2 + $0x3c] sm:$0x1] }
 0x194   : > { %v452_v41 = vsel %vm6879_vm6, 0, %v451_v39 }
 0x195   : > { %v6825_v42 = vsub.f32 %v543_v7, %v661_v40  ;;  %v6827_v43 = vsub.f32 %v544_v8, %v661_v40  ;;  %v6829_v44 = vsub.f32 %v545_v9, %v661_v40  ;;  %v6831_v45 = vsub.f32 %v546_v10, %v661_v40  ;;  %453 = vst [vmem:[#allocation2 + $0x3c] sm:$0x1] %v452_v41 }
 0x196   : > { %v6833_v46 = vsub.f32 %v547_v12, %v661_v40  ;;  %v6841_v50 = vsub.f32 %v548_v18, %v661_v40  ;;  %v6847_v55 = vsub.f32 %v549_v23, %v661_v40  ;;  %v6852_v59 = vsub.f32 %v550_v27, %v661_v40  ;;  %v404_v18 = vld [vmem:[#allocation2 + $0x10] sm:$0x1]  ;;  %v436_v23 = vld [vmem:[#allocation2 + $0x14] sm:$0x1]  ;;  %v413_v40 = vld [vmem:[#allocation2 + $0x28] sm:$0x1] }
 0x197   : > { %v670_v47 = vmul.f32 %v6825_v42, %v6825_v42  ;;  %v671_v48 = vmul.f32 %v6827_v43, %v6827_v43  ;;  %v672_v49 = vmul.f32 %v6829_v44, %v6829_v44  ;;  %v673_v51 = vmul.f32 %v6831_v45, %v6831_v45 }
 0x198   : > { %v674_v56 = vmul.f32 %v6833_v46, %v6833_v46  ;;  %v675_v60 = vmul.f32 %v6841_v50, %v6841_v50  ;;  %v676_v63 = vmul.f32 %v6847_v55, %v6847_v55  ;;  %v677_v2 = vmul.f32 %v6852_v59, %v6852_v59 }
 0x199   : > { %v678_v52 = vsel %vm563_vm1, %v670_v47, 0.0  ;;  %v679_v53 = vsel %vm563_vm1, %v671_v48, 0.0  ;;  %v681_v57 = vsel %vm563_vm1, %v672_v49, 0.0  ;;  %v683_v61 = vsel %vm563_vm1, %v673_v51, 0.0  ;;  %v422_v48 = vld [vmem:[#allocation2 + $0x40] sm:$0x1] }
 0x19a   : > { %v680_v54 = vadd.f32 %v679_v53, %v678_v52  ;;  %v685_v0 = vsel %vm563_vm1, %v674_v56, 0.0  ;;  %v687_v3 = vsel %vm563_vm1, %v675_v60, 0.0  ;;  %v689_v7 = vsel %vm563_vm1, %v676_v63, 0.0  ;;  %v454_v49 = vld [vmem:[#allocation2 + $0x44] sm:$0x1] }
 0x19b   : > { %v691_v9 = vsel %vm563_vm1, %v677_v2, 0.0  ;;  %v405_v20 = vsel %vm6869_vm5, 0, %v404_v18  ;;  %v437_v24 = vsel %vm6879_vm6, 0, %v436_v23  ;;  %v440_v27 = vsel %vm6879_vm6, 0, %v439_v25  ;;  %v433_v56 = vld [vmem:[#allocation2 + $0xc] sm:$0x1] }
 0x19c   : > { %v682_v58 = vadd.f32 %v681_v57, %v680_v54  ;;  %406 = vst [vmem:[#allocation2 + $0x10] sm:$0x1] %v405_v20  ;;  %438 = vst [vmem:[#allocation2 + $0x14] sm:$0x1] %v437_v24  ;;  %v414_v47 = vsel %vm6869_vm5, 0, %v413_v40  ;;  %v423_v51 = vsel %vm6869_vm5, 0, %v422_v48 }
 0x19d   : > { %441 = vst [vmem:[#allocation2 + $0x1c] sm:$0x1] %v440_v27  ;;  %415 = vst [vmem:[#allocation2 + $0x28] sm:$0x1] %v414_v47  ;;  %v455_v52 = vsel %vm6879_vm6, 0, %v454_v49  ;;  %v6711_v54 = vmov 0  }
 0x19e   : > { %v684_v62 = vadd.f32 %v683_v61, %v682_v58  ;;  %424 = vst [vmem:[#allocation2 + $0x40] sm:$0x1] %v423_v51  ;;  %456 = vst [vmem:[#allocation2 + $0x44] sm:$0x1] %v455_v52  ;;  %1501 = vmatprep.subr.bf16.mxu0 %v6711_v54  ;;  %v434_v57 = vsel %vm6879_vm6, 0, %v433_v56 }
 0x19f   : > { %393 = vst.msk [vmem:[#allocation2 + $0x48] sm:$0xf] %vm388_vm7, %v6711_v54  ;;  %389 = vst.msk [vmem:[#allocation2] sm:$0xf] %vm388_vm7, %v6711_v54  ;;  %v442_v58 = vld [vmem:[#allocation2 + $0x24] sm:$0x1] }
 0x1a0   : > { %v686_v1 = vadd.f32 %v685_v0, %v684_v62  ;;  %391 = vst.msk [vmem:[#allocation2 + $0x4] sm:$0x1] %vm390_vm2, %v6711_v54  ;;  %394 = vst.msk [vmem:[#allocation2 + $0x4c] sm:$0x1] %vm390_vm2, %v6711_v54  ;;  %v445_v60 = vld [vmem:[#allocation2 + $0x2c] sm:$0x1] }
 0x1a1   : > { %460 = vst.msk [vmem:[#allocation3] sm:$0xf] %vm388_vm7, %v6711_v54  ;;  %463 = vst.msk [vmem:[#allocation3 + $0x48] sm:$0xf] %vm388_vm7, %v6711_v54  ;;  %v443_v61 = vsel %vm6879_vm6, 0, %v442_v58  ;;  %v446_v62 = vsel %vm6879_vm6, 0, %v445_v60 }
 0x1a2   : > { %v688_v4 = vadd.f32 %v687_v3, %v686_v1  ;;  %461 = vst.msk [vmem:[#allocation3 + $0x4] sm:$0x1] %vm390_vm2, %v6711_v54  ;;  %464 = vst.msk [vmem:[#allocation3 + $0x4c] sm:$0x1] %vm390_vm2, %v6711_v54  ;;  %v6307_v20 = vld [vmem:[%s9743_s3] ss:$0 sm:$0xff] }
 0x1a3   : > { %435 = vst [vmem:[#allocation2 + $0xc] sm:$0x1] %v434_v57  ;;  %444 = vst [vmem:[#allocation2 + $0x24] sm:$0x1] %v443_v61  ;;  %vm1243_vm2 = vcmask 392448   ;;  %vm1329_vm7 = vcmask 786048  }
 0x1a4   : > { %v690_v8 = vadd.f32 %v689_v7, %v688_v4  ;;  %447 = vst [vmem:[#allocation2 + $0x2c] sm:$0x1] %v446_v62 }
 0x1a6   : > { %v692_v10 = vadd.f32 %v691_v9, %v690_v8  ;;  %v425_v63 = vld [vmem:[#allocation2 + $0x48] sm:$0x1]  ;;  %v398_v1 = vld [vmem:[#allocation2] sm:$0x1] }
 0x1a7   : > { %v426_v0 = vsel %vm6869_vm5, 0, %v425_v63  ;;  %v430_v2 = vld [vmem:[#allocation2 + $0x4] sm:$0x1]  ;;  %v399_v3 = vsel %vm6869_vm5, 0, %v398_v1  ;;  %v457_v7 = vld [vmem:[#allocation2 + $0x4c] sm:$0x1] }
 0x1a8   : > { %v693_v11 = vrot.slane %v692_v10, 4  ;;  %427 = vst [vmem:[#allocation2 + $0x48] sm:$0x1] %v426_v0  ;;  %v431_v4 = vsel %vm6879_vm6, 0, %v430_v2  ;;  %400 = vst [vmem:[#allocation2] sm:$0x1] %v399_v3 }
 0x1a9   : > { %432 = vst [vmem:[#allocation2 + $0x4] sm:$0x1] %v431_v4  ;;  %v458_v8 = vsel %vm6879_vm6, 0, %v457_v7 }
 0x1aa   : > { %v694_v12 = vadd.f32 %v693_v11, %v692_v10  ;;  %459 = vst [vmem:[#allocation2 + $0x4c] sm:$0x1] %v458_v8 }
 0x1ac   : > { %v695_v13 = vrot.slane %v694_v12, 2 }
 0x1ae   : > { %v696_v14 = vadd.f32 %v695_v13, %v694_v12 }
 0x1b0   : > { %v697_v15 = vrot.slane %v696_v14, 1 }
 0x1b2   : > { %v698_v16 = vadd.f32 %v697_v15, %v696_v14  ;;  %v6306_v14 = vld [vmem:[%s9742_s2] ss:$0 sm:$0xff] }
 0x1b4   : > { %6552 = vmatmul.mubr.msk.f32.vlgmr.msra.gmra.mrb[2].mxu1 %vm563_vm1, %v698_v16 }
 0x1b5   : > { %6558 = vmatprep.mubr.msk.f32.mxu1 %vm6709_vm0, %v6710_v6 }
 0x287   : > { %v768_v9 = vpop.f32.mrb[2].mxu1 }
 0x288   : > { %v769_v10 = vadd.f32 1e-05, %v768_v9  ;;  %v6553_v11 = vpop.f32.mrb[3].mxu1 }
 0x28a   : > { %6695 = vrsqrt.f32 %v769_v10 }
 0x294   : > { %v6696_v12 = vpop.eup %6695 }
 0x295   : > { %v776_v13 = vrot.slane %v6696_v12, %v6822_v38 }
 0x297   : > { %v777_v15 = vmul.f32 %v776_v13, %v6825_v42  ;;  %v778_v16 = vmul.f32 %v776_v13, %v6827_v43  ;;  %v779_v18 = vmul.f32 %v776_v13, %v6829_v44  ;;  %v780_v19 = vmul.f32 %v776_v13, %v6831_v45 }
 0x298   : > { %v781_v21 = vmul.f32 %v776_v13, %v6833_v46  ;;  %v782_v23 = vmul.f32 %v776_v13, %v6841_v50  ;;  %v783_v24 = vmul.f32 %v776_v13, %v6847_v55  ;;  %v784_v25 = vmul.f32 %v776_v13, %v6852_v59 }
 0x299   : > { %v791_v26 = vmul.f32 %v6306_v14, %v777_v15  ;;  %v792_v42 = vmul.f32 %v6306_v14, %v778_v16  ;;  %v793_v27 = vmul.f32 %v6306_v14, %v779_v18  ;;  %v794_v43 = vmul.f32 %v6306_v14, %v780_v19 }
 0x29a   : > { %v795_v28 = vmul.f32 %v6306_v14, %v781_v21  ;;  %v796_v44 = vmul.f32 %v6306_v14, %v782_v23  ;;  %v797_v29 = vmul.f32 %v6306_v14, %v783_v24  ;;  %v798_v45 = vmul.f32 %v6306_v14, %v784_v25  ;;  %v936_v21 = vld [vmem:[#allocation2 + $0x8] sm:$0xf] }
 0x29b   : > { %v805_v30 = vadd.f32 %v6307_v20, %v791_v26  ;;  %v806_v31 = vadd.f32 %v6307_v20, %v792_v42  ;;  %v807_v32 = vadd.f32 %v6307_v20, %v793_v27  ;;  %v808_v33 = vadd.f32 %v6307_v20, %v794_v43  ;;  %v942_v26 = vld [vmem:[#allocation2 + $0x10] sm:$0xf]  ;;  %v945_v42 = vld [vmem:[#allocation2 + $0x14] sm:$0x1]  ;;  %v954_v43 = vld [vmem:[#allocation2 + $0x20] sm:$0xf] }
 0x29c   : > { %v809_v34 = vadd.f32 %v6307_v20, %v795_v28  ;;  %v810_v46 = vadd.f32 %v6307_v20, %v796_v44  ;;  %v811_v35 = vadd.f32 %v6307_v20, %v797_v29  ;;  %v812_v50 = vadd.f32 %v6307_v20, %v798_v45  ;;  %v966_v28 = vld [vmem:[#allocation2 + $0x30] sm:$0xf] }
 0x29d   : > { %v813_v36 = vmax.f32 %v805_v30, 0.0  ;;  %v814_v55 = vmax.f32 %v806_v31, 0.0  ;;  %v815_v39 = vmax.f32 %v807_v32, 0.0  ;;  %v816_v59 = vmax.f32 %v808_v33, 0.0  ;;  %v969_v31 = vld [vmem:[#allocation2 + $0x34] sm:$0x1] }
 0x29e   : > { %v817_v40 = vmax.f32 %v809_v34, 0.0  ;;  %v818_v41 = vmax.f32 %v810_v46, 0.0  ;;  %v819_v47 = vmax.f32 %v811_v35, 0.0  ;;  %v820_v48 = vmax.f32 %v812_v50, 0.0  ;;  %v972_v32 = vld [vmem:[#allocation2 + $0x38] sm:$0xf] }
 0x29f   : > { %v6480_v49 = vpack.c.bf16 %v813_v36, %v813_v36  ;;  %v6481_v51 = vpack.c.bf16 %v814_v55, %v814_v55  ;;  %v6482_v52 = vpack.c.bf16 %v815_v39, %v815_v39  ;;  %v6483_v56 = vpack.c.bf16 %v816_v59, %v816_v59  ;;  %v948_v34 = vld [vmem:[#allocation2 + $0x18] sm:$0xf]  ;;  %v951_v46 = vld [vmem:[#allocation2 + $0x1c] sm:$0x1] }
 0x2a0   : > { %v6952_v57 = vpack.c.bf16 %v817_v40, %v817_v40  ;;  %v6485_v58 = vpack.c.bf16 %v818_v41, %v818_v41  ;;  %v6486_v60 = vpack.c.bf16 %v819_v47, %v819_v47  ;;  %v6487_v61 = vpack.c.bf16 %v820_v48, %v820_v48  ;;  %v975_v41 = vld [vmem:[#allocation2 + $0x3c] sm:$0x1]  ;;  %v978_v47 = vld [vmem:[#allocation2 + $0x40] sm:$0xf] }
 0x2a1   : > { %v854_v62 = vshrl.u32 %v6480_v49, 16  ;;  %v857_v63 = vshll.u32 %v6480_v49, 16  ;;  %v878_v0 = vshrl.u32 %v6483_v56, 16  ;;  %v881_v1 = vshll.u32 %v6483_v56, 16 }
 0x2a2   : > { %v886_v2 = vshrl.u32 %v6952_v57, 16  ;;  %v889_v3 = vshll.u32 %v6952_v57, 16  ;;  %v894_v4 = vshrl.u32 %v6485_v58, 16  ;;  %v897_v7 = vshll.u32 %v6485_v58, 16 }
 0x2a3   : > { %v6956_v8 = vrot.slane %v854_v62, 7  ;;  %v6958_v9 = vrot.slane %v878_v0, 7  ;;  %v902_v10 = vshrl.u32 %v6486_v60, 16  ;;  %v905_v11 = vshll.u32 %v6486_v60, 16  ;;  %v960_v62 = vld [vmem:[#allocation2 + $0x28] sm:$0xf] }
 0x2a4   : > { %v6960_v12 = vrot.slane %v886_v2, 7  ;;  %v896_v13 = vrot.slane %v894_v4, 7  ;;  %v910_v14 = vshrl.u32 %v6487_v61, 16  ;;  %v913_v15 = vshll.u32 %v6487_v61, 16  ;;  %v939_v0 = vld [vmem:[#allocation2 + $0xc] sm:$0x1] }
 0x2a5   : > { %v904_v16 = vrot.slane %v902_v10, 7  ;;  %v862_v18 = vshrl.u32 %v6481_v51, 16  ;;  %v865_v19 = vshll.u32 %v6481_v51, 16  ;;  %v870_v20 = vshrl.u32 %v6482_v52, 16  ;;  %v957_v10 = vld [vmem:[#allocation2 + $0x24] sm:$0x1] }
 0x2a6   : > { %v899_v23 = vor.u32 %v897_v7, %v896_v13  ;;  %v912_v24 = vrot.slane %v910_v14, 7  ;;  %v873_v25 = vshll.u32 %v6482_v52, 16  ;;  %v859_v27 = vor.u32 %v857_v63, %v6956_v8  ;;  %v981_v63 = vld [vmem:[#allocation2 + $0x44] sm:$0x1] }
 0x2a7   : > { %v907_v44 = vor.u32 %v905_v11, %v904_v16  ;;  %v864_v29 = vrot.slane %v862_v18, 7  ;;  %v872_v45 = vrot.slane %v870_v20, 7  ;;  %v883_v30 = vor.u32 %v881_v1, %v6958_v9  ;;  %v963_v11 = vld [vmem:[#allocation2 + $0x2c] sm:$0x1] }
 0x2a8   : > { %v915_v33 = vor.u32 %v913_v15, %v912_v24  ;;  %v937_v35 = vsel %vm6906_vm8, %v859_v27, %v936_v21  ;;  %v900_v50 = vrot.slane %v896_v13, 4  ;;  %v908_v36 = vrot.slane %v904_v16, 4  ;;  %v6996_v16 = vld [vmem:[#allocation2] sm:$0xf] }
 0x2a9   : > { %v867_v55 = vor.u32 %v865_v19, %v864_v29  ;;  %v868_v39 = vrot.slane %v864_v29, 4  ;;  %v875_v59 = vor.u32 %v873_v25, %v872_v45  ;;  %v876_v40 = vrot.slane %v872_v45, 4  ;;  %938 = vst [vmem:[#allocation2 + $0x8] sm:$0xf] %v937_v35 }
 0x2aa   : > { %v955_v48 = vsel %vm6906_vm8, %v883_v30, %v954_v43  ;;  %v967_v49 = vsel %vm6906_vm8, %v899_v23, %v966_v28  ;;  %v970_v51 = vsel %vm6869_vm5, %v900_v50, %v969_v31  ;;  %v973_v52 = vsel %vm6906_vm8, %v907_v44, %v972_v32 }
 0x2ab   : > { %v943_v56 = vsel %vm6906_vm8, %v867_v55, %v942_v26  ;;  %v946_v58 = vsel %vm6869_vm5, %v868_v39, %v945_v42  ;;  %v949_v60 = vsel %vm6906_vm8, %v875_v59, %v948_v34  ;;  %v952_v61 = vsel %vm6869_vm5, %v876_v40, %v951_v46  ;;  %956 = vst [vmem:[#allocation2 + $0x20] sm:$0xf] %v955_v48 }
 0x2ac   : > { %968 = vst [vmem:[#allocation2 + $0x30] sm:$0xf] %v967_v49  ;;  %971 = vst [vmem:[#allocation2 + $0x34] sm:$0x1] %v970_v51  ;;  %v976_v1 = vsel %vm6869_vm5, %v908_v36, %v975_v41  ;;  %v891_v2 = vor.u32 %v889_v3, %v6960_v12  ;;  %v916_v4 = vrot.slane %v912_v24, 4  ;;  %v979_v7 = vsel %vm6906_vm8, %v915_v33, %v978_v47 }
 0x2ad   : > { %974 = vst [vmem:[#allocation2 + $0x38] sm:$0xf] %v973_v52  ;;  %944 = vst [vmem:[#allocation2 + $0x10] sm:$0xf] %v943_v56  ;;  %v860_v13 = vrot.slane %v6956_v8, 4  ;;  %v884_v14 = vrot.slane %v6958_v9, 4 }
 0x2ae   : > { %947 = vst [vmem:[#allocation2 + $0x14] sm:$0x1] %v946_v58  ;;  %950 = vst [vmem:[#allocation2 + $0x18] sm:$0xf] %v949_v60  ;;  %v892_v15 = vrot.slane %v6960_v12, 4  ;;  %v961_v57 = vsel %vm6906_vm8, %v891_v2, %v960_v62  ;;  %v982_v3 = vsel %vm6869_vm5, %v916_v4, %v981_v63 }
 0x2af   : > { %953 = vst [vmem:[#allocation2 + $0x1c] sm:$0x1] %v952_v61  ;;  %977 = vst [vmem:[#allocation2 + $0x3c] sm:$0x1] %v976_v1  ;;  %v940_v18 = vsel %vm6869_vm5, %v860_v13, %v939_v0  ;;  %v958_v8 = vsel %vm6869_vm5, %v884_v14, %v957_v10 }
 0x2b0   : > { %980 = vst [vmem:[#allocation2 + $0x40] sm:$0xf] %v979_v7  ;;  %962 = vst [vmem:[#allocation2 + $0x28] sm:$0xf] %v961_v57  ;;  %v964_v9 = vsel %vm6869_vm5, %v892_v15, %v963_v11  ;;  %v7004_v12 = vld [vmem:[#allocation2 + $0x8] sm:$0xf] }
 0x2b1   : > { %983 = vst [vmem:[#allocation2 + $0x44] sm:$0x1] %v982_v3  ;;  %941 = vst [vmem:[#allocation2 + $0xc] sm:$0x1] %v940_v18  ;;  %v6316_v20 = vcombine.low %v6996_v16, %v7004_v12 }
 0x2b2   : > { %959 = vst [vmem:[#allocation2 + $0x24] sm:$0x1] %v958_v8  ;;  %965 = vst [vmem:[#allocation2 + $0x2c] sm:$0x1] %v964_v9  ;;  %v7012_v21 = vld [vmem:[#allocation2 + $0x20] sm:$0xf] }
 0x2b3   : > { %v7014_v23 = vld [vmem:[#allocation2 + $0x30] sm:$0xf]  ;;  %v7016_v24 = vld [vmem:[#allocation2 + $0x34] sm:$0x1]  ;;  %1028 = vst.msk [vmem:[#allocation4] sm:$0xff] %vm563_vm1, %v6316_v20 }
 0x2b4   : > { %v7018_v25 = vld [vmem:[#allocation2 + $0x10] sm:$0xf]  ;;  %v7035_v31 = vld [vmem:[#allocation2 + $0x38] sm:$0xf]  ;;  %v6330_v33 = vrot.slane %v7014_v23, 9  ;;  %v1213_v46 = vrot.slane %v7016_v24, 5 }
 0x2b5   : > { %v7020_v26 = vld [vmem:[#allocation2 + $0x14] sm:$0x1]  ;;  %v7022_v42 = vld [vmem:[#allocation2 + $0x18] sm:$0xf]  ;;  %v6326_v28 = vrot.slane %v7018_v25, 9  ;;  %v6336_v30 = vcombine.low %v7004_v12, %v7018_v25  ;;  %v6331_v35 = vrot.slane %v7035_v31, 9  ;;  %v6319_v11 = vcombine.low %v7014_v23, %v7035_v31 }
 0x2b6   : > { %v7025_v27 = vld [vmem:[#allocation2 + $0x1c] sm:$0x1]  ;;  %v6317_v43 = vcombine.low %v7018_v25, %v7022_v42  ;;  %v1197_v44 = vrot.slane %v7020_v26, 5  ;;  %v6327_v29 = vrot.slane %v7022_v42, 9  ;;  %v1120_v59 = vshrl.u32 %v7014_v23, 16 }
 0x2b7   : > { %v1201_v45 = vrot.slane %v7025_v27, 5  ;;  %v999_v32 = vld [vmem:[#allocation2 + $0x3c] sm:$0x1]  ;;  %v7046_v36 = vld [vmem:[#allocation2 + $0x28] sm:$0xf]  ;;  %1254 = vrot.lane.b32.xlu0 %v6336_v30, %s6713_s13  ;;  %v1123_v40 = vshll.u32 %v7014_v23, 16  ;;  %v6337_v47 = vcombine.low %v7022_v42, %v7012_v21  ;;  %v7065_v48 = vsel %vm7006_vm11, %v6330_v33, %v1213_v46 }
 0x2b8   : > { %v7040_v34 = vsel %vm7006_vm11, %v6326_v28, %v1197_v44  ;;  %1337 = vrot.lane.b32.xlu1 %v6317_v43, %s6712_s12  ;;  %1029 = vst.msk [vmem:[#allocation4 + $0x10] sm:$0xff] %vm563_vm1, %v6317_v43  ;;  %v1217_v50 = vrot.slane %v999_v32, 5  ;;  %v6318_v39 = vcombine.low %v7012_v21, %v7046_v36  ;;  %v7071_v51 = vld [vmem:[#allocation2 + $0x40] sm:$0xf]  ;;  %v1122_v56 = vrot.slane %v1120_v59, 4  ;;  %1031 = vst.msk [vmem:[#allocation4 + $0x30] sm:$0xff] %vm563_vm1, %v6319_v11 }
 0x2b9   : > { %v7050_v55 = vsel %vm7006_vm11, %v6327_v29, %v1201_v45  ;;  %v1125_v58 = vrot.slane %v1123_v40, 5  ;;  %v1134_v60 = vshrl.u32 %v7035_v31, 16  ;;  %v1129_v61 = vshll.u32 %v7016_v24, 16  ;;  %v7084_v2 = vld [vmem:[#allocation2 + $0x44] sm:$0x1] }
 0x2ba   : > { %v7059_v41 = vcombine.low %v7040_v34, %v7050_v55  ;;  %v7069_v49 = vsel %vm7006_vm11, %v6331_v35, %v1217_v50  ;;  %1030 = vst.msk [vmem:[#allocation4 + $0x20] sm:$0xff] %vm563_vm1, %v6318_v39  ;;  %v1137_v62 = vshll.u32 %v7035_v31, 16  ;;  %v1143_v63 = vshll.u32 %v999_v32, 16  ;;  %v7090_v13 = vld [vmem:[#allocation2 + $0x24] sm:$0x1] }
 0x2bb   : > { %v6335_v52 = vcombine.low %v7065_v48, %v7069_v49  ;;  %v1126_v0 = vor.u32 %v1125_v58, %v1122_v56  ;;  %v1136_v1 = vrot.slane %v1134_v60, 4  ;;  %v1272_v4 = vshrl.u32 %v7071_v51, 16  ;;  %v7098_v18 = vld [vmem:[#allocation2 + $0x2c] sm:$0x1]  ;;  %v7121_v59 = vld [vmem:[#allocation2 + $0x4] sm:$0x1] }
 0x2bc   : > { %1398 = vst.msk [vmem:[#allocation4 + $0x8] sm:$0xff] %vm563_vm1, %v7059_v41  ;;  %1256 = vrot.lane.b32.xlu1 %v6337_v47, %s6713_s13  ;;  %v1275_v7 = vshll.u32 %v7071_v51, 16  ;;  %v1139_v10 = vrot.slane %v1137_v62, 5  ;;  %v1131_v8 = vrot.slane %v1129_v61, 5  ;;  %v6338_v20 = vcombine.low %v7046_v36, %v7014_v23  ;;  %v7123_v40 = vld [vmem:[#allocation2 + $0xc] sm:$0x1] }
 0x2bd   : > { %1400 = vst.msk [vmem:[#allocation4 + $0x28] sm:$0xff] %vm563_vm1, %v6335_v52  ;;  %1237 = vrot.lane.b32.xlu0 %v6335_v52, %s6714_s14  ;;  %v1127_v15 = vrot.slane %v1126_v0, 4  ;;  %v1274_v57 = vrot.slane %v1272_v4, 4  ;;  %v1281_v24 = vshll.u32 %v7084_v2, 16  ;;  %v1145_v43 = vrot.slane %v1143_v63, 5  ;;  %v6666_v60 = vld [vmem:[%s9744_s4] sm:$0xff]  }
 0x2be   : > { %v1277_v3 = vrot.slane %v1275_v7, 5  ;;  %v1140_v9 = vor.u32 %v1139_v10, %v1136_v1  ;;  %v6328_v44 = vrot.slane %v7012_v21, 9  ;;  %v1205_v29 = vrot.slane %v7090_v13, 5  ;;  %v7152_v1 = vld [vmem:[#allocation2 + $0x48] sm:$0xf]  ;;  %1502 = vmatpush1.bf16.msra.mxu0 %v6666_v60 }
 0x2bf   : > { %v7109_v45 = vsel %vm7094_vm14, %v1127_v15, %v1131_v8  ;;  %v6329_v32 = vrot.slane %v7046_v36, 9  ;;  %v1209_v33 = vrot.slane %v7098_v18, 5  ;;  %v6324_v61 = vrot.slane %v6996_v16, 9  ;;  %v7154_v4 = vld [vmem:[#allocation2 + $0x4c] sm:$0x1]  ;;  %1503 = vmatprep.subr.bf16.mxu0 %v6711_v54 }
 0x2c0   : > { %1339 = vrot.lane.b32.xlu1 %v6318_v39, %s6712_s12  ;;  %v1278_v28 = vor.u32 %v1277_v3, %v1274_v57  ;;  %v1141_v30 = vrot.slane %v1140_v9, 4  ;;  %v7115_v35 = vsel %vm7006_vm11, %v6328_v44, %v1205_v29  ;;  %v1283_v39 = vrot.slane %v1281_v24, 5  ;;  %v6667_v15 = vld [vmem:[%s9744_s4 + $0x8] sm:$0xff]  }
 0x2c1   : > { %v7127_v47 = vsel %vm7006_vm11, %v6329_v32, %v1209_v33  ;;  %v1189_v62 = vrot.slane %v7121_v59, 5  ;;  %v6325_v63 = vrot.slane %v7004_v12, 9  ;;  %v1193_v0 = vrot.slane %v7123_v40, 5  ;;  %v6669_v32 = vld [vmem:[%s9744_s4 + $0x18] sm:$0xff]  }
 0x2c2   : > { %v1279_v46 = vrot.slane %v1278_v28, 4  ;;  %v1146_v50 = vsel %vm7094_vm14, %v1141_v30, %v1145_v43  ;;  %v7134_v56 = vcombine.low %v7115_v35, %v7127_v47  ;;  %v6339_v10 = vcombine.low %v7035_v31, %v7071_v51  ;;  %1504 = vmatpush1.bf16.msra.mxu0 %v6667_v15 }
 0x2c3   : > { %v1403_v23 = vld [vmem:[#allocation4 + $0x8] sm:$0xff]  ;;  %v7130_v52 = vcombine.low %v7109_v45, %v1146_v50  ;;  %v1194_v57 = vsel %vm7006_vm11, %v6325_v63, %v1193_v0  ;;  %v6351_v3 = vrot.slane %v7152_v1, 9  ;;  %v1390_v8 = vrot.slane %v7154_v4, 5  ;;  %1505 = vmatprep.subr.bf16.mxu0 %v6711_v54 }
 0x2c4   : > { %6363 = vmatprep.mubr.msk.bf16.mxu0 %vm563_vm1, %v1403_v23  ;;  %1258 = vrot.lane.b32.xlu1 %v6338_v20, %s6713_s13  ;;  %v7138_v58 = vsel %vm7094_vm14, %v1279_v46, %v1283_v39  ;;  %1399 = vst.msk [vmem:[#allocation4 + $0x18] sm:$0xff] %vm563_vm1, %v7134_v56  ;;  %v6349_v31 = vcombine.low %v7071_v51, %v7152_v1  ;;  %v6668_v20 = vld [vmem:[%s9744_s4 + $0x10] sm:$0xff]   ;;  %v6344_v24 = vrot.slane %v7071_v51, 9  ;;  %v1310_v43 = vrot.slane %v7084_v2, 5  ;;  %v6670_v46 = vld [vmem:[%s9744_s4 + $0x20] sm:$0xff]  }
 0x2c5   : > { %1374 = vrot.lane.b32.xlu0 %v7130_v52, %s6715_s20  ;;  %v6343_v7 = vcombine.low %v1146_v50, %v7138_v58  ;;  %v1391_v28 = vsel %vm7006_vm11, %v6351_v3, %v1390_v8  ;;  %v6345_v29 = vcombine.low %v1194_v57, %v7040_v34  ;;  %v1036_v30 = vshrl.u32 %v6996_v16, 16 }
 0x2c6   : > { %1506 = vmatpush1.bf16.msra.mxu0 %v6668_v20  ;;  %v7185_v44 = vsel %vm7006_vm11, %v6344_v24, %v1310_v43  ;;  %v1039_v51 = vshll.u32 %v6996_v16, 16  ;;  %v1050_v33 = vshrl.u32 %v7004_v12, 16  ;;  %v1053_v23 = vshll.u32 %v7004_v12, 16 }
 0x2c7   : > { %1507 = vmatprep.subr.bf16.mxu0 %v6711_v54  ;;  %v6352_v2 = vcombine.low %v7185_v44, %v1391_v28  ;;  %v1038_v34 = vrot.slane %v1036_v30, 4  ;;  %v1064_v60 = vshrl.u32 %v7018_v25, 16  ;;  %v1067_v12 = vshll.u32 %v7018_v25, 16  ;;  %v6671_v25 = vld [vmem:[%s9744_s4 + $0x28] sm:$0xff]  }
 0x2c8   : > { %1341 = vrot.lane.b32.xlu1 %v6319_v11, %s6712_s12  ;;  %v1190_v11 = vsel %vm7006_vm11, %v6324_v61, %v1189_v62  ;;  %v1041_v16 = vrot.slane %v1039_v51, 5  ;;  %v1052_v50 = vrot.slane %v1050_v33, 4  ;;  %v1055_v39 = vrot.slane %v1053_v23, 5 }
 0x2c9   : > { %1296 = vrot.lane.b32.xlu0 %v6343_v7, %s6716_s23  ;;  %v6332_v9 = vcombine.low %v1190_v11, %v1194_v57  ;;  %1401 = vst.msk [vmem:[#allocation4 + $0x38] sm:$0xff] %vm563_vm1, %v6352_v2  ;;  %v6346_v61 = vcombine.low %v7050_v55, %v7115_v35  ;;  %v1045_v63 = vshll.u32 %v7121_v59, 16  ;;  %v1078_v0 = vshrl.u32 %v7022_v42, 16 }
 0x2ca   : > { %1508 = vmatpush1.bf16.msra.mxu0 %v6669_v32  ;;  %v1042_v62 = vor.u32 %v1041_v16, %v1038_v34  ;;  %v1056_v7 = vor.u32 %v1055_v39, %v1052_v50  ;;  %v1069_v15 = vrot.slane %v1067_v12, 5  ;;  %v1081_v11 = vshll.u32 %v7022_v42, 16  ;;  %v6672_v42 = vld [vmem:[%s9744_s4 + $0x30] sm:$0xff]  }
 0x2cb   : > { %1509 = vmatprep.subr.bf16.mxu0 %v6711_v54  ;;  %v1047_v55 = vrot.slane %v1045_v63, 5  ;;  %v1080_v3 = vrot.slane %v1078_v0, 4  ;;  %v1092_v24 = vshrl.u32 %v7012_v21, 16  ;;  %v1106_v2 = vshrl.u32 %v7046_v36, 16 }
 0x2cc   : > { %1260 = vrot.lane.b32.xlu1 %v6339_v10, %s6713_s13  ;;  %v1066_v10 = vrot.slane %v1064_v60, 4  ;;  %v1043_v57 = vrot.slane %v1042_v62, 4  ;;  %v1057_v35 = vrot.slane %v1056_v7, 4  ;;  %v1083_v8 = vrot.slane %v1081_v11, 5 }
 0x2cd   : > { %1343 = vrot.lane.b32.xlu0 %v6349_v31, %s6712_s12  ;;  %v1094_v51 = vrot.slane %v1092_v24, 4  ;;  %v1109_v23 = vshll.u32 %v7046_v36, 16  ;;  %v1108_v39 = vrot.slane %v1106_v2, 4  ;;  %v1115_v63 = vshll.u32 %v7098_v18, 16  ;;  %v1405_v2 = vld [vmem:[#allocation4 + $0x18] sm:$0xff] }
 0x2ce   : > { %1510 = vmatpush1.bf16.msra.mxu0 %v6670_v46  ;;  %v1070_v59 = vor.u32 %v1069_v15, %v1066_v10  ;;  %v1048_v20 = vsel %vm7094_vm14, %v1043_v57, %v1047_v55  ;;  %v1084_v28 = vor.u32 %v1083_v8, %v1080_v3 }
 0x2cf   : > { %1511 = vmatprep.subr.bf16.mxu0 %v6711_v54  ;;  %v1111_v60 = vrot.slane %v1109_v23, 5  ;;  %v1117_v10 = vrot.slane %v1115_v63, 5  ;;  %v1569_v63 = vld [vmem:[%s9746_s6 + $0x8] sm:$0xff] }
 0x2d0   : > { %1231 = vrot.lane.b32.xlu1 %v6332_v9, %s6714_s14  ;;  %v1073_v9 = vshll.u32 %v7020_v26, 16  ;;  %v6673_v26 = vld [vmem:[%s9744_s4 + $0x38] sm:$0xff]  }
 0x2d2   : > { %1512 = vmatpush1.bf16.msra.mxu0 %v6671_v25  ;;  %v1355_v25 = vshrl.u32 %v7152_v1, 16 }
 0x2d3   : > { %1513 = vmatprep.subr.bf16.mxu0 %v6711_v54 }
 0x2d4   : > { %1317 = vrot.lane.b32.xlu1 %v6345_v29, %s6717_s28  ;;  %v1095_v29 = vshll.u32 %v7012_v21, 16  ;;  %v1085_v21 = vrot.slane %v1084_v28, 4  ;;  %v1357_v18 = vrot.slane %v1355_v25, 4 }
 0x2d6   : > { %1514 = vmatpush1.bf16.msra.mxu0 %v6672_v42  ;;  %v1097_v33 = vrot.slane %v1095_v29, 5 }
 0x2d7   : > { %1515 = vmatprep.subr.bf16.mxu0 %v6711_v54 }
 0x2d8   : > { %1233 = vrot.lane.b32.xlu1 %v7059_v41, %s6714_s14  ;;  %v1059_v41 = vshll.u32 %v7123_v40, 16  ;;  %v6347_v40 = vcombine.low %v7127_v47, %v7065_v48  ;;  %v1075_v48 = vrot.slane %v1073_v9, 5  ;;  %v1087_v47 = vshll.u32 %v7025_v27, 16  ;;  %v6674_v27 = vld [vmem:[%s9744_s4 + $0x40] sm:$0xff]  }
 0x2d9   : > { %v1098_v50 = vor.u32 %v1097_v33, %v1094_v51 }
 0x2da   : > { %v1061_v31 = vrot.slane %v1059_v41, 5  ;;  %1516 = vmatpush1.bf16.msra.mxu0 %v6673_v26  ;;  %v1089_v34 = vrot.slane %v1087_v47, 5  ;;  %v1358_v41 = vshll.u32 %v7152_v1, 16  ;;  %v6348_v1 = vcombine.low %v7069_v49, %v7185_v44 }
 0x2db   : > { %1517 = vmatprep.subr.bf16.mxu0 %v6711_v54  ;;  %v1101_v54 = vshll.u32 %v7090_v13, 16  ;;  %v1099_v12 = vrot.slane %v1098_v50, 4 }
 0x2dc   : > { %1319 = vrot.lane.b32.xlu1 %v6346_v61, %s6717_s28  ;;  %v1062_v43 = vsel %vm7094_vm14, %v1057_v35, %v1061_v31  ;;  %v1090_v46 = vsel %vm7094_vm14, %v1085_v21, %v1089_v34  ;;  %v1112_v61 = vor.u32 %v1111_v60, %v1108_v39  ;;  %v1360_v57 = vrot.slane %v1358_v41, 5  ;;  %v6353_v41 = vld [vmem:[%s9745_s5] ss:$0 sm:$0xff] }
 0x2dd   : > { %v6320_v30 = vcombine.low %v1048_v20, %v1062_v43  ;;  %v1103_v62 = vrot.slane %v1101_v54, 5 }
 0x2de   : > { %1518 = vmatpush1.bf16.msra.mxu0 %v6674_v27  ;;  %v1113_v7 = vrot.slane %v1112_v61, 4  ;;  %v1361_v35 = vor.u32 %v1360_v57, %v1357_v18 }
 0x2df   : > { %v1104_v0 = vsel %vm7094_vm14, %v1099_v12, %v1103_v62  ;;  %v1409_v12 = vld [vmem:[#allocation4 + $0x38] sm:$0xff]  ;;  %v1568_v62 = vld [vmem:[%s9746_s6] sm:$0xff] }
 0x2e0   : > { %1235 = vrot.lane.b32.xlu1 %v7134_v56, %s6714_s14  ;;  %v1071_v56 = vrot.slane %v1070_v59, 4  ;;  %v6341_v15 = vcombine.low %v1090_v46, %v1104_v0  ;;  %v1118_v11 = vsel %vm7094_vm14, %v1113_v7, %v1117_v10  ;;  %v1364_v59 = vshll.u32 %v7154_v4, 16 }
 0x2e1   : > { %v6322_v13 = vcombine.low %v1104_v0, %v1118_v11  ;;  %v6342_v55 = vcombine.low %v1118_v11, %v7109_v45  ;;  %v1362_v3 = vrot.slane %v1361_v35, 4  ;;  %v6639_v0 = vpack.c.bf16 %v1569_v63, %v1568_v62 }
 0x2e2   : > { %v1076_v32 = vsel %vm7094_vm14, %v1071_v56, %v1075_v48  ;;  %v1366_v8 = vrot.slane %v1364_v59, 5 }
 0x2e3   : > { %v6340_v16 = vcombine.low %v1062_v43, %v1076_v32  ;;  %v6321_v36 = vcombine.low %v1076_v32, %v1090_v46  ;;  %6640 = vmatpush3.bf16.msra.mxu1 %v6639_v0 }
 0x2e4   : > { %1321 = vrot.lane.b32.xlu1 %v6347_v40, %s6717_s28  ;;  %v1367_v42 = vsel %vm7094_vm14, %v1362_v3, %v1366_v8  ;;  %6641 = vmatprep.subr.bf16.mxu1 %v6708_v5 }
 0x2e5   : > { %v6350_v45 = vcombine.low %v7138_v58, %v1367_v42 }
 0x2e8   : > { %1159 = vrot.lane.b32.xlu1 %v6320_v30, %s6718_s25 }
 0x2ec   : > { %1290 = vrot.lane.b32.xlu1 %v6340_v16, %s6716_s23  ;;  %v1407_v16 = vld [vmem:[#allocation4 + $0x28] sm:$0xff] }
 0x2f0   : > { %1370 = vrot.lane.b32.xlu1 %v6321_v36, %s6715_s20 }
 0x2f4   : > { %1161 = vrot.lane.b32.xlu1 %v6321_v36, %s6718_s25 }
 0x2f8   : > { %1292 = vrot.lane.b32.xlu1 %v6341_v15, %s6716_s23 }
 0x2fc   : > { %1372 = vrot.lane.b32.xlu1 %v6322_v13, %s6715_s20 }
 0x300   : > { %1163 = vrot.lane.b32.xlu1 %v6322_v13, %s6718_s25 }
 0x304   : > { %1294 = vrot.lane.b32.xlu1 %v6342_v55, %s6716_s23 }
 0x308   : > { %1165 = vrot.lane.b32.xlu1 %v7130_v52, %s6718_s25 }
 0x30c   : > { %1323 = vrot.lane.b32.xlu1 %v6348_v1, %s6717_s28 }
 0x310   : > { %1376 = vrot.lane.b32.xlu1 %v6350_v45, %s6715_s20 }
 0x329   : > { %v1255_v58 = vpop.permute.xlu0 %1254 }
 0x32a   : > { %v1338_v4 = vpop.permute.xlu1 %1337 }
 0x32e   : > { %v1257_v31 = vpop.permute.xlu1 %1256 }
 0x32f   : > { %v1238_v32 = vpop.permute.xlu0 %1237 }
 0x332   : > { %v1340_v9 = vpop.permute.xlu1 %1339 }
 0x336   : > { %v1259_v40 = vpop.permute.xlu1 %1258 }
 0x337   : > { %v1375_v23 = vpop.permute.xlu0 %1374 }
 0x33a   : > { %v1342_v20 = vpop.permute.xlu1 %1341 }
 0x33b   : > { %v1297_v46 = vpop.permute.xlu0 %1296 }
 0x33e   : > { %v1261_v24 = vpop.permute.xlu1 %1260 }
 0x33f   : > { %v1344_v60 = vpop.permute.xlu0 %1343 }
 0x342   : > { %v1232_v43 = vpop.permute.xlu1 %1231 }
 0x346   : > { %v1318_v52 = vpop.permute.xlu1 %1317 }
 0x34a   : > { %v1234_v56 = vpop.permute.xlu1 %1233 }
 0x34e   : > { %v1320_v28 = vpop.permute.xlu1 %1319 }
 0x352   : > { %v1236_v49 = vpop.permute.xlu1 %1235 }
 0x356   : > { %v1322_v44 = vpop.permute.xlu1 %1321 }
 0x35a   : > { %v1160_v29 = vpop.permute.xlu1 %1159 }
 0x35b   : > { %1172 = vst.msk [vmem:[#allocation4] sm:$0xff] %vm1171_vm15, %v1160_v29 }
 0x35c   : > { %1244 = vst.msk [vmem:[#allocation4] sm:$0xff] %vm1243_vm2, %v1232_v43 }
 0x35d   : > { %1267 = vst.msk [vmem:[#allocation4] sm:$0xff] %vm1266_vm3, %v1255_v58 }
 0x35e   : > { %v1291_v26 = vpop.permute.xlu1 %1290 }
 0x35f   : > { %1303 = vst.msk [vmem:[#allocation4] sm:$0xff] %vm1302_vm4, %v1291_v26 }
 0x360   : > { %1330 = vst.msk [vmem:[#allocation4] sm:$0xff] %vm1329_vm7, %v1318_v52 }
 0x361   : > { %1350 = vst.msk [vmem:[#allocation4] sm:$0xff] %vm1349_vm9, %v1338_v4 }
 0x362   : > { %v1371_v48 = vpop.permute.xlu1 %1370 }
 0x363   : > { %1383 = vst.msk [vmem:[#allocation4] sm:$0xff] %vm1382_vm10, %v1371_v48 }
 0x366   : > { %v1162_v47 = vpop.permute.xlu1 %1161 }
 0x367   : > { %1173 = vst.msk [vmem:[#allocation4 + $0x10] sm:$0xff] %vm1171_vm15, %v1162_v47 }
 0x368   : > { %1245 = vst.msk [vmem:[#allocation4 + $0x10] sm:$0xff] %vm1243_vm2, %v1234_v56 }
 0x369   : > { %1268 = vst.msk [vmem:[#allocation4 + $0x10] sm:$0xff] %vm1266_vm3, %v1257_v31 }
 0x36a   : > { %v1293_v30 = vpop.permute.xlu1 %1292  ;;  %v1402_v51 = vld [vmem:[#allocation4] sm:$0xff] }
 0x36b   : > { %1304 = vst.msk [vmem:[#allocation4 + $0x10] sm:$0xff] %vm1302_vm4, %v1293_v30  ;;  %1534 = vmatmul.mubr.bf16.vlgmr.msra.gmra.mrb[0].mxu0 %v1402_v51 }
 0x36c   : > { %1331 = vst.msk [vmem:[#allocation4 + $0x10] sm:$0xff] %vm1329_vm7, %v1320_v28  ;;  %6364 = vmatprep.mubr.msk.bf16.mxu0 %vm563_vm1, %v1405_v2 }
 0x36d   : > { %1351 = vst.msk [vmem:[#allocation4 + $0x10] sm:$0xff] %vm1349_vm9, %v1340_v9 }
 0x36e   : > { %v1373_v21 = vpop.permute.xlu1 %1372 }
 0x36f   : > { %1384 = vst.msk [vmem:[#allocation4 + $0x10] sm:$0xff] %vm1382_vm10, %v1373_v21 }
 0x372   : > { %v1164_v33 = vpop.permute.xlu1 %1163 }
 0x373   : > { %1174 = vst.msk [vmem:[#allocation4 + $0x20] sm:$0xff] %vm1171_vm15, %v1164_v33 }
 0x374   : > { %1246 = vst.msk [vmem:[#allocation4 + $0x20] sm:$0xff] %vm1243_vm2, %v1236_v49 }
 0x375   : > { %1269 = vst.msk [vmem:[#allocation4 + $0x20] sm:$0xff] %vm1266_vm3, %v1259_v40 }
 0x376   : > { %v1295_v34 = vpop.permute.xlu1 %1294  ;;  %v1404_v27 = vld [vmem:[#allocation4 + $0x10] sm:$0xff] }
 0x377   : > { %1305 = vst.msk [vmem:[#allocation4 + $0x20] sm:$0xff] %vm1302_vm4, %v1295_v34  ;;  %1542 = vmatmul.mubr.bf16.gmra.mrb[4].mxu0 %v1404_v27 }
 0x378   : > { %1332 = vst.msk [vmem:[#allocation4 + $0x20] sm:$0xff] %vm1329_vm7, %v1322_v44  ;;  %6365 = vmatprep.mubr.msk.bf16.mxu0 %vm563_vm1, %v1407_v16 }
 0x379   : > { %1352 = vst.msk [vmem:[#allocation4 + $0x20] sm:$0xff] %vm1349_vm9, %v1342_v20 }
 0x37a   : > { %1385 = vst.msk [vmem:[#allocation4 + $0x20] sm:$0xff] %vm1382_vm10, %v1375_v23  ;;  %v1166_v50 = vpop.permute.xlu1 %1165 }
 0x37b   : > { %1175 = vst.msk [vmem:[#allocation4 + $0x30] sm:$0xff] %vm1171_vm15, %v1166_v50 }
 0x37c   : > { %1247 = vst.msk [vmem:[#allocation4 + $0x30] sm:$0xff] %vm1243_vm2, %v1238_v32 }
 0x37d   : > { %1270 = vst.msk [vmem:[#allocation4 + $0x30] sm:$0xff] %vm1266_vm3, %v1261_v24 }
 0x37e   : > { %1306 = vst.msk [vmem:[#allocation4 + $0x30] sm:$0xff] %vm1302_vm4, %v1297_v46  ;;  %v1324_v39 = vpop.permute.xlu1 %1323 }
 0x37f   : > { %1333 = vst.msk [vmem:[#allocation4 + $0x30] sm:$0xff] %vm1329_vm7, %v1324_v39 }
 0x380   : > { %1353 = vst.msk [vmem:[#allocation4 + $0x30] sm:$0xff] %vm1349_vm9, %v1344_v60 }
 0x381   : > { %v1406_v54 = vld [vmem:[#allocation4 + $0x20] sm:$0xff] }
 0x382   : > { %v1377_v36 = vpop.permute.xlu1 %1376  ;;  %1550 = vmatmul.mubr.bf16.gmra.mrb[8].mxu0 %v1406_v54 }
 0x383   : > { %1386 = vst.msk [vmem:[#allocation4 + $0x30] sm:$0xff] %vm1382_vm10, %v1377_v36  ;;  %6366 = vmatprep.mubr.msk.bf16.mxu0 %vm563_vm1, %v1409_v12 }
 0x38a   : > { %v1408_v61 = vld [vmem:[#allocation4 + $0x30] sm:$0xff] }
 0x38b   : > { %1558 = vmatmul.mubr.bf16.gmra.mrb[12].mxu0 %v1408_v61 }
 0x43e   : > { %v1535_v7 = vpop.f32.mrb[0].mxu0 }
 0x43f   : > { %v1537_v10 = vpop.f32.mrb[1].mxu0  ;;  %v1536_v35 = vadd.f32 %v6353_v41, %v1535_v7 }
 0x440   : > { %v1538_v15 = vpop.f32.mrb[2].mxu0 }
 0x441   : > { %v1540_v11 = vpop.f32.mrb[3].mxu0  ;;  %v1539_v57 = vadd.f32 %v6353_v41, %v1538_v15  ;;  %v1570_v8 = vsel %vm563_vm1, %v1536_v35, 0.0 }
 0x443   : > { %v1571_v3 = vsel %vm563_vm1, %v1539_v57, 0.0 }
 0x444   : > { %v1572_v42 = vadd.f32 %v1571_v3, %v1570_v8 }
 0x44a   : > { %v1543_v13 = vpop.f32.mrb[4].mxu0 }
 0x44b   : > { %v1545_v25 = vpop.f32.mrb[5].mxu0  ;;  %v1544_v59 = vadd.f32 %v6353_v41, %v1543_v13 }
 0x44c   : > { %v1546_v18 = vpop.f32.mrb[6].mxu0 }
 0x44d   : > { %v1548_v55 = vpop.f32.mrb[7].mxu0  ;;  %v1573_v5 = vsel %vm563_vm1, %v1544_v59, 0.0  ;;  %v1547_v1 = vadd.f32 %v6353_v41, %v1546_v18 }
 0x44e   : > { %v1574_v4 = vadd.f32 %v1573_v5, %v1572_v42 }
 0x44f   : > { %v1575_v40 = vsel %vm563_vm1, %v1547_v1, 0.0 }
 0x450   : > { %v1576_v56 = vadd.f32 %v1575_v40, %v1574_v4 }
 0x455   : > { %v1551_v45 = vpop.f32.mrb[8].mxu0 }
 0x456   : > { %v1552_v31 = vadd.f32 %v6353_v41, %v1551_v45  ;;  %v1553_v9 = vpop.f32.mrb[9].mxu0 }
 0x457   : > { %v1554_v20 = vpop.f32.mrb[10].mxu0 }
 0x458   : > { %v1556_v24 = vpop.f32.mrb[11].mxu0  ;;  %v1577_v43 = vsel %vm563_vm1, %v1552_v31, 0.0  ;;  %v1555_v52 = vadd.f32 %v6353_v41, %v1554_v20 }
 0x459   : > { %v1578_v28 = vadd.f32 %v1577_v43, %v1576_v56 }
 0x45a   : > { %v1579_v49 = vsel %vm563_vm1, %v1555_v52, 0.0 }
 0x45b   : > { %v1580_v26 = vadd.f32 %v1579_v49, %v1578_v28 }
 0x45e   : > { %v1559_v44 = vpop.f32.mrb[12].mxu0 }
 0x45f   : > { %v1560_v29 = vadd.f32 %v6353_v41, %v1559_v44  ;;  %v1561_v58 = vpop.f32.mrb[13].mxu0  ;;  %v474_v44 = vld [vmem:[#allocation3 + $0x18] sm:$0x1] }
 0x460   : > { %v1562_v48 = vpop.f32.mrb[14].mxu0  ;;  %v475_v58 = vsel %vm6869_vm5, 0, %v474_v44  ;;  %v6370_v44 = vld [vmem:[%s9748_s8] ss:$0 sm:$0xff] }
 0x461   : > { %v1581_v47 = vsel %vm563_vm1, %v1560_v29, 0.0  ;;  %v1563_v30 = vadd.f32 %v6353_v41, %v1562_v48  ;;  %v1564_v51 = vpop.f32.mrb[15].mxu0  ;;  %476 = vst [vmem:[#allocation3 + $0x18] sm:$0x1] %v475_v58  ;;  %v468_v48 = vld [vmem:[#allocation3 + $0x8] sm:$0x1] }
 0x462   : > { %v1582_v2 = vadd.f32 %v1581_v47, %v1580_v26  ;;  %v471_v47 = vld [vmem:[#allocation3 + $0x10] sm:$0x1] }
 0x463   : > { %v1583_v32 = vsel %vm563_vm1, %v1563_v30, 0.0  ;;  %v472_v51 = vsel %vm6869_vm5, 0, %v471_v47 }
 0x464   : > { %v1584_v21 = vadd.f32 %v1583_v32, %v1582_v2  ;;  %v486_v2 = vld [vmem:[#allocation3 + $0x38] sm:$0x1]  ;;  %v489_v32 = vld [vmem:[#allocation3 + $0x40] sm:$0x1]  ;;  %473 = vst [vmem:[#allocation3 + $0x10] sm:$0x1] %v472_v51 }
 0x466   : > { %v1585_v33 = vrot.slane %v1584_v21, 4 }
 0x468   : > { %v1586_v23 = vadd.f32 %v1585_v33, %v1584_v21  ;;  %v487_v21 = vsel %vm6869_vm5, 0, %v486_v2  ;;  %v490_v33 = vsel %vm6869_vm5, 0, %v489_v32 }
 0x469   : > { %488 = vst [vmem:[#allocation3 + $0x38] sm:$0x1] %v487_v21  ;;  %491 = vst [vmem:[#allocation3 + $0x40] sm:$0x1] %v490_v33 }
 0x46a   : > { %v1587_v34 = vrot.slane %v1586_v23, 2 }
 0x46c   : > { %v1588_v27 = vadd.f32 %v1587_v34, %v1586_v23  ;;  %v480_v23 = vld [vmem:[#allocation3 + $0x28] sm:$0x1]  ;;  %v483_v34 = vld [vmem:[#allocation3 + $0x30] sm:$0x1] }
 0x46e   : > { %v1589_v16 = vrot.slane %v1588_v27, 1 }
 0x470   : > { %v1590_v46 = vadd.f32 %v1589_v16, %v1588_v27  ;;  %v501_v27 = vld [vmem:[#allocation3 + $0x14] sm:$0x1]  ;;  %v481_v16 = vsel %vm6869_vm5, 0, %v480_v23 }
 0x471   : > { %482 = vst [vmem:[#allocation3 + $0x28] sm:$0x1] %v481_v16 }
 0x472   : > { %6559 = vmatmul.mubr.msk.f32.vlgmr.msra.gmra.mrb[4].mxu1 %vm563_vm1, %v1590_v46  ;;  %v484_v46 = vsel %vm6869_vm5, 0, %v483_v34 }
 0x473   : > { %6643 = vmatpush3.bf16.msra.mxu1 %v6639_v0  ;;  %6565 = vmatprep.mubr.msk.f32.mxu1 %vm6709_vm0, %v6710_v6  ;;  %485 = vst [vmem:[#allocation3 + $0x30] sm:$0x1] %v484_v46  ;;  %vm2276_vm0 = vcmask 523264  }
 0x545   : > { %v1660_v50 = vpop.f32.mrb[4].mxu1 }
 0x546   : > { %v1667_v39 = vrot.slane %v1660_v50, %v6822_v38  ;;  %v6560_v60 = vpop.f32.mrb[5].mxu1  ;;  %v502_v50 = vsel %vm6879_vm6, 0, %v501_v27 }
 0x547   : > { %503 = vst [vmem:[#allocation3 + $0x14] sm:$0x1] %v502_v50 }
 0x548   : > { %v7329_v54 = vsub.f32 %v1536_v35, %v1667_v39  ;;  %v7331_v36 = vsub.f32 %v1539_v57, %v1667_v39  ;;  %v7333_v12 = vsub.f32 %v1544_v59, %v1667_v39  ;;  %v7335_v61 = vsub.f32 %v1547_v1, %v1667_v39 }
 0x549   : > { %v7337_v62 = vsub.f32 %v1552_v31, %v1667_v39  ;;  %v7345_v7 = vsub.f32 %v1555_v52, %v1667_v39  ;;  %v7351_v25 = vsub.f32 %v1560_v29, %v1667_v39  ;;  %v7356_v55 = vsub.f32 %v1563_v30, %v1667_v39  ;;  %v477_v29 = vld [vmem:[#allocation3 + $0x20] sm:$0x1]  ;;  %v504_v39 = vld [vmem:[#allocation3 + $0x1c] sm:$0x1] }
 0x54a   : > { %v1676_v63 = vmul.f32 %v7329_v54, %v7329_v54  ;;  %v1677_v6 = vmul.f32 %v7331_v36, %v7331_v36  ;;  %v1678_v0 = vmul.f32 %v7333_v12, %v7333_v12  ;;  %v1679_v10 = vmul.f32 %v7335_v61, %v7335_v61 }
 0x54b   : > { %v1680_v41 = vmul.f32 %v7337_v62, %v7337_v62  ;;  %v1681_v35 = vmul.f32 %v7345_v7, %v7345_v7  ;;  %v1682_v8 = vmul.f32 %v7351_v25, %v7351_v25  ;;  %v1683_v42 = vmul.f32 %v7356_v55, %v7356_v55 }
 0x54c   : > { %v1684_v15 = vsel %vm563_vm1, %v1676_v63, 0.0  ;;  %v1685_v11 = vsel %vm563_vm1, %v1677_v6, 0.0  ;;  %v1687_v18 = vsel %vm563_vm1, %v1678_v0, 0.0  ;;  %v1689_v59 = vsel %vm563_vm1, %v1679_v10, 0.0  ;;  %v498_v63 = vld [vmem:[#allocation3 + $0xc] sm:$0x1] }
 0x54d   : > { %v1686_v13 = vadd.f32 %v1685_v11, %v1684_v15  ;;  %v1691_v5 = vsel %vm563_vm1, %v1680_v41, 0.0  ;;  %v1693_v45 = vsel %vm563_vm1, %v1681_v35, 0.0  ;;  %v1695_v31 = vsel %vm563_vm1, %v1682_v8, 0.0  ;;  %v507_v6 = vld [vmem:[#allocation3 + $0x24] sm:$0x1] }
 0x54e   : > { %v1697_v40 = vsel %vm563_vm1, %v1683_v42, 0.0  ;;  %v478_v26 = vsel %vm6869_vm5, 0, %v477_v29  ;;  %v469_v30 = vsel %vm6869_vm5, 0, %v468_v48  ;;  %v505_v60 = vsel %vm6879_vm6, 0, %v504_v39  ;;  %v513_v15 = vld [vmem:[#allocation3 + $0x34] sm:$0x1] }
 0x54f   : > { %v1688_v57 = vadd.f32 %v1687_v18, %v1686_v13  ;;  %479 = vst [vmem:[#allocation3 + $0x20] sm:$0x1] %v478_v26  ;;  %470 = vst [vmem:[#allocation3 + $0x8] sm:$0x1] %v469_v30  ;;  %v499_v0 = vsel %vm6879_vm6, 0, %v498_v63  ;;  %v508_v10 = vsel %vm6879_vm6, 0, %v507_v6 }
 0x550   : > { %506 = vst [vmem:[#allocation3 + $0x1c] sm:$0x1] %v505_v60  ;;  %v516_v11 = vld [vmem:[#allocation3 + $0x3c] sm:$0x1]  ;;  %500 = vst [vmem:[#allocation3 + $0xc] sm:$0x1] %v499_v0 }
 0x551   : > { %v1690_v3 = vadd.f32 %v1689_v59, %v1688_v57  ;;  %509 = vst [vmem:[#allocation3 + $0x24] sm:$0x1] %v508_v10  ;;  %v514_v13 = vsel %vm6879_vm6, 0, %v513_v15  ;;  %v517_v41 = vsel %vm6879_vm6, 0, %v516_v11  ;;  %v510_v18 = vld [vmem:[#allocation3 + $0x2c] sm:$0x1] }
 0x552   : > { %v519_v57 = vld [vmem:[#allocation3 + $0x44] sm:$0x1]  ;;  %515 = vst [vmem:[#allocation3 + $0x34] sm:$0x1] %v514_v13  ;;  %518 = vst [vmem:[#allocation3 + $0x3c] sm:$0x1] %v517_v41 }
 0x553   : > { %v1692_v1 = vadd.f32 %v1691_v5, %v1690_v3  ;;  %v511_v35 = vsel %vm6879_vm6, 0, %v510_v18  ;;  %v520_v59 = vsel %vm6879_vm6, 0, %v519_v57  ;;  %v492_v3 = vld [vmem:[#allocation3 + $0x48] sm:$0x1]  ;;  %v465_v5 = vld [vmem:[#allocation3] sm:$0x1] }
 0x554   : > { %512 = vst [vmem:[#allocation3 + $0x2c] sm:$0x1] %v511_v35  ;;  %521 = vst [vmem:[#allocation3 + $0x44] sm:$0x1] %v520_v59  ;;  %v493_v8 = vsel %vm6869_vm5, 0, %v492_v3  ;;  %v466_v42 = vsel %vm6869_vm5, 0, %v465_v5 }
 0x555   : > { %v1694_v4 = vadd.f32 %v1693_v45, %v1692_v1  ;;  %494 = vst [vmem:[#allocation3 + $0x48] sm:$0x1] %v493_v8  ;;  %v495_v1 = vld [vmem:[#allocation3 + $0x4] sm:$0x1]  ;;  %467 = vst [vmem:[#allocation3] sm:$0x1] %v466_v42 }
 0x556   : > { %v496_v45 = vsel %vm6879_vm6, 0, %v495_v1 }
 0x557   : > { %v1696_v9 = vadd.f32 %v1695_v31, %v1694_v4  ;;  %497 = vst [vmem:[#allocation3 + $0x4] sm:$0x1] %v496_v45  ;;  %v522_v4 = vld [vmem:[#allocation3 + $0x4c] sm:$0x1] }
 0x558   : > { %v523_v31 = vsel %vm6879_vm6, 0, %v522_v4 }
 0x559   : > { %v1698_v20 = vadd.f32 %v1697_v40, %v1696_v9  ;;  %524 = vst [vmem:[#allocation3 + $0x4c] sm:$0x1] %v523_v31 }
 0x55b   : > { %v1699_v24 = vrot.slane %v1698_v20, 4  ;;  %v1967_v53 = vld [vmem:[#allocation3 + $0x2c] sm:$0x1] }
 0x55d   : > { %v1700_v43 = vadd.f32 %v1699_v24, %v1698_v20 }
 0x55f   : > { %v1701_v52 = vrot.slane %v1700_v43, 2 }
 0x561   : > { %v1702_v56 = vadd.f32 %v1701_v52, %v1700_v43  ;;  %v6369_v52 = vld [vmem:[%s9747_s7] ss:$0 sm:$0xff] }
 0x563   : > { %v1703_v28 = vrot.slane %v1702_v56, 1 }
 0x565   : > { %v1704_v49 = vadd.f32 %v1703_v28, %v1702_v56 }
 0x567   : > { %6566 = vmatmul.mubr.msk.f32.vlgmr.msra.gmra.mrb[6].mxu1 %vm563_vm1, %v1704_v49 }
 0x63a   : > { %v1774_v9 = vpop.f32.mrb[6].mxu1 }
 0x63b   : > { %v1775_v40 = vadd.f32 1e-05, %v1774_v9  ;;  %v6567_v20 = vpop.f32.mrb[7].mxu1 }
 0x63d   : > { %6697 = vrsqrt.f32 %v1775_v40 }
 0x647   : > { %v6698_v24 = vpop.eup %6697 }
 0x648   : > { %v1782_v43 = vrot.slane %v6698_v24, %v6822_v38 }
 0x64a   : > { %v1783_v56 = vmul.f32 %v1782_v43, %v7329_v54  ;;  %v1784_v28 = vmul.f32 %v1782_v43, %v7331_v36  ;;  %v1785_v49 = vmul.f32 %v1782_v43, %v7333_v12  ;;  %v1786_v22 = vmul.f32 %v1782_v43, %v7335_v61 }
 0x64b   : > { %v1787_v29 = vmul.f32 %v1782_v43, %v7337_v62  ;;  %v1788_v58 = vmul.f32 %v1782_v43, %v7345_v7  ;;  %v1789_v26 = vmul.f32 %v1782_v43, %v7351_v25  ;;  %v1790_v48 = vmul.f32 %v1782_v43, %v7356_v55 }
 0x64c   : > { %v1797_v47 = vmul.f32 %v6369_v52, %v1783_v56  ;;  %v1798_v54 = vmul.f32 %v6369_v52, %v1784_v28  ;;  %v1799_v30 = vmul.f32 %v6369_v52, %v1785_v49  ;;  %v1800_v36 = vmul.f32 %v6369_v52, %v1786_v22 }
 0x64d   : > { %v1801_v51 = vmul.f32 %v6369_v52, %v1787_v29  ;;  %v1802_v12 = vmul.f32 %v6369_v52, %v1788_v58  ;;  %v1803_v2 = vmul.f32 %v6369_v52, %v1789_v26  ;;  %v1804_v61 = vmul.f32 %v6369_v52, %v1790_v48  ;;  %v1952_v52 = vld [vmem:[#allocation3 + $0x18] sm:$0xf] }
 0x64e   : > { %v1811_v32 = vadd.f32 %v6370_v44, %v1797_v47  ;;  %v1812_v21 = vadd.f32 %v6370_v44, %v1798_v54  ;;  %v1813_v33 = vadd.f32 %v6370_v44, %v1799_v30  ;;  %v1814_v23 = vadd.f32 %v6370_v44, %v1800_v36  ;;  %v1940_v47 = vld [vmem:[#allocation3 + $0x8] sm:$0xf]  ;;  %v1946_v54 = vld [vmem:[#allocation3 + $0x10] sm:$0xf] }
 0x64f   : > { %v1815_v34 = vadd.f32 %v6370_v44, %v1801_v51  ;;  %v1816_v62 = vadd.f32 %v6370_v44, %v1802_v12  ;;  %v1817_v27 = vadd.f32 %v6370_v44, %v1803_v2  ;;  %v1818_v7 = vadd.f32 %v6370_v44, %v1804_v61  ;;  %v1958_v44 = vld [vmem:[#allocation3 + $0x20] sm:$0xf]  ;;  %v1964_v2 = vld [vmem:[#allocation3 + $0x28] sm:$0xf]  ;;  %v1970_v61 = vld [vmem:[#allocation3 + $0x30] sm:$0xf] }
 0x650   : > { %v1819_v16 = vmax.f32 %v1811_v32, 0.0  ;;  %v1820_v25 = vmax.f32 %v1812_v21, 0.0  ;;  %v1821_v46 = vmax.f32 %v1813_v33, 0.0  ;;  %v1822_v55 = vmax.f32 %v1814_v23, 0.0  ;;  %v1976_v33 = vld [vmem:[#allocation3 + $0x38] sm:$0xf] }
 0x651   : > { %v1823_v50 = vmax.f32 %v1815_v34, 0.0  ;;  %v1824_v39 = vmax.f32 %v1816_v62, 0.0  ;;  %v1825_v60 = vmax.f32 %v1817_v27, 0.0  ;;  %v1826_v63 = vmax.f32 %v1818_v7, 0.0  ;;  %v1982_v23 = vld [vmem:[#allocation3 + $0x40] sm:$0xf] }
 0x652   : > { %v6488_v6 = vpack.c.bf16 %v1819_v16, %v1819_v16  ;;  %v6489_v0 = vpack.c.bf16 %v1820_v25, %v1820_v25  ;;  %v6490_v10 = vpack.c.bf16 %v1821_v46, %v1821_v46  ;;  %v6491_v15 = vpack.c.bf16 %v1822_v55, %v1822_v55  ;;  %v1949_v46 = vld [vmem:[#allocation3 + $0x14] sm:$0x1]  ;;  %v1955_v55 = vld [vmem:[#allocation3 + $0x1c] sm:$0x1] }
 0x653   : > { %v6492_v11 = vpack.c.bf16 %v1823_v50, %v1823_v50  ;;  %v6493_v13 = vpack.c.bf16 %v1824_v39, %v1824_v39  ;;  %v6494_v41 = vpack.c.bf16 %v1825_v60, %v1825_v60  ;;  %v6495_v18 = vpack.c.bf16 %v1826_v63, %v1826_v63 }
 0x654   : > { %v1860_v57 = vshrl.u32 %v6488_v6, 16  ;;  %v1863_v35 = vshll.u32 %v6488_v6, 16  ;;  %v1868_v59 = vshrl.u32 %v6489_v0, 16  ;;  %v1871_v3 = vshll.u32 %v6489_v0, 16  ;;  %v1943_v6 = vld [vmem:[#allocation3 + $0xc] sm:$0x1] }
 0x655   : > { %v1876_v8 = vshrl.u32 %v6490_v10, 16  ;;  %v1879_v5 = vshll.u32 %v6490_v10, 16  ;;  %v1884_v1 = vshrl.u32 %v6491_v15, 16  ;;  %v1887_v42 = vshll.u32 %v6491_v15, 16  ;;  %v1961_v0 = vld [vmem:[#allocation3 + $0x24] sm:$0x1] }
 0x656   : > { %v7425_v45 = vrot.slane %v1860_v57, 7  ;;  %v1870_v4 = vrot.slane %v1868_v59, 7  ;;  %v1892_v31 = vshrl.u32 %v6492_v11, 16  ;;  %v1895_v9 = vshll.u32 %v6492_v11, 16 }
 0x657   : > { %v1878_v40 = vrot.slane %v1876_v8, 7  ;;  %v7427_v20 = vrot.slane %v1884_v1, 7  ;;  %v1900_v24 = vshrl.u32 %v6493_v13, 16  ;;  %v1903_v43 = vshll.u32 %v6493_v13, 16  ;;  %v1985_v8 = vld [vmem:[#allocation3 + $0x44] sm:$0x1] }
 0x658   : > { %v7429_v56 = vrot.slane %v1892_v31, 7  ;;  %v1908_v28 = vshrl.u32 %v6494_v41, 16  ;;  %v1911_v49 = vshll.u32 %v6494_v41, 16  ;;  %v1916_v22 = vshrl.u32 %v6495_v18, 16  ;;  %v1973_v41 = vld [vmem:[#allocation3 + $0x34] sm:$0x1] }
 0x659   : > { %v1902_v29 = vrot.slane %v1900_v24, 7  ;;  %v1919_v58 = vshll.u32 %v6495_v18, 16  ;;  %v1881_v26 = vor.u32 %v1879_v5, %v1878_v40  ;;  %v1889_v48 = vor.u32 %v1887_v42, %v7427_v20  ;;  %v1979_v18 = vld [vmem:[#allocation3 + $0x3c] sm:$0x1] }
 0x65a   : > { %v1910_v30 = vrot.slane %v1908_v28, 7  ;;  %v1918_v36 = vrot.slane %v1916_v22, 7  ;;  %v1865_v51 = vor.u32 %v1863_v35, %v7425_v45  ;;  %v1873_v12 = vor.u32 %v1871_v3, %v1870_v4 }
 0x65b   : > { %v1953_v32 = vsel %vm6906_vm8, %v1881_v26, %v1952_v52  ;;  %v1959_v21 = vsel %vm6906_vm8, %v1889_v48, %v1958_v44  ;;  %v1897_v34 = vor.u32 %v1895_v9, %v7429_v56  ;;  %v1905_v62 = vor.u32 %v1903_v43, %v1902_v29  ;;  %v7499_v26 = vld [vmem:[#allocation3] sm:$0xf] }
 0x65c   : > { %1954 = vst [vmem:[#allocation3 + $0x18] sm:$0xf] %v1953_v32  ;;  %1960 = vst [vmem:[#allocation3 + $0x20] sm:$0xf] %v1959_v21  ;;  %v1941_v27 = vsel %vm6906_vm8, %v1865_v51, %v1940_v47  ;;  %v1947_v7 = vsel %vm6906_vm8, %v1873_v12, %v1946_v54  ;;  %v1913_v16 = vor.u32 %v1911_v49, %v1910_v30  ;;  %v1874_v60 = vrot.slane %v1870_v4, 4 }
 0x65d   : > { %v1921_v25 = vor.u32 %v1919_v58, %v1918_v36  ;;  %1942 = vst [vmem:[#allocation3 + $0x8] sm:$0xf] %v1941_v27  ;;  %1948 = vst [vmem:[#allocation3 + $0x10] sm:$0xf] %v1947_v7  ;;  %v1965_v50 = vsel %vm6906_vm8, %v1897_v34, %v1964_v2  ;;  %v1971_v39 = vsel %vm6906_vm8, %v1905_v62, %v1970_v61  ;;  %v1882_v63 = vrot.slane %v1878_v40, 4 }
 0x65e   : > { %v1977_v10 = vsel %vm6906_vm8, %v1913_v16, %v1976_v33  ;;  %1966 = vst [vmem:[#allocation3 + $0x28] sm:$0xf] %v1965_v50  ;;  %1972 = vst [vmem:[#allocation3 + $0x30] sm:$0xf] %v1971_v39  ;;  %v1866_v11 = vrot.slane %v7425_v45, 4  ;;  %v1890_v13 = vrot.slane %v7427_v20, 4  ;;  %v1950_v57 = vsel %vm6869_vm5, %v1874_v60, %v1949_v46 }
 0x65f   : > { %v1983_v15 = vsel %vm6906_vm8, %v1921_v25, %v1982_v23  ;;  %1978 = vst [vmem:[#allocation3 + $0x38] sm:$0xf] %v1977_v10  ;;  %v1956_v35 = vsel %vm6869_vm5, %v1882_v63, %v1955_v55  ;;  %v1906_v59 = vrot.slane %v1902_v29, 4  ;;  %v1914_v3 = vrot.slane %v1910_v30, 4  ;;  %1951 = vst [vmem:[#allocation3 + $0x14] sm:$0x1] %v1950_v57 }
 0x660   : > { %1984 = vst [vmem:[#allocation3 + $0x40] sm:$0xf] %v1983_v15  ;;  %1957 = vst [vmem:[#allocation3 + $0x1c] sm:$0x1] %v1956_v35  ;;  %v1944_v5 = vsel %vm6869_vm5, %v1866_v11, %v1943_v6  ;;  %v1962_v1 = vsel %vm6869_vm5, %v1890_v13, %v1961_v0  ;;  %v1898_v42 = vrot.slane %v7429_v56, 4  ;;  %v1922_v45 = vrot.slane %v1918_v36, 4 }
 0x661   : > { %1945 = vst [vmem:[#allocation3 + $0xc] sm:$0x1] %v1944_v5  ;;  %1963 = vst [vmem:[#allocation3 + $0x24] sm:$0x1] %v1962_v1  ;;  %v1974_v4 = vsel %vm6869_vm5, %v1906_v59, %v1973_v41  ;;  %v1980_v31 = vsel %vm6869_vm5, %v1914_v3, %v1979_v18  ;;  %v7526_v12 = vld [vmem:[#allocation3 + $0x4] sm:$0x1] }
 0x662   : > { %1975 = vst [vmem:[#allocation3 + $0x34] sm:$0x1] %v1974_v4  ;;  %1981 = vst [vmem:[#allocation3 + $0x3c] sm:$0x1] %v1980_v31  ;;  %v1968_v9 = vsel %vm6869_vm5, %v1898_v42, %v1967_v53  ;;  %v1986_v40 = vsel %vm6869_vm5, %v1922_v45, %v1985_v8  ;;  %v7531_v61 = vld [vmem:[#allocation3 + $0x48] sm:$0xf] }
 0x663   : > { %v7469_v20 = vld [vmem:[#allocation3 + $0x18] sm:$0xf]  ;;  %v7471_v24 = vld [vmem:[#allocation3 + $0x20] sm:$0xf]  ;;  %1969 = vst [vmem:[#allocation3 + $0x2c] sm:$0x1] %v1968_v9 }
 0x664   : > { %1987 = vst [vmem:[#allocation3 + $0x44] sm:$0x1] %v1986_v40  ;;  %v7475_v43 = vcombine.low %v7469_v20, %v7471_v24  ;;  %v7477_v52 = vld [vmem:[#allocation3 + $0x8] sm:$0xf]  ;;  %v7479_v56 = vld [vmem:[#allocation3 + $0x10] sm:$0xf] }
 0x665   : > { %v7483_v28 = vcombine.low %v7477_v52, %v7479_v56  ;;  %v7485_v17 = vld [vmem:[#allocation3 + $0x28] sm:$0xf]  ;;  %v7487_v49 = vld [vmem:[#allocation3 + $0x30] sm:$0xf]  ;;  %v6380_v22 = vcombine.low %v7479_v56, %v7469_v20  ;;  %v6379_v30 = vcombine.low %v7499_v26, %v7477_v52  ;;  %v6406_v32 = vrot.slane %v7479_v56, 9 }
 0x666   : > { %2184 = vrot.lane.b32.xlu1 %v7475_v43, %s6714_s14  ;;  %v7493_v44 = vld [vmem:[#allocation3 + $0x38] sm:$0xf]  ;;  %v6381_v58 = vcombine.low %v7471_v24, %v7485_v17  ;;  %v7513_v54 = vcombine.low %v7485_v17, %v7487_v49  ;;  %v7520_v36 = vld [vmem:[#allocation3 + $0x14] sm:$0x1]  ;;  %v6407_v33 = vrot.slane %v7469_v20, 9  ;;  %v6404_v34 = vrot.slane %v7499_v26, 9 }
 0x667   : > { %v7495_v29 = vld [vmem:[#allocation3 + $0x40] sm:$0xf]  ;;  %2182 = vrot.lane.b32.xlu0 %v7483_v28, %s6714_s14  ;;  %2033 = vst.msk [vmem:[#allocation5 + $0x8] sm:$0xff] %vm563_vm1, %v6380_v22  ;;  %v6382_v48 = vcombine.low %v7487_v49, %v7493_v44  ;;  %v7522_v51 = vld [vmem:[#allocation3 + $0x1c] sm:$0x1]  ;;  %2032 = vst.msk [vmem:[#allocation5] sm:$0xff] %vm563_vm1, %v6379_v30 }
 0x668   : > { %v7508_v47 = vcombine.low %v7493_v44, %v7495_v29  ;;  %2034 = vst.msk [vmem:[#allocation5 + $0x10] sm:$0xff] %vm563_vm1, %v6381_v58  ;;  %v7528_v2 = vld [vmem:[#allocation3 + $0xc] sm:$0x1]  ;;  %v2380_v21 = vrot.slane %v7520_v36, 5  ;;  %v2384_v23 = vrot.slane %v7522_v51, 5  ;;  %v2372_v62 = vrot.slane %v7526_v12, 5 }
 0x669   : > { %2035 = vst.msk [vmem:[#allocation5 + $0x18] sm:$0xff] %vm563_vm1, %v6382_v48  ;;  %v6405_v27 = vrot.slane %v7477_v52, 9  ;;  %v2376_v7 = vrot.slane %v7528_v2, 5  ;;  %v7542_v16 = vld [vmem:[#allocation3 + $0x24] sm:$0x1]  ;;  %v6438_v46 = vcombine.low %v7495_v29, %v7531_v61  ;;  %v6408_v60 = vrot.slane %v7471_v24, 9 }
 0x66a   : > { %2188 = vrot.lane.b32.xlu1 %v7508_v47, %s6714_s14  ;;  %v7545_v25 = vld [vmem:[#allocation3 + $0x34] sm:$0x1]  ;;  %v7549_v55 = vld [vmem:[#allocation3 + $0x3c] sm:$0x1]  ;;  %v2381_v50 = vsel %vm7006_vm11, %v6406_v32, %v2380_v21  ;;  %v2385_v39 = vsel %vm7006_vm11, %v6407_v33, %v2384_v23  ;;  %v2388_v63 = vrot.slane %v7542_v16, 5  ;;  %v2373_v6 = vsel %vm7006_vm11, %v6404_v34, %v2372_v62 }
 0x66b   : > { %2186 = vrot.lane.b32.xlu0 %v7513_v54, %s6714_s14  ;;  %v2377_v0 = vsel %vm7006_vm11, %v6405_v27, %v2376_v7  ;;  %v6410_v10 = vrot.slane %v7487_v49, 9  ;;  %v2396_v15 = vrot.slane %v7545_v25, 5  ;;  %v6411_v11 = vrot.slane %v7493_v44, 9  ;;  %v7567_v41 = vld [vmem:[#allocation3 + $0x2c] sm:$0x1] }
 0x66c   : > { %v2400_v13 = vrot.slane %v7549_v55, 5  ;;  %v7569_v18 = vld [vmem:[#allocation3 + $0x44] sm:$0x1]  ;;  %v7571_v57 = vcombine.low %v2381_v50, %v2385_v39  ;;  %v2037_v35 = vshrl.u32 %v7499_v26, 16  ;;  %v6412_v59 = vcombine.low %v2373_v6, %v2377_v0 }
 0x66d   : > { %v2389_v3 = vsel %vm7006_vm11, %v6408_v60, %v2388_v63  ;;  %v6409_v53 = vrot.slane %v7485_v17, 9  ;;  %v2040_v8 = vshll.u32 %v7499_v26, 16  ;;  %v2397_v5 = vsel %vm7006_vm11, %v6410_v10, %v2396_v15  ;;  %v6679_v63 = vld [vmem:[%s9749_s9] sm:$0xff]  }
 0x66e   : > { %2622 = vrot.lane.b32.xlu1 %v6381_v58, %s6714_s14  ;;  %v2392_v1 = vrot.slane %v7567_v41, 5  ;;  %v6416_v42 = vrot.slane %v7495_v29, 9  ;;  %v2449_v45 = vrot.slane %v7569_v18, 5  ;;  %v2401_v4 = vsel %vm7006_vm11, %v6411_v11, %v2400_v13  ;;  %6568 = vmatprep.subr.bf16.mxu1 %v6679_v63 }
 0x66f   : > { %2620 = vrot.lane.b32.xlu0 %v6380_v22, %s6714_s14  ;;  %v2065_v31 = vshrl.u32 %v7479_v56, 16  ;;  %v2068_v9 = vshll.u32 %v7479_v56, 16  ;;  %v2079_v40 = vshrl.u32 %v7469_v20, 16  ;;  %v6418_v22 = vcombine.low %v2385_v39, %v2389_v3  ;;  %6569 = vmatpush3.bf16.msra.mxu1 %v6679_v63 }
 0x670   : > { %v2082_v58 = vshll.u32 %v7469_v20, 16  ;;  %v2051_v26 = vshrl.u32 %v7477_v52, 16  ;;  %v7594_v30 = vcombine.low %v2377_v0, %v2381_v50  ;;  %v2039_v32 = vrot.slane %v2037_v35, 4 }
 0x671   : > { %v7597_v21 = vcombine.low %v2397_v5, %v2401_v4  ;;  %v2393_v33 = vsel %vm7006_vm11, %v6409_v53, %v2392_v1  ;;  %v7603_v56 = vsel %vm7006_vm11, %v6416_v42, %v2449_v45  ;;  %v2042_v23 = vrot.slane %v2040_v8, 5 }
 0x672   : > { %2626 = vrot.lane.b32.xlu1 %v6438_v46, %s6714_s14  ;;  %v2067_v20 = vrot.slane %v2065_v31, 4  ;;  %v2081_v34 = vrot.slane %v2079_v40, 4  ;;  %v2093_v62 = vshrl.u32 %v7471_v24, 16  ;;  %v2084_v27 = vrot.slane %v2082_v58, 5 }
 0x673   : > { %2624 = vrot.lane.b32.xlu0 %v6382_v48, %s6714_s14  ;;  %v2054_v48 = vshll.u32 %v7477_v52, 16  ;;  %v2070_v52 = vrot.slane %v2068_v9, 5  ;;  %v2053_v7 = vrot.slane %v2051_v26, 4  ;;  %v2096_v50 = vshll.u32 %v7471_v24, 16 }
 0x674   : > { %v6414_v39 = vcombine.low %v2389_v3, %v2393_v33  ;;  %v2046_v60 = vshll.u32 %v7526_v12, 16  ;;  %v2074_v6 = vshll.u32 %v7520_v36, 16  ;;  %v2043_v0 = vor.u32 %v2042_v23, %v2039_v32 }
 0x675   : > { %v2056_v46 = vrot.slane %v2054_v48, 5  ;;  %v7618_v10 = vcombine.low %v2401_v4, %v7603_v56  ;;  %v2071_v15 = vor.u32 %v2070_v52, %v2067_v20  ;;  %v2095_v24 = vrot.slane %v2093_v62, 4 }
 0x676   : > { %2416 = vrot.lane.b32.xlu1 %v7571_v57, %s6718_s25  ;;  %v2121_v11 = vshrl.u32 %v7487_v49, 16  ;;  %v2085_v12 = vor.u32 %v2084_v27, %v2081_v34  ;;  %v2098_v35 = vrot.slane %v2096_v50, 5  ;;  %v7622_v36 = vcombine.low %v2393_v33, %v2397_v5 }
 0x677   : > { %2414 = vrot.lane.b32.xlu0 %v6412_v59, %s6718_s25  ;;  %v2057_v13 = vor.u32 %v2056_v46, %v2053_v7  ;;  %v2124_v59 = vshll.u32 %v7487_v49, 16  ;;  %v2048_v3 = vrot.slane %v2046_v60, 5  ;;  %v2135_v53 = vshrl.u32 %v7493_v44, 16 }
 0x678   : > { %v2138_v8 = vshll.u32 %v7493_v44, 16  ;;  %v2088_v1 = vshll.u32 %v7522_v51, 16  ;;  %v2060_v42 = vshll.u32 %v7528_v2, 16  ;;  %v2107_v45 = vshrl.u32 %v7485_v17, 16  ;;  %v6680_v44 = vld [vmem:[%s9749_s9 + $0x8] sm:$0xff]  }
 0x679   : > { %v2110_v4 = vshll.u32 %v7485_v17, 16  ;;  %v2076_v49 = vrot.slane %v2074_v6, 5  ;;  %v2072_v5 = vrot.slane %v2071_v15, 4  ;;  %v2044_v31 = vrot.slane %v2043_v0, 4  ;;  %6570 = vmatprep.subr.bf16.mxu1 %v6680_v44 }
 0x67a   : > { %2458 = vrot.lane.b32.xlu1 %v6418_v22, %s6713_s13  ;;  %v2123_v9 = vrot.slane %v2121_v11, 4  ;;  %v2086_v51 = vrot.slane %v2085_v12, 4  ;;  %v2058_v40 = vrot.slane %v2057_v13, 4  ;;  %v2099_v58 = vor.u32 %v2098_v35, %v2095_v24  ;;  %6571 = vmatpush3.bf16.msra.mxu1 %v6680_v44 }
 0x67b   : > { %2456 = vrot.lane.b32.xlu0 %v7594_v30, %s6713_s13  ;;  %v2126_v26 = vrot.slane %v2124_v59, 5  ;;  %v2137_v2 = vrot.slane %v2135_v53, 4  ;;  %v2140_v48 = vrot.slane %v2138_v8, 5  ;;  %v2199_v32 = vshrl.u32 %v7495_v29, 16 }
 0x67c   : > { %v2202_v17 = vshll.u32 %v7495_v29, 16  ;;  %v2090_v33 = vrot.slane %v2088_v1, 5  ;;  %v2062_v23 = vrot.slane %v2060_v42, 5  ;;  %v2109_v20 = vrot.slane %v2107_v45, 4 }
 0x67d   : > { %v2112_v52 = vrot.slane %v2110_v4, 5  ;;  %v2102_v34 = vshll.u32 %v7542_v16, 16  ;;  %v2049_v62 = vsel %vm7094_vm14, %v2044_v31, %v2048_v3  ;;  %v2077_v27 = vsel %vm7094_vm14, %v2072_v5, %v2076_v49  ;;  %v7689_v49 = vld [vmem:[%s9749_s9 + $0x20] sm:$0xff]  }
 0x67e   : > { %2420 = vrot.lane.b32.xlu1 %v7597_v21, %s6718_s25  ;;  %v2091_v29 = vsel %vm7094_vm14, %v2086_v51, %v2090_v33  ;;  %v2100_v7 = vrot.slane %v2099_v58, 4  ;;  %v2127_v46 = vor.u32 %v2126_v26, %v2123_v9  ;;  %v2141_v50 = vor.u32 %v2140_v48, %v2137_v2  ;;  %v6685_v58 = vld [vmem:[%s9749_s9 + $0x60] sm:$0xff]  }
 0x67f   : > { %2418 = vrot.lane.b32.xlu0 %v6414_v39, %s6718_s25  ;;  %v2201_v60 = vrot.slane %v2199_v32, 4  ;;  %v2204_v16 = vrot.slane %v2202_v17, 5  ;;  %v2104_v63 = vrot.slane %v2102_v34, 5  ;;  %v2130_v6 = vshll.u32 %v7545_v25, 16  ;;  %6616 = vmatprep.subr.bf16.mxu0 %v6685_v58  ;;  %v2007_v17 = vld [vmem:[#allocation3 + $0x4c] sm:$0x1] }
 0x680   : > { %v2144_v0 = vshll.u32 %v7549_v55, 16  ;;  %v2116_v15 = vshll.u32 %v7567_v41, 16  ;;  %v7657_v24 = vcombine.low %v2077_v27, %v2091_v29  ;;  %v2128_v13 = vrot.slane %v2127_v46, 4  ;;  %v6681_v55 = vld [vmem:[%s9749_s9 + $0x10] sm:$0xff]   ;;  %v6682_v41 = vld [vmem:[%s9749_s9 + $0x18] sm:$0xff]   ;;  %6617 = vmatpush3.bf16.msra.mxu0 %v6685_v58  ;;  %v6684_v58 = vld [vmem:[%s9749_s9 + $0x28] sm:$0xff]  }
 0x681   : > { %v2105_v12 = vsel %vm7094_vm14, %v2100_v7, %v2104_v63  ;;  %v2205_v35 = vor.u32 %v2204_v16, %v2201_v60  ;;  %v2208_v3 = vshll.u32 %v7569_v18, 16  ;;  %6572 = vmatprep.subr.bf16.mxu1 %v6681_v55  ;;  %v2637_v26 = vshrl.u32 %v7531_v61, 16 }
 0x682   : > { %2462 = vrot.lane.b32.xlu1 %v7618_v10, %s6713_s13  ;;  %v2146_v59 = vrot.slane %v2144_v0, 5  ;;  %v2118_v53 = vrot.slane %v2116_v15, 5  ;;  %v7674_v8 = vcombine.low %v2091_v29, %v2105_v12  ;;  %6573 = vmatpush3.bf16.msra.mxu1 %v6681_v55  ;;  %v2640_v2 = vshll.u32 %v7531_v61, 16  ;;  %v6694_v29 = vld [vmem:[%s9749_s9 + $0x78] sm:$0xff]  }
 0x683   : > { %2460 = vrot.lane.b32.xlu0 %v7622_v36, %s6713_s13  ;;  %v2206_v4 = vrot.slane %v2205_v35, 4  ;;  %6574 = vmatprep.subr.bf16.mxu1 %v6682_v41  ;;  %v2210_v5 = vrot.slane %v2208_v3, 5  ;;  %v2639_v48 = vrot.slane %v2637_v26, 4  ;;  %v6457_v14 = vrot.slane %v7531_v61, 9 }
 0x684   : > { %v2642_v32 = vrot.slane %v2640_v2, 5  ;;  %v2832_v7 = vrot.slane %v2007_v17, 5  ;;  %v6686_v2 = vld [vmem:[%s9749_s9 + $0x30] sm:$0xff]  }
 0x685   : > { %v2211_v44 = vsel %vm7094_vm14, %v2206_v4, %v2210_v5 }
 0x686   : > { %2799 = vrot.lane.b32.xlu1 %v6418_v22, %s6718_s25  ;;  %v2063_v22 = vsel %vm7094_vm14, %v2058_v40, %v2062_v23  ;;  %6575 = vmatpush3.bf16.msra.mxu1 %v6682_v41  ;;  %v2643_v33 = vor.u32 %v2642_v32, %v2639_v48  ;;  %v2646_v23 = vshll.u32 %v2007_v17, 16  ;;  %v2833_v46 = vsel %vm7006_vm11, %v6457_v14, %v2832_v7  ;;  %v6687_v17 = vld [vmem:[%s9749_s9 + $0x38] sm:$0xff]  }
 0x687   : > { %2797 = vrot.lane.b32.xlu0 %v7594_v30, %s6718_s25  ;;  %v2113_v30 = vor.u32 %v2112_v52, %v2109_v20  ;;  %v7659_v11 = vcombine.low %v2049_v62, %v2063_v22  ;;  %v7676_v1 = vcombine.low %v2063_v22, %v2077_v27  ;;  %6584 = vmatprep.subr.bf16.mxu1 %v7689_v49  ;;  %v6688_v20 = vld [vmem:[%s9749_s9 + $0x68] sm:$0xff]   ;;  %v6691_v52 = vld [vmem:[%s9749_s9 + $0x70] sm:$0xff]  }
 0x688   : > { %6618 = vmatprep.subr.bf16.mxu0 %v6688_v20  ;;  %v2644_v34 = vrot.slane %v2643_v33, 4  ;;  %v2648_v62 = vrot.slane %v2646_v23, 5 }
 0x689   : > { %v2114_v25 = vrot.slane %v2113_v30, 4  ;;  %6619 = vmatpush3.bf16.msra.mxu0 %v6688_v20 }
 0x68a   : > { %2838 = vrot.lane.b32.xlu1 %v6414_v39, %s6713_s13  ;;  %v2142_v39 = vrot.slane %v2141_v50, 4  ;;  %6620 = vmatprep.subr.bf16.mxu0 %v6691_v52  ;;  %v2649_v27 = vsel %vm7094_vm14, %v2644_v34, %v2648_v62  ;;  %v6458_v50 = vcombine.low %v7603_v56, %v2833_v46  ;;  %v6693_v46 = vld [vmem:[%s9749_s9 + $0x58] sm:$0xff]  }
 0x68b   : > { %2836 = vrot.lane.b32.xlu0 %v7571_v57, %s6713_s13  ;;  %v2132_v57 = vrot.slane %v2130_v6, 5  ;;  %v2119_v18 = vsel %vm7094_vm14, %v2114_v25, %v2118_v53  ;;  %v6439_v22 = vcombine.low %v2211_v44, %v2649_v27 }
 0x68c   : > { %v2147_v45 = vsel %vm7094_vm14, %v2142_v39, %v2146_v59  ;;  %v7695_v9 = vcombine.low %v2105_v12, %v2119_v18 }
 0x68d   : > { %v2133_v42 = vsel %vm7094_vm14, %v2128_v13, %v2132_v57  ;;  %v7704_v51 = vcombine.low %v2147_v45, %v2211_v44  ;;  %6621 = vmatpush3.bf16.msra.mxu0 %v6691_v52 }
 0x68e   : > { %2162 = vrot.lane.b32.xlu1 %v7657_v24, %s6718_s25  ;;  %v7693_v31 = vcombine.low %v2133_v42, %v2147_v45  ;;  %v7706_v40 = vcombine.low %v2119_v18, %v2133_v42  ;;  %6622 = vmatprep.subr.bf16.mxu0 %v6694_v29 }
 0x68f   : > { %2160 = vrot.lane.b32.xlu0 %v7659_v11, %s6718_s25 }
 0x691   : > { %6623 = vmatpush3.bf16.msra.mxu0 %v6694_v29 }
 0x692   : > { %2219 = vrot.lane.b32.xlu1 %v7674_v8, %s6713_s13 }
 0x693   : > { %2217 = vrot.lane.b32.xlu0 %v7676_v1, %s6713_s13 }
 0x696   : > { %2166 = vrot.lane.b32.xlu1 %v7693_v31, %s6718_s25 }
 0x697   : > { %2164 = vrot.lane.b32.xlu0 %v7695_v9, %s6718_s25 }
 0x69a   : > { %2223 = vrot.lane.b32.xlu1 %v7704_v51, %s6713_s13 }
 0x69b   : > { %2221 = vrot.lane.b32.xlu0 %v7706_v40, %s6713_s13 }
 0x69e   : > { %2432 = vrot.lane.b32.xlu1 %v7674_v8, %s6714_s14 }
 0x69f   : > { %2430 = vrot.lane.b32.xlu0 %v7676_v1, %s6714_s14 }
 0x6a2   : > { %2436 = vrot.lane.b32.xlu1 %v7704_v51, %s6714_s14 }
 0x6a3   : > { %2434 = vrot.lane.b32.xlu0 %v7706_v40, %s6714_s14 }
 0x6a6   : > { %2603 = vrot.lane.b32.xlu1 %v7674_v8, %s6718_s25 }
 0x6a7   : > { %2601 = vrot.lane.b32.xlu0 %v7676_v1, %s6718_s25 }
 0x6aa   : > { %2654 = vrot.lane.b32.xlu1 %v7695_v9, %s6713_s13 }
 0x6ab   : > { %2652 = vrot.lane.b32.xlu0 %v7657_v24, %s6713_s13 }
 0x6ae   : > { %2607 = vrot.lane.b32.xlu1 %v7704_v51, %s6718_s25 }
 0x6af   : > { %2605 = vrot.lane.b32.xlu0 %v7706_v40, %s6718_s25 }
 0x6b2   : > { %2658 = vrot.lane.b32.xlu1 %v6439_v22, %s6713_s13 }
 0x6b3   : > { %2656 = vrot.lane.b32.xlu0 %v7693_v31, %s6713_s13 }
 0x6b6   : > { %2815 = vrot.lane.b32.xlu1 %v7695_v9, %s6714_s14 }
 0x6b7   : > { %2813 = vrot.lane.b32.xlu0 %v7657_v24, %s6714_s14 }
 0x6ba   : > { %2803 = vrot.lane.b32.xlu1 %v7618_v10, %s6718_s25 }
 0x6bb   : > { %2801 = vrot.lane.b32.xlu0 %v7622_v36, %s6718_s25 }
 0x6be   : > { %2819 = vrot.lane.b32.xlu1 %v6439_v22, %s6714_s14  ;;  %v6692_v22 = vld [vmem:[%s9749_s9 + $0x50] sm:$0xff]  }
 0x6bf   : > { %2817 = vrot.lane.b32.xlu0 %v7693_v31, %s6714_s14 }
 0x6c2   : > { %2842 = vrot.lane.b32.xlu1 %v6458_v50, %s6713_s13 }
 0x6c3   : > { %2840 = vrot.lane.b32.xlu0 %v7597_v21, %s6713_s13 }
 0x6d8   : > { %v2185_v61 = vpop.permute.xlu1 %2184 }
 0x6d9   : > { %v2183_v10 = vpop.permute.xlu0 %2182 }
 0x6dc   : > { %v2189_v60 = vpop.permute.xlu1 %2188 }
 0x6dd   : > { %v2187_v16 = vpop.permute.xlu0 %2186 }
 0x6e0   : > { %v7769_v36 = vpop.permute.xlu1 %2622 }
 0x6e1   : > { %v7771_v19 = vpop.permute.xlu0 %2620 }
 0x6e4   : > { %v7773_v30 = vpop.permute.xlu1 %2626 }
 0x6e5   : > { %v7775_v63 = vpop.permute.xlu0 %2624 }
 0x6e8   : > { %v2417_v6 = vpop.permute.xlu1 %2416 }
 0x6e9   : > { %v2415_v0 = vpop.permute.xlu0 %2414 }
 0x6ec   : > { %v2459_v56 = vpop.permute.xlu1 %2458 }
 0x6ed   : > { %v2457_v15 = vpop.permute.xlu0 %2456 }
 0x6f0   : > { %v2421_v12 = vpop.permute.xlu1 %2420 }
 0x6f1   : > { %v2419_v13 = vpop.permute.xlu0 %2418 }
 0x6f4   : > { %v2463_v39 = vpop.permute.xlu1 %2462 }
 0x6f5   : > { %v2461_v21 = vpop.permute.xlu0 %2460 }
 0x6f8   : > { %v7777_v35 = vpop.permute.xlu1 %2799 }
 0x6f9   : > { %v7779_v25 = vpop.permute.xlu0 %2797 }
 0x6fc   : > { %v7781_v55 = vpop.permute.xlu1 %2838 }
 0x6fd   : > { %v7783_v41 = vpop.permute.xlu0 %2836 }
 0x700   : > { %v2163_v57 = vpop.permute.xlu1 %2162 }
 0x701   : > { %2173 = vst.msk [vmem:[#allocation5 + $0x8] sm:$0xff] %vm1171_vm15, %v2163_v57  ;;  %v2161_v59 = vpop.permute.xlu0 %2160 }
 0x702   : > { %2195 = vst.msk [vmem:[#allocation5 + $0x8] sm:$0xff] %vm1243_vm2, %v2185_v61 }
 0x703   : > { %2172 = vst.msk [vmem:[#allocation5] sm:$0xff] %vm1171_vm15, %v2161_v59 }
 0x704   : > { %2194 = vst.msk [vmem:[#allocation5] sm:$0xff] %vm1243_vm2, %v2183_v10  ;;  %v2220_v3 = vpop.permute.xlu1 %2219 }
 0x705   : > { %2230 = vst.msk [vmem:[#allocation5 + $0x8] sm:$0xff] %vm1266_vm3, %v2220_v3  ;;  %v2218_v53 = vpop.permute.xlu0 %2217 }
 0x706   : > { %2229 = vst.msk [vmem:[#allocation5] sm:$0xff] %vm1266_vm3, %v2218_v53 }
 0x708   : > { %v2167_v42 = vpop.permute.xlu1 %2166 }
 0x709   : > { %2175 = vst.msk [vmem:[#allocation5 + $0x18] sm:$0xff] %vm1171_vm15, %v2167_v42  ;;  %v2165_v45 = vpop.permute.xlu0 %2164 }
 0x70a   : > { %2197 = vst.msk [vmem:[#allocation5 + $0x18] sm:$0xff] %vm1243_vm2, %v2189_v60 }
 0x70b   : > { %2174 = vst.msk [vmem:[#allocation5 + $0x10] sm:$0xff] %vm1171_vm15, %v2165_v45 }
 0x70c   : > { %2196 = vst.msk [vmem:[#allocation5 + $0x10] sm:$0xff] %vm1243_vm2, %v2187_v16  ;;  %v2234_v4 = vld [vmem:[#allocation5 + $0x8] sm:$0xff]  ;;  %v2224_v18 = vpop.permute.xlu1 %2223 }
 0x70d   : > { %2359 = vst.msk [vmem:[#allocation5 + $0x8] sm:$0xff] %vm563_vm1, %v7657_v24  ;;  %v2222_v5 = vpop.permute.xlu0 %2221  ;;  %v2233_v44 = vld [vmem:[#allocation5] sm:$0xff] }
 0x70e   : > { %2232 = vst.msk [vmem:[#allocation5 + $0x18] sm:$0xff] %vm1266_vm3, %v2224_v18  ;;  %2231 = vst.msk [vmem:[#allocation5 + $0x10] sm:$0xff] %vm1266_vm3, %v2222_v5  ;;  %6576 = vmatprep.mubr.msk.bf16.mxu1 %vm2276_vm0, %v2233_v44 }
 0x70f   : > { %2427 = vst.msk [vmem:[#allocation5 + $0x8] sm:$0xff] %vm1171_vm15, %v2417_v6  ;;  %6577 = vmatmul.mubr.msk.bf16.vlgmr.msra.gmra.mrb[8].mxu1 %vm2276_vm0, %v2234_v4 }
 0x710   : > { %2358 = vst.msk [vmem:[#allocation5] sm:$0xff] %vm563_vm1, %v7659_v11  ;;  %6585 = vmatpush3.bf16.msra.mxu1 %v7689_v49  ;;  %v2433_v24 = vpop.permute.xlu1 %2432 }
 0x711   : > { %2426 = vst.msk [vmem:[#allocation5] sm:$0xff] %vm1171_vm15, %v2415_v0  ;;  %v2431_v26 = vpop.permute.xlu0 %2430  ;;  %6586 = vmatprep.subr.bf16.mxu1 %v6684_v58  ;;  %v6719_v0 = vmov 1966171168  }
 0x712   : > { %2443 = vst.msk [vmem:[#allocation5 + $0x8] sm:$0xff] %vm1243_vm2, %v2433_v24  ;;  %2442 = vst.msk [vmem:[#allocation5] sm:$0xff] %vm1243_vm2, %v2431_v26 }
 0x713   : > { %2469 = vst.msk [vmem:[#allocation5 + $0x8] sm:$0xff] %vm1266_vm3, %v2459_v56  ;;  %2468 = vst.msk [vmem:[#allocation5] sm:$0xff] %vm1266_vm3, %v2457_v15  ;;  %v2983_v56 = vunpack.c.l.s4 %v6719_v0 }
 0x714   : > { %6587 = vmatpush3.bf16.msra.mxu1 %v6684_v58  ;;  %v2437_v48 = vpop.permute.xlu1 %2436 }
 0x715   : > { %v2236_v11 = vld [vmem:[#allocation5 + $0x18] sm:$0xff]  ;;  %v2235_v49 = vld [vmem:[#allocation5 + $0x10] sm:$0xff]  ;;  %v2435_v32 = vpop.permute.xlu0 %2434  ;;  %6588 = vmatprep.subr.bf16.mxu1 %v6686_v2  ;;  %v2984_v15 = vunpack.c.0.s8 %v2983_v56 }
 0x716   : > { %2361 = vst.msk [vmem:[#allocation5 + $0x18] sm:$0xff] %vm563_vm1, %v7693_v31  ;;  %2360 = vst.msk [vmem:[#allocation5 + $0x10] sm:$0xff] %vm563_vm1, %v7695_v9  ;;  %6580 = vmatprep.mubr.msk.bf16.mxu1 %vm2276_vm0, %v2235_v49  ;;  %v6689_v9 = vld [vmem:[%s9749_s9 + $0x40] sm:$0xff]  }
 0x717   : > { %2429 = vst.msk [vmem:[#allocation5 + $0x18] sm:$0xff] %vm1171_vm15, %v2421_v12  ;;  %2428 = vst.msk [vmem:[#allocation5 + $0x10] sm:$0xff] %vm1171_vm15, %v2419_v13  ;;  %6581 = vmatmul.mubr.msk.bf16.gmra.mrb[12].mxu1 %vm2276_vm0, %v2236_v11  ;;  %v6720_v12 = vmov 1983009808  }
 0x718   : > { %2445 = vst.msk [vmem:[#allocation5 + $0x18] sm:$0xff] %vm1243_vm2, %v2437_v48  ;;  %2444 = vst.msk [vmem:[#allocation5 + $0x10] sm:$0xff] %vm1243_vm2, %v2435_v32  ;;  %6589 = vmatpush3.bf16.msra.mxu1 %v6686_v2  ;;  %v2604_v31 = vpop.permute.xlu1 %2603  ;;  %v5601_v13 = vunpack.c.l.s4 %v6720_v12 }
 0x719   : > { %2471 = vst.msk [vmem:[#allocation5 + $0x18] sm:$0xff] %vm1266_vm3, %v2463_v39  ;;  %2470 = vst.msk [vmem:[#allocation5 + $0x10] sm:$0xff] %vm1266_vm3, %v2461_v21  ;;  %v2602_v23 = vpop.permute.xlu0 %2601  ;;  %6590 = vmatprep.subr.bf16.mxu1 %v6687_v17  ;;  %v7906_v39 = vld [vmem:[%s9750_s10] ss:$0 sm:$0xff]  ;;  %v7909_v21 = vsub.s32 %v2984_v15, %v6819_v37 }
 0x71a   : > { %v2473_v33 = vld [vmem:[#allocation5 + $0x8] sm:$0xff]  ;;  %v2472_v20 = vld [vmem:[#allocation5] sm:$0xff] }
 0x71b   : > { %2598 = vst.msk [vmem:[#allocation5 + $0x8] sm:$0xff] %vm563_vm1, %v7475_v43  ;;  %2597 = vst.msk [vmem:[#allocation5] sm:$0xff] %vm563_vm1, %v7483_v28  ;;  %6592 = vmatprep.mubr.msk.bf16.mxu1 %vm2276_vm0, %v2472_v20  ;;  %v6690_v28 = vld [vmem:[%s9749_s9 + $0x48] sm:$0xff]  }
 0x71c   : > { %2614 = vst.msk [vmem:[#allocation5 + $0x8] sm:$0xff] %vm1171_vm15, %v2604_v31  ;;  %2613 = vst.msk [vmem:[#allocation5] sm:$0xff] %vm1171_vm15, %v2602_v23  ;;  %6591 = vmatpush3.bf16.msra.mxu1 %v6687_v17  ;;  %v2655_v52 = vpop.permute.xlu1 %2654 }
 0x71d   : > { %2633 = vst.msk [vmem:[#allocation5 + $0x8] sm:$0xff] %vm1243_vm2, %v7769_v36  ;;  %2632 = vst.msk [vmem:[#allocation5] sm:$0xff] %vm1243_vm2, %v7771_v19  ;;  %v2653_v43 = vpop.permute.xlu0 %2652  ;;  %6600 = vmatprep.subr.bf16.mxu1 %v6689_v9 }
 0x71e   : > { %2665 = vst.msk [vmem:[#allocation5 + $0x8] sm:$0xff] %vm1266_vm3, %v2655_v52  ;;  %2664 = vst.msk [vmem:[#allocation5] sm:$0xff] %vm1266_vm3, %v2653_v43 }
 0x71f   : > { %6593 = vmatmul.mubr.msk.bf16.vlgmr.msra.gmra.mrb[16].mxu1 %vm2276_vm0, %v2473_v33 }
 0x720   : > { %v2475_v34 = vld [vmem:[#allocation5 + $0x18] sm:$0xff]  ;;  %6601 = vmatpush3.bf16.msra.mxu1 %v6689_v9  ;;  %v2608_v62 = vpop.permute.xlu1 %2607  ;;  %v2474_v27 = vld [vmem:[#allocation5 + $0x10] sm:$0xff] }
 0x721   : > { %2600 = vst.msk [vmem:[#allocation5 + $0x18] sm:$0xff] %vm563_vm1, %v7508_v47  ;;  %2599 = vst.msk [vmem:[#allocation5 + $0x10] sm:$0xff] %vm563_vm1, %v7513_v54  ;;  %v2606_v29 = vpop.permute.xlu0 %2605  ;;  %6596 = vmatprep.mubr.msk.bf16.mxu1 %vm2276_vm0, %v2474_v27  ;;  %6602 = vmatprep.subr.bf16.mxu1 %v6690_v28 }
 0x722   : > { %2616 = vst.msk [vmem:[#allocation5 + $0x18] sm:$0xff] %vm1171_vm15, %v2608_v62  ;;  %2615 = vst.msk [vmem:[#allocation5 + $0x10] sm:$0xff] %vm1171_vm15, %v2606_v29 }
 0x723   : > { %2635 = vst.msk [vmem:[#allocation5 + $0x18] sm:$0xff] %vm1243_vm2, %v7773_v30  ;;  %2634 = vst.msk [vmem:[#allocation5 + $0x10] sm:$0xff] %vm1243_vm2, %v7775_v63 }
 0x724   : > { %6603 = vmatpush3.bf16.msra.mxu1 %v6690_v28  ;;  %v2659_v14 = vpop.permute.xlu1 %2658 }
 0x725   : > { %v2669_v47 = vld [vmem:[#allocation5 + $0x8] sm:$0xff]  ;;  %2667 = vst.msk [vmem:[#allocation5 + $0x18] sm:$0xff] %vm1266_vm3, %v2659_v14  ;;  %v2657_v54 = vpop.permute.xlu0 %2656  ;;  %6604 = vmatprep.subr.bf16.mxu1 %v6692_v22  ;;  %v2668_v7 = vld [vmem:[#allocation5] sm:$0xff] }
 0x726   : > { %2794 = vst.msk [vmem:[#allocation5 + $0x8] sm:$0xff] %vm563_vm1, %v7674_v8  ;;  %2793 = vst.msk [vmem:[#allocation5] sm:$0xff] %vm563_vm1, %v7676_v1 }
 0x727   : > { %2810 = vst.msk [vmem:[#allocation5 + $0x8] sm:$0xff] %vm1171_vm15, %v7777_v35  ;;  %6597 = vmatmul.mubr.msk.bf16.gmra.mrb[20].mxu1 %vm2276_vm0, %v2475_v34  ;;  %2809 = vst.msk [vmem:[#allocation5] sm:$0xff] %vm1171_vm15, %v7779_v25  ;;  %v5602_v25 = vunpack.c.0.s8 %v5601_v13 }
 0x728   : > { %2666 = vst.msk [vmem:[#allocation5 + $0x10] sm:$0xff] %vm1266_vm3, %v2657_v54  ;;  %6605 = vmatpush3.bf16.msra.mxu1 %v6692_v22  ;;  %6608 = vmatprep.mubr.msk.bf16.mxu1 %vm2276_vm0, %v2668_v7  ;;  %v2816_v8 = vpop.permute.xlu1 %2815 }
 0x729   : > { %2826 = vst.msk [vmem:[#allocation5 + $0x8] sm:$0xff] %vm1243_vm2, %v2816_v8  ;;  %v2814_v50 = vpop.permute.xlu0 %2813  ;;  %6606 = vmatprep.subr.bf16.mxu1 %v6693_v46  ;;  %v7918_v44 = vsub.s32 %v5602_v25, %v6819_v37 }
 0x72a   : > { %2849 = vst.msk [vmem:[#allocation5 + $0x8] sm:$0xff] %vm1266_vm3, %v7781_v55 }
 0x72b   : > { %2825 = vst.msk [vmem:[#allocation5] sm:$0xff] %vm1243_vm2, %v2814_v50 }
 0x72c   : > { %2848 = vst.msk [vmem:[#allocation5] sm:$0xff] %vm1266_vm3, %v7783_v41  ;;  %6607 = vmatpush3.bf16.msra.mxu1 %v6693_v46  ;;  %v2671_v1 = vld [vmem:[#allocation5 + $0x18] sm:$0xff]  ;;  %v2804_v61 = vpop.permute.xlu1 %2803 }
 0x72d   : > { %2796 = vst.msk [vmem:[#allocation5 + $0x18] sm:$0xff] %vm563_vm1, %v7704_v51  ;;  %v2802_v60 = vpop.permute.xlu0 %2801 }
 0x72e   : > { %2812 = vst.msk [vmem:[#allocation5 + $0x18] sm:$0xff] %vm1171_vm15, %v2804_v61 }
 0x72f   : > { %v2670_v10 = vld [vmem:[#allocation5 + $0x10] sm:$0xff]  ;;  %6609 = vmatmul.mubr.msk.bf16.vlgmr.msra.gmra.mrb[24].mxu1 %vm2276_vm0, %v2669_v47 }
 0x730   : > { %2795 = vst.msk [vmem:[#allocation5 + $0x10] sm:$0xff] %vm563_vm1, %v7706_v40  ;;  %6612 = vmatprep.mubr.msk.bf16.mxu1 %vm2276_vm0, %v2670_v10  ;;  %v2820_v16 = vpop.permute.xlu1 %2819  ;;  %vm4157_vm1 = vcmask 1040384  }
 0x731   : > { %2811 = vst.msk [vmem:[#allocation5 + $0x10] sm:$0xff] %vm1171_vm15, %v2802_v60  ;;  %v2818_v36 = vpop.permute.xlu0 %2817  ;;  %v2853_v19 = vld [vmem:[#allocation5 + $0x8] sm:$0xff] }
 0x732   : > { %2828 = vst.msk [vmem:[#allocation5 + $0x18] sm:$0xff] %vm1243_vm2, %v2820_v16  ;;  %2827 = vst.msk [vmem:[#allocation5 + $0x10] sm:$0xff] %vm1243_vm2, %v2818_v36 }
 0x733   : > { %v2852_v51 = vld [vmem:[#allocation5] sm:$0xff] }
 0x734   : > { %6624 = vmatprep.mubr.msk.bf16.mxu0 %vm2276_vm0, %v2852_v51  ;;  %v2843_v30 = vpop.permute.xlu1 %2842 }
 0x735   : > { %6625 = vmatmul.mubr.msk.bf16.vlgmr.msra.gmra.mrb[16].mxu0 %vm2276_vm0, %v2853_v19  ;;  %2851 = vst.msk [vmem:[#allocation5 + $0x18] sm:$0xff] %vm1266_vm3, %v2843_v30  ;;  %v2841_v40 = vpop.permute.xlu0 %2840 }
 0x736   : > { %2850 = vst.msk [vmem:[#allocation5 + $0x10] sm:$0xff] %vm1266_vm3, %v2841_v40 }
 0x737   : > { %6613 = vmatmul.mubr.msk.bf16.gmra.mrb[28].mxu1 %vm2276_vm0, %v2671_v1 }
 0x73c   : > { %v2855_v63 = vld [vmem:[#allocation5 + $0x18] sm:$0xff] }
 0x73d   : > { %v2854_v6 = vld [vmem:[#allocation5 + $0x10] sm:$0xff] }
 0x73e   : > { %6628 = vmatprep.mubr.msk.bf16.mxu0 %vm2276_vm0, %v2854_v6 }
 0x73f   : > { %6629 = vmatmul.mubr.msk.bf16.gmra.mrb[20].mxu0 %vm2276_vm0, %v2855_v63 }
 0x7e2   : > { %v6578_v35 = vpop.f32.mrb[8].mxu1 }
 0x7e3   : > { %v2332_v55 = vadd.f32 %v6578_v35, %v7906_v39  ;;  %v2323_v41 = vpop.f32.mrb[9].mxu1 }
 0x7e4   : > { %v2324_v57 = vadd.f32 %v7906_v39, %v2323_v41  ;;  %v6579_v59 = vpop.f32.mrb[10].mxu1 }
 0x7e5   : > { %v3079_v3 = vcombine.high %v2332_v55, %v2332_v55  ;;  %v3086_v53 = vrot.slane %v2332_v55, %v7909_v21  ;;  %v2335_v42 = vadd.f32 %v6579_v59, %v7906_v39  ;;  %v2326_v45 = vpop.f32.mrb[11].mxu1 }
 0x7e6   : > { %v2981_v4 = vcombine.high %v2324_v57, %v2324_v57  ;;  %v2988_v18 = vrot.slane %v2324_v57, %v7909_v21  ;;  %v2327_v5 = vadd.f32 %v7906_v39, %v2326_v45 }
 0x7e7   : > { %v3093_v58 = vrot.slane %v3079_v3, %v7909_v21  ;;  %v3094_v24 = vcombine.high %v3086_v53, %v3086_v53  ;;  %v7922_v26 = vrot.slane %v3086_v53, %v7909_v21  ;;  %v3128_v2 = vcombine.high %v2335_v42, %v2335_v42 }
 0x7e8   : > { %v2995_v11 = vrot.slane %v2981_v4, %v7909_v21  ;;  %v2996_v48 = vcombine.high %v2988_v18, %v2988_v18  ;;  %v7926_v49 = vrot.slane %v2988_v18, %v7909_v21  ;;  %v3135_v32 = vrot.slane %v2335_v42, %v7909_v21 }
 0x7e9   : > { %9875 = vst [vmem:[#allocation6_spill] sm:$0xff] %v7922_v26  ;;  %v3095_v17 = vcombine.high %v3093_v58, %v3093_v58  ;;  %v7930_v31 = vrot.slane %v3093_v58, %v7909_v21  ;;  %v7933_v37 = vrot.slane %v3094_v24, %v7909_v21  ;;  %v3142_v27 = vrot.slane %v3128_v2, %v7909_v21 }
 0x7ea   : > { %v2997_v23 = vcombine.high %v2995_v11, %v2995_v11  ;;  %v7938_v9 = vrot.slane %v2995_v11, %v7909_v21  ;;  %v7941_v20 = vrot.slane %v2996_v48, %v7909_v21  ;;  %v6582_v43 = vpop.f32.mrb[12].mxu1  ;;  %v3143_v54 = vcombine.high %v3135_v32, %v3135_v32 }
 0x7eb   : > { %9876 = vst [vmem:[#allocation7_spill] sm:$0xff] %v7930_v31  ;;  %9877 = vst [vmem:[#allocation8_spill] sm:$0xff] %v7933_v37  ;;  %v7946_v28 = vrot.slane %v3095_v17, %v7909_v21  ;;  %v2339_v29 = vpop.f32.mrb[13].mxu1  ;;  %v3144_v8 = vcombine.high %v3142_v27, %v3142_v27  ;;  %v7963_v50 = vrot.slane %v3135_v32, %v7909_v21 }
 0x7ec   : > { %v7954_v22 = vrot.slane %v2997_v23, %v7909_v21  ;;  %v6583_v7 = vpop.f32.mrb[14].mxu1  ;;  %v7966_v1 = vrot.slane %v3142_v27, %v7909_v21  ;;  %v7971_v60 = vrot.slane %v3143_v54, %v7909_v21  ;;  %v3030_v16 = vcombine.high %v2327_v5, %v2327_v5 }
 0x7ed   : > { %9878 = vst [vmem:[#allocation9_spill] sm:$0xff] %v7946_v28  ;;  %9879 = vst [vmem:[#allocation10_spill] sm:$0xff] %v7963_v50  ;;  %v2342_v61 = vpop.f32.mrb[15].mxu1  ;;  %v3037_v36 = vrot.slane %v2327_v5, %v7909_v21  ;;  %v7975_v19 = vrot.slane %v3144_v8, %v7909_v21  ;;  %v2348_v40 = vadd.f32 %v6582_v43, %v7906_v39 }
 0x7ee   : > { %9880 = vst [vmem:[#allocation11_spill] sm:$0xff] %v7966_v1  ;;  %9881 = vst [vmem:[#allocation12_spill] sm:$0xff] %v7971_v60  ;;  %v3044_v6 = vrot.slane %v3030_v16, %v7909_v21  ;;  %v2340_v35 = vadd.f32 %v7906_v39, %v2339_v29 }
 0x7ef   : > { %9882 = vst [vmem:[#allocation13_spill] sm:$0xff] %v7975_v19  ;;  %v3045_v0 = vcombine.high %v3037_v36, %v3037_v36  ;;  %v7986_v56 = vrot.slane %v3037_v36, %v7909_v21  ;;  %v3275_v12 = vcombine.high %v2348_v40, %v2348_v40  ;;  %v3282_v13 = vrot.slane %v2348_v40, %v7909_v21 }
 0x7f0   : > { %v3046_v25 = vcombine.high %v3044_v6, %v3044_v6  ;;  %v7993_v55 = vrot.slane %v3044_v6, %v7909_v21  ;;  %v3177_v45 = vcombine.high %v2340_v35, %v2340_v35  ;;  %v3184_v24 = vrot.slane %v2340_v35, %v7909_v21 }
 0x7f1   : > { %9883 = vst [vmem:[#allocation14_spill] sm:$0xff] %v7986_v56  ;;  %v7996_v41 = vrot.slane %v3045_v0, %v7909_v21  ;;  %v3289_v3 = vrot.slane %v3275_v12, %v7909_v21  ;;  %v3290_v53 = vcombine.high %v3282_v13, %v3282_v13  ;;  %v8002_v42 = vrot.slane %v3282_v13, %v7909_v21 }
 0x7f2   : > { %9884 = vst [vmem:[#allocation15_spill] sm:$0xff] %v7993_v55  ;;  %v6594_v59 = vpop.f32.mrb[16].mxu1  ;;  %v8007_v18 = vrot.slane %v3046_v25, %v7909_v21  ;;  %v3191_v27 = vrot.slane %v3177_v45, %v7909_v21  ;;  %v3192_v29 = vcombine.high %v3184_v24, %v3184_v24  ;;  %v8030_v54 = vrot.slane %v3184_v24, %v7909_v21 }
 0x7f3   : > { %9885 = vst [vmem:[#allocation16_spill] sm:$0xff] %v8002_v42  ;;  %v8004_v4 = vpop.f32.mrb[17].mxu1  ;;  %v3291_v11 = vcombine.high %v3289_v3, %v3289_v3  ;;  %v8017_v48 = vrot.slane %v3289_v3, %v7909_v21  ;;  %v8020_v32 = vrot.slane %v3290_v53, %v7909_v21  ;;  %v2351_v40 = vadd.f32 %v6583_v7, %v7906_v39 }
 0x7f4   : > { %9886 = vst [vmem:[#allocation17_spill] sm:$0xff] %v8007_v18  ;;  %v8014_v2 = vpop.f32.mrb[18].mxu1  ;;  %v3193_v6 = vcombine.high %v3191_v27, %v3191_v27  ;;  %v8041_v0 = vrot.slane %v3191_v27, %v7909_v21  ;;  %v8044_v12 = vrot.slane %v3192_v29, %v7909_v21  ;;  %v2343_v53 = vadd.f32 %v7906_v39, %v2342_v61 }
 0x7f5   : > { %9887 = vst [vmem:[#allocation18_spill] sm:$0xff] %v8017_v48  ;;  %9888 = vst [vmem:[#allocation19_spill] sm:$0xff] %v8020_v32  ;;  %v8024_v23 = vpop.f32.mrb[19].mxu1  ;;  %v8033_v8 = vrot.slane %v3291_v11, %v7909_v21  ;;  %v3324_v25 = vcombine.high %v2351_v40, %v2351_v40  ;;  %v3331_v3 = vrot.slane %v2351_v40, %v7909_v21 }
 0x7f6   : > { %v8053_v7 = vrot.slane %v3193_v6, %v7909_v21  ;;  %v2571_v11 = vadd.f32 %v6594_v59, %v7906_v39  ;;  %v3226_v40 = vcombine.high %v2343_v53, %v2343_v53  ;;  %v3233_v63 = vrot.slane %v2343_v53, %v7909_v21 }
 0x7f7   : > { %9889 = vst [vmem:[#allocation20_spill] sm:$0xff] %v8033_v8  ;;  %v3338_v29 = vrot.slane %v3324_v25, %v7909_v21  ;;  %v3339_v15 = vcombine.high %v3331_v3, %v3331_v3  ;;  %v8062_v30 = vrot.slane %v3331_v3, %v7909_v21  ;;  %v2563_v10 = vadd.f32 %v7906_v39, %v8004_v4 }
 0x7f8   : > { %v3543_v51 = vcombine.high %v2571_v11, %v2571_v11  ;;  %v3550_v35 = vrot.slane %v2571_v11, %v7909_v21  ;;  %v3240_v46 = vrot.slane %v3226_v40, %v7909_v21  ;;  %v3241_v53 = vcombine.high %v3233_v63, %v3233_v63 }
 0x7f9   : > { %9890 = vst [vmem:[#allocation21_spill] sm:$0xff] %v8062_v30  ;;  %v3340_v59 = vcombine.high %v3338_v29, %v3338_v29  ;;  %v8071_v25 = vrot.slane %v3338_v29, %v7909_v21  ;;  %v8074_v3 = vrot.slane %v3339_v15, %v7909_v21  ;;  %v8082_v34 = vrot.slane %v3233_v63, %v7909_v21 }
 0x7fa   : > { %v6598_v27 = vpop.f32.mrb[20].mxu1  ;;  %v3557_v11 = vrot.slane %v3543_v51, %v7909_v21  ;;  %v3558_v36 = vcombine.high %v3550_v35, %v3550_v35  ;;  %v3242_v33 = vcombine.high %v3240_v46, %v3240_v46  ;;  %v8093_v43 = vrot.slane %v3240_v46, %v7909_v21 }
 0x7fb   : > { %v2578_v61 = vpop.f32.mrb[21].mxu1  ;;  %9891 = vst [vmem:[#allocation22_spill] sm:$0xff] %v8071_v25  ;;  %9892 = vst [vmem:[#allocation23_spill] sm:$0xff] %v8074_v3  ;;  %v8086_v62 = vrot.slane %v3340_v59, %v7909_v21  ;;  %v8096_v40 = vrot.slane %v3241_v53, %v7909_v21  ;;  %v3566_v15 = vrot.slane %v3550_v35, %v7909_v21 }
 0x7fc   : > { %v8068_v16 = vpop.f32.mrb[22].mxu1  ;;  %9893 = vst [vmem:[#allocation24_spill] sm:$0xff] %v8082_v34  ;;  %9895 = vst [vmem:[#allocation26_spill] sm:$0xff] %v8093_v43  ;;  %v3559_v59 = vcombine.high %v3557_v11, %v3557_v11  ;;  %v8104_v5 = vrot.slane %v3557_v11, %v7909_v21  ;;  %v8107_v29 = vrot.slane %v3242_v33, %v7909_v21 }
 0x7fd   : > { %v8078_v17 = vpop.f32.mrb[23].mxu1  ;;  %9894 = vst [vmem:[#allocation25_spill] sm:$0xff] %v8086_v62  ;;  %9896 = vst [vmem:[#allocation27_spill] sm:$0xff] %v8096_v40  ;;  %v8114_v51 = vrot.slane %v3558_v36, %v7909_v21  ;;  %v3588_v35 = vcombine.high %v3566_v15, %v3566_v15  ;;  %v3904_v33 = vrot.slane %v3566_v15, %v6822_v38 }
 0x7fe   : > { %9897 = vst [vmem:[#allocation28_spill] sm:$0xff] %v8104_v5  ;;  %9898 = vst [vmem:[#allocation29_spill] sm:$0xff] %v8107_v29  ;;  %v8119_v63 = vrot.slane %v3559_v59, %v7909_v21  ;;  %v3589_v11 = vcombine.high %v8104_v5, %v8104_v5  ;;  %v8165_v47 = vadd.f32 %v6598_v27, %v7906_v39 }
 0x7ff   : > { %9899 = vst [vmem:[#allocation30_spill] sm:$0xff] %v8114_v51  ;;  %v3590_v36 = vcombine.high %v8114_v51, %v8114_v51  ;;  %v8139_v15 = vrot.slane %v3588_v35, %v6822_v38  ;;  %v8153_v59 = vsel %vm4157_vm1, %v7922_v26, %v3904_v33  ;;  %v2574_v35 = vadd.f32 %v8014_v2, %v7906_v39 }
 0x800   : > { %9900 = vst [vmem:[#allocation31_spill] sm:$0xff] %v8119_v63  ;;  %v3591_v45 = vcombine.high %v8119_v63, %v8119_v63  ;;  %v8144_v24 = vrot.slane %v3589_v11, %v6822_v38  ;;  %9904 = vst [vmem:[#allocation35_spill] sm:$0xff] %v8153_v59  ;;  %v2566_v11 = vadd.f32 %v7906_v39, %v8024_v23 }
 0x801   : > { %9901 = vst [vmem:[#allocation32_spill] sm:$0xff] %v8139_v15  ;;  %v8149_v53 = vrot.slane %v3590_v36, %v6822_v38  ;;  %v8168_v36 = vadd.f32 %v7906_v39, %v2578_v61  ;;  %v3445_v14 = vcombine.high %v2563_v10, %v2563_v10  ;;  %v3452_v4 = vrot.slane %v2563_v10, %v7909_v21 }
 0x802   : > { %v8116_v58 = vpop.f32.mrb[24].mxu1  ;;  %9902 = vst [vmem:[#allocation33_spill] sm:$0xff] %v8144_v24  ;;  %v8160_v46 = vrot.slane %v3591_v45, %v6822_v38  ;;  %v3592_v52 = vcombine.high %v2574_v35, %v2574_v35  ;;  %v3599_v2 = vrot.slane %v2574_v35, %v7909_v21  ;;  %v3494_v45 = vcombine.high %v2566_v11, %v2566_v11 }
 0x803   : > { %v8124_v57 = vpop.f32.mrb[25].mxu1  ;;  %9903 = vst [vmem:[#allocation34_spill] sm:$0xff] %v8149_v53  ;;  %v3501_v25 = vrot.slane %v2566_v11, %v7909_v21  ;;  %v3739_v23 = vcombine.high %v8165_v47, %v8165_v47  ;;  %v8181_v27 = vrot.slane %v8165_v47, %v7909_v21  ;;  %v3459_v3 = vrot.slane %v3445_v14, %v7909_v21 }
 0x804   : > { %v8134_v6 = vpop.f32.mrb[26].mxu1  ;;  %9905 = vst [vmem:[#allocation36_spill] sm:$0xff] %v8160_v46  ;;  %v3460_v10 = vcombine.high %v3452_v4, %v3452_v4  ;;  %v8187_v30 = vrot.slane %v3452_v4, %v7909_v21  ;;  %v3606_v35 = vrot.slane %v3592_v52, %v7909_v21  ;;  %v3607_v1 = vcombine.high %v3599_v2, %v3599_v2 }
 0x805   : > { %v8146_v13 = vpop.f32.mrb[27].mxu1  ;;  %v3615_v60 = vrot.slane %v3599_v2, %v7909_v21  ;;  %v3508_v47 = vrot.slane %v3494_v45, %v7909_v21  ;;  %v3509_v8 = vcombine.high %v3501_v25, %v3501_v25  ;;  %v3461_v32 = vcombine.high %v3459_v3, %v3459_v3 }
 0x806   : > { %v8199_v14 = vrot.slane %v3459_v3, %v7909_v21  ;;  %v8202_v4 = vrot.slane %v3460_v10, %v7909_v21  ;;  %v3490_v52 = vcombine.high %v8187_v30, %v8187_v30  ;;  %v3608_v46 = vcombine.high %v3606_v35, %v3606_v35 }
 0x807   : > { %v8211_v45 = vrot.slane %v3606_v35, %v7909_v21  ;;  %v8214_v24 = vrot.slane %v3607_v1, %v7909_v21  ;;  %v8219_v10 = vrot.slane %v3461_v32, %v7909_v21  ;;  %v3637_v32 = vcombine.high %v3615_v60, %v3615_v60 }
 0x808   : > { %v8170_v33 = vpop.f32.mrb[16].mxu0  ;;  %v3491_v28 = vcombine.high %v8199_v14, %v8199_v14  ;;  %v3492_v63 = vcombine.high %v8202_v4, %v8202_v4  ;;  %v8228_v35 = vrot.slane %v3490_v52, %v6822_v38  ;;  %v8233_v31 = vrot.slane %v3608_v46, %v7909_v21 }
 0x809   : > { %v8174_v62 = vpop.f32.mrb[17].mxu0  ;;  %9906 = vst [vmem:[#allocation37_spill] sm:$0xff] %v8211_v45  ;;  %9907 = vst [vmem:[#allocation38_spill] sm:$0xff] %v8214_v24  ;;  %v3493_v5 = vcombine.high %v8219_v10, %v8219_v10  ;;  %v3638_v52 = vcombine.high %v8211_v45, %v8211_v45  ;;  %v3639_v46 = vcombine.high %v8214_v24, %v8214_v24 }
 0x80a   : > { %v8183_v61 = vpop.f32.mrb[18].mxu0  ;;  %v8190_v19 = vpop.f32.mrb[28].mxu1  ;;  %9908 = vst [vmem:[#allocation39_spill] sm:$0xff] %v8233_v31  ;;  %v8238_v59 = vrot.slane %v3492_v63, %v6822_v38  ;;  %v8243_v2 = vrot.slane %v3491_v28, %v6822_v38  ;;  %v3640_v1 = vcombine.high %v8233_v31, %v8233_v31  ;;  %v3936_v26 = vrot.slane %v3615_v60, %v6822_v38 }
 0x80b   : > { %v8192_v11 = vpop.f32.mrb[19].mxu0  ;;  %v8196_v48 = vpop.f32.mrb[29].mxu1  ;;  %v8253_v63 = vrot.slane %v3493_v5, %v6822_v38  ;;  %v8258_v28 = vrot.slane %v3637_v32, %v6822_v38  ;;  %v8265_v51 = vrot.slane %v3639_v46, %v6822_v38  ;;  %v8270_v5 = vrot.slane %v3638_v52, %v6822_v38 }
 0x80c   : > { %v8206_v42 = vpop.f32.mrb[30].mxu1  ;;  %v8273_v29 = vrot.slane %v3640_v1, %v6822_v38  ;;  %v8279_v32 = vsel %vm4157_vm1, %v7963_v50, %v3936_v26  ;;  %v3510_v15 = vcombine.high %v3508_v47, %v3508_v47  ;;  %v3517_v45 = vrot.slane %v3501_v25, %v7909_v21 }
 0x80d   : > { %v8216_v3 = vpop.f32.mrb[31].mxu1  ;;  %9909 = vst [vmem:[#allocation40_spill] sm:$0xff] %v8258_v28  ;;  %9910 = vst [vmem:[#allocation41_spill] sm:$0xff] %v8265_v51  ;;  %v8283_v46 = vrot.slane %v3508_v47, %v7909_v21  ;;  %v8288_v52 = vrot.slane %v3509_v8, %v7909_v21  ;;  %v3753_v1 = vrot.slane %v3739_v23, %v7909_v21 }
 0x80e   : > { %9911 = vst [vmem:[#allocation42_spill] sm:$0xff] %v8270_v5  ;;  %9912 = vst [vmem:[#allocation43_spill] sm:$0xff] %v8273_v29  ;;  %v3754_v60 = vcombine.high %v8181_v27, %v8181_v27  ;;  %v8295_v26 = vrot.slane %v8181_v27, %v7909_v21  ;;  %v8300_v25 = vrot.slane %v3510_v15, %v7909_v21 }
 0x80f   : > { %9913 = vst [vmem:[#allocation44_spill] sm:$0xff] %v8279_v32  ;;  %9914 = vst [vmem:[#allocation45_spill] sm:$0xff] %v8283_v46  ;;  %v3539_v47 = vcombine.high %v3517_v45, %v3517_v45  ;;  %v3540_v5 = vcombine.high %v8283_v46, %v8283_v46  ;;  %v3872_v8 = vrot.slane %v3517_v45, %v6822_v38 }
 0x810   : > { %9915 = vst [vmem:[#allocation46_spill] sm:$0xff] %v8295_v26  ;;  %9916 = vst [vmem:[#allocation47_spill] sm:$0xff] %v8300_v25  ;;  %v3541_v23 = vcombine.high %v8288_v52, %v8288_v52  ;;  %v3755_v32 = vcombine.high %v3753_v1, %v3753_v1  ;;  %v3542_v15 = vcombine.high %v8300_v25, %v8300_v25 }
 0x811   : > { %v8314_v50 = vrot.slane %v3539_v47, %v6822_v38  ;;  %v8319_v45 = vrot.slane %v3540_v5, %v6822_v38  ;;  %v8326_v31 = vsel %vm4157_vm1, %v7986_v56, %v3872_v8  ;;  %v8329_v27 = vrot.slane %v3753_v1, %v7909_v21 }
 0x812   : > { %v8262_v37 = vpop.f32.mrb[20].mxu0  ;;  %v8322_v24 = vrot.slane %v3541_v23, %v6822_v38  ;;  %9919 = vst [vmem:[#allocation50_spill] sm:$0xff] %v8326_v31  ;;  %v8332_v43 = vrot.slane %v3754_v60, %v7909_v21  ;;  %v8335_v47 = vrot.slane %v3542_v15, %v6822_v38  ;;  %v8338_v28 = vrot.slane %v3755_v32, %v7909_v21 }
 0x813   : > { %v8275_v53 = vpop.f32.mrb[21].mxu0  ;;  %9917 = vst [vmem:[#allocation48_spill] sm:$0xff] %v8319_v45  ;;  %9920 = vst [vmem:[#allocation51_spill] sm:$0xff] %v8329_v27  ;;  %v3784_v5 = vcombine.high %v8295_v26, %v8295_v26  ;;  %v3785_v8 = vcombine.high %v8329_v27, %v8329_v27  ;;  %v3641_v26 = vcombine.high %v8168_v36, %v8168_v36 }
 0x814   : > { %v8285_v51 = vpop.f32.mrb[22].mxu0  ;;  %9918 = vst [vmem:[#allocation49_spill] sm:$0xff] %v8322_v24  ;;  %9921 = vst [vmem:[#allocation52_spill] sm:$0xff] %v8332_v43  ;;  %v3786_v1 = vcombine.high %v8332_v43, %v8332_v43  ;;  %v3787_v32 = vcombine.high %v8338_v28, %v8338_v28  ;;  %v3648_v15 = vrot.slane %v8168_v36, %v7909_v21 }
 0x815   : > { %v8297_v29 = vpop.f32.mrb[23].mxu0  ;;  %9922 = vst [vmem:[#allocation53_spill] sm:$0xff] %v8335_v47  ;;  %9923 = vst [vmem:[#allocation54_spill] sm:$0xff] %v8338_v28  ;;  %v8355_v40 = vrot.slane %v3784_v5, %v6822_v38  ;;  %v8365_v60 = vrot.slane %v3785_v8, %v6822_v38  ;;  %v2590_v27 = vadd.f32 %v8068_v16, %v7906_v39 }
 0x816   : > { %v8362_v34 = vrot.slane %v3786_v1, %v6822_v38  ;;  %v8372_v5 = vrot.slane %v3787_v32, %v6822_v38  ;;  %v3655_v23 = vrot.slane %v3641_v26, %v7909_v21  ;;  %v2582_v28 = vadd.f32 %v7906_v39, %v8078_v17 }
 0x817   : > { %9924 = vst [vmem:[#allocation55_spill] sm:$0xff] %v8355_v40  ;;  %9926 = vst [vmem:[#allocation57_spill] sm:$0xff] %v8365_v60  ;;  %v8379_v1 = vadd.f32 %v8116_v58, %v7906_v39  ;;  %v3656_v8 = vcombine.high %v3648_v15, %v3648_v15  ;;  %v8382_v60 = vrot.slane %v3648_v15, %v7909_v21 }
 0x818   : > { %9925 = vst [vmem:[#allocation56_spill] sm:$0xff] %v8362_v34  ;;  %9927 = vst [vmem:[#allocation58_spill] sm:$0xff] %v8372_v5  ;;  %v3788_v36 = vcombine.high %v2590_v27, %v2590_v27  ;;  %v3795_v34 = vrot.slane %v2590_v27, %v7909_v21  ;;  %v3657_v16 = vcombine.high %v3655_v23, %v3655_v23 }
 0x819   : > { %v8386_v32 = vrot.slane %v3655_v23, %v7909_v21  ;;  %v3690_v5 = vcombine.high %v2582_v28, %v2582_v28  ;;  %v3697_v26 = vrot.slane %v2582_v28, %v7909_v21  ;;  %v8390_v17 = vrot.slane %v3656_v8, %v7909_v21 }
 0x81a   : > { %v3686_v58 = vcombine.high %v8382_v60, %v8382_v60  ;;  %v3802_v40 = vrot.slane %v3788_v36, %v7909_v21  ;;  %v8398_v27 = vrot.slane %v3657_v16, %v7909_v21  ;;  %v3803_v43 = vcombine.high %v3795_v34, %v3795_v34 }
 0x81b   : > { %v3687_v23 = vcombine.high %v8386_v32, %v8386_v32  ;;  %v3688_v8 = vcombine.high %v8390_v17, %v8390_v17  ;;  %v8419_v28 = vrot.slane %v3795_v34, %v7909_v21 }
 0x81c   : > { %v8409_v15 = vrot.slane %v3686_v58, %v6822_v38  ;;  %v3804_v36 = vcombine.high %v3802_v40, %v3802_v40  ;;  %v3689_v16 = vcombine.high %v8398_v27, %v8398_v27  ;;  %v8425_v47 = vrot.slane %v3802_v40, %v7909_v21 }
 0x81d   : > { %v8416_v18 = vrot.slane %v3687_v23, %v6822_v38  ;;  %9928 = vst [vmem:[#allocation59_spill] sm:$0xff] %v8419_v28  ;;  %v8422_v25 = vrot.slane %v3688_v8, %v6822_v38  ;;  %v8428_v58 = vrot.slane %v3803_v43, %v7909_v21  ;;  %v3833_v23 = vcombine.high %v8419_v28, %v8419_v28 }
 0x81e   : > { %9929 = vst [vmem:[#allocation60_spill] sm:$0xff] %v8425_v47  ;;  %v8431_v55 = vrot.slane %v3804_v36, %v7909_v21  ;;  %v8434_v45 = vrot.slane %v3689_v16, %v6822_v38  ;;  %v3704_v8 = vrot.slane %v3690_v5, %v7909_v21  ;;  %v3834_v40 = vcombine.high %v8425_v47, %v8425_v47 }
 0x81f   : > { %9930 = vst [vmem:[#allocation61_spill] sm:$0xff] %v8428_v58  ;;  %v3835_v43 = vcombine.high %v8428_v58, %v8428_v58  ;;  %v8450_v46 = vrot.slane %v3833_v23, %v6822_v38  ;;  %v3705_v28 = vcombine.high %v3697_v26, %v3697_v26  ;;  %v8466_v23 = vrot.slane %v3697_v26, %v7909_v21 }
 0x820   : > { %9931 = vst [vmem:[#allocation62_spill] sm:$0xff] %v8431_v55  ;;  %v3836_v36 = vcombine.high %v8431_v55, %v8431_v55  ;;  %v8460_v24 = vrot.slane %v3834_v40, %v6822_v38  ;;  %v3706_v16 = vcombine.high %v3704_v8, %v3704_v8  ;;  %v4335_v40 = vrot.slane %v8379_v1, %v7909_v21 }
 0x821   : > { %9932 = vst [vmem:[#allocation63_spill] sm:$0xff] %v8450_v46  ;;  %v8457_v31 = vrot.slane %v3835_v43, %v6822_v38  ;;  %9936 = vst [vmem:[#allocation67_spill] sm:$0xff] %v8466_v23  ;;  %v8469_v46 = vrot.slane %v3704_v8, %v7909_v21  ;;  %v8472_v34 = vrot.slane %v3705_v28, %v7909_v21 }
 0x822   : > { %9934 = vst [vmem:[#allocation65_spill] sm:$0xff] %v8460_v24  ;;  %v8463_v56 = vrot.slane %v3836_v36, %v6822_v38  ;;  %v4328_v43 = vcombine.high %v8379_v1, %v8379_v1  ;;  %v8477_v5 = vrot.slane %v3706_v16, %v7909_v21  ;;  %v2759_v36 = vadd.f32 %v7906_v39, %v8124_v57 }
 0x823   : > { %9933 = vst [vmem:[#allocation64_spill] sm:$0xff] %v8457_v31  ;;  %9937 = vst [vmem:[#allocation68_spill] sm:$0xff] %v8469_v46  ;;  %v2770_v26 = vadd.f32 %v8134_v6, %v7906_v39  ;;  %v3735_v8 = vcombine.high %v8466_v23, %v8466_v23  ;;  %v3736_v28 = vcombine.high %v8469_v46, %v8469_v46 }
 0x824   : > { %9935 = vst [vmem:[#allocation66_spill] sm:$0xff] %v8463_v56  ;;  %9938 = vst [vmem:[#allocation69_spill] sm:$0xff] %v8472_v34  ;;  %v3737_v56 = vcombine.high %v8472_v34, %v8472_v34  ;;  %v3738_v1 = vcombine.high %v8477_v5, %v8477_v5  ;;  %v4342_v31 = vrot.slane %v4328_v43, %v7909_v21 }
 0x825   : > { %9939 = vst [vmem:[#allocation70_spill] sm:$0xff] %v8477_v5  ;;  %v8502_v55 = vrot.slane %v3735_v8, %v6822_v38  ;;  %v8508_v16 = vrot.slane %v3736_v28, %v6822_v38  ;;  %v4343_v57 = vcombine.high %v4335_v40, %v4335_v40  ;;  %v8515_v6 = vrot.slane %v4335_v40, %v7909_v21 }
 0x826   : > { %v8505_v47 = vrot.slane %v3737_v56, %v6822_v38  ;;  %v8512_v58 = vrot.slane %v3738_v1, %v6822_v38  ;;  %v4230_v46 = vcombine.high %v2759_v36, %v2759_v36  ;;  %v4344_v24 = vcombine.high %v4342_v31, %v4342_v31 }
 0x827   : > { %9940 = vst [vmem:[#allocation71_spill] sm:$0xff] %v8502_v55  ;;  %9942 = vst [vmem:[#allocation73_spill] sm:$0xff] %v8508_v16  ;;  %v8518_v8 = vrot.slane %v4342_v31, %v7909_v21  ;;  %v4237_v56 = vrot.slane %v2759_v36, %v7909_v21  ;;  %v4377_v5 = vcombine.high %v2770_v26, %v2770_v26 }
 0x828   : > { %9941 = vst [vmem:[#allocation72_spill] sm:$0xff] %v8505_v47  ;;  %9943 = vst [vmem:[#allocation74_spill] sm:$0xff] %v8512_v58  ;;  %v8522_v28 = vrot.slane %v4343_v57, %v7909_v21  ;;  %v4244_v1 = vrot.slane %v4230_v46, %v7909_v21  ;;  %v4384_v58 = vrot.slane %v2770_v26, %v7909_v21 }
 0x829   : > { %9944 = vst [vmem:[#allocation75_spill] sm:$0xff] %v8515_v6  ;;  %9945 = vst [vmem:[#allocation76_spill] sm:$0xff] %v8518_v8  ;;  %v8529_v40 = vrot.slane %v4344_v24, %v7909_v21  ;;  %v4245_v16 = vcombine.high %v4237_v56, %v4237_v56  ;;  %v8534_v36 = vrot.slane %v4237_v56, %v7909_v21 }
 0x82a   : > { %9946 = vst [vmem:[#allocation77_spill] sm:$0xff] %v8522_v28  ;;  %v4246_v47 = vcombine.high %v4244_v1, %v4244_v1  ;;  %v8539_v43 = vrot.slane %v4244_v1, %v7909_v21  ;;  %v4391_v46 = vrot.slane %v4377_v5, %v7909_v21  ;;  %v4392_v56 = vcombine.high %v4384_v58, %v4384_v58 }
 0x82b   : > { %9947 = vst [vmem:[#allocation78_spill] sm:$0xff] %v8529_v40  ;;  %v8545_v26 = vrot.slane %v4245_v16, %v7909_v21  ;;  %v8555_v28 = vrot.slane %v4384_v58, %v7909_v21  ;;  %v2951_v5 = vadd.f32 %v8170_v33, %v7906_v39  ;;  %v9952_v58 = vrot.slane %v8187_v30, %v6822_v38 }
 0x82c   : > { %v8550_v8 = vrot.slane %v4246_v47, %v7909_v21  ;;  %v4393_v1 = vcombine.high %v4391_v46, %v4391_v46  ;;  %v8560_v16 = vrot.slane %v4391_v46, %v7909_v21  ;;  %v8563_v24 = vrot.slane %v4392_v56, %v7909_v21 }
 0x82d   : > { %9948 = vst [vmem:[#allocation79_spill] sm:$0xff] %v8555_v28  ;;  %v2762_v47 = vadd.f32 %v7906_v39, %v8146_v13  ;;  %v4799_v55 = vrot.slane %v2951_v5, %v7909_v21  ;;  %v4158_v33 = vsel %vm4157_vm1, %v7926_v49, %v9952_v58  ;;  %v9954_v58 = vcombine.high %v7926_v49, %v7926_v49 }
 0x82e   : > { %9949 = vst [vmem:[#allocation80_spill] sm:$0xff] %v8560_v16  ;;  %9950 = vst [vmem:[#allocation81_spill] sm:$0xff] %v8563_v24  ;;  %v8570_v57 = vrot.slane %v4393_v1, %v7909_v21  ;;  %v4792_v1 = vcombine.high %v2951_v5, %v2951_v5 }
 0x82f   : > { %v4279_v40 = vcombine.high %v2762_v47, %v2762_v47  ;;  %v4286_v13 = vrot.slane %v2762_v47, %v7909_v21  ;;  %v9953_v47 = vrot.slane %v8202_v4, %v6822_v38  ;;  %v4815_v30 = vrot.slane %v4799_v55, %v7909_v21 }
 0x830   : > { %9951 = vst [vmem:[#allocation82_spill] sm:$0xff] %v8570_v57  ;;  %v4806_v5 = vrot.slane %v4792_v1, %v7909_v21  ;;  %v4807_v57 = vcombine.high %v4799_v55, %v4799_v55 }
 0x831   : > { %v4293_v46 = vrot.slane %v4279_v40, %v7909_v21  ;;  %v4294_v16 = vcombine.high %v4286_v13, %v4286_v13  ;;  %v8591_v56 = vrot.slane %v4286_v13, %v7909_v21  ;;  %v4159_v31 = vsel %vm4157_vm1, %v7941_v20, %v9953_v47 }
 0x832   : > { %v4160_v40 = vsel %vm4157_vm1, %v9954_v58, %v8228_v35  ;;  %v4808_v1 = vcombine.high %v4806_v5, %v4806_v5  ;;  %v8614_v34 = vrot.slane %v4806_v5, %v7909_v21  ;;  %v8617_v55 = vrot.slane %v4807_v57, %v7909_v21 }
 0x833   : > { %v4295_v24 = vcombine.high %v4293_v46, %v4293_v46  ;;  %v8606_v13 = vrot.slane %v4293_v46, %v7909_v21  ;;  %v8609_v4 = vrot.slane %v4294_v16, %v7909_v21  ;;  %v4837_v49 = vcombine.high %v4815_v30, %v4815_v30 }
 0x834   : > { %9957 = vst [vmem:[#allocation85_spill] sm:$0xff] %v8614_v34  ;;  %9958 = vst [vmem:[#allocation86_spill] sm:$0xff] %v8617_v55  ;;  %v5153_v58 = vrot.slane %v4815_v30, %v6822_v38  ;;  %v8628_v47 = vrot.slane %v4808_v1, %v7909_v21  ;;  %v4838_v5 = vcombine.high %v8614_v34, %v8614_v34 }
 0x835   : > { %9955 = vst [vmem:[#allocation83_spill] sm:$0xff] %v8606_v13  ;;  %9956 = vst [vmem:[#allocation84_spill] sm:$0xff] %v8609_v4  ;;  %v8620_v35 = vrot.slane %v4295_v24, %v7909_v21  ;;  %v4839_v57 = vcombine.high %v8617_v55, %v8617_v55  ;;  %v8639_v13 = vrot.slane %v4837_v49, %v6822_v38 }
 0x836   : > { %9960 = vst [vmem:[#allocation88_spill] sm:$0xff] %v8628_v47  ;;  %v8645_v1 = vsel %vm4157_vm1, %v8515_v6, %v5153_v58  ;;  %v4840_v16 = vcombine.high %v8628_v47, %v8628_v47  ;;  %v8655_v46 = vrot.slane %v4838_v5, %v6822_v38  ;;  %v9965_v49 = vcombine.high %v7941_v20, %v7941_v20 }
 0x837   : > { %9959 = vst [vmem:[#allocation87_spill] sm:$0xff] %v8620_v35  ;;  %9961 = vst [vmem:[#allocation89_spill] sm:$0xff] %v8639_v13  ;;  %v8650_v23 = vrot.slane %v4839_v57, %v6822_v38  ;;  %v5598_v58 = vcombine.low %v4158_v33, %v4159_v31  ;;  %v2943_v34 = vadd.f32 %v7906_v39, %v8174_v62 }
 0x838   : > { %9962 = vst [vmem:[#allocation90_spill] sm:$0xff] %v8645_v1  ;;  %9964 = vst [vmem:[#allocation92_spill] sm:$0xff] %v8655_v46  ;;  %v4161_v30 = vsel %vm4157_vm1, %v9965_v49, %v8238_v59  ;;  %v2954_v57 = vadd.f32 %v8183_v61, %v7906_v39  ;;  %v8667_v1 = vrot.slane %v4840_v16, %v6822_v38 }
 0x839   : > { %9963 = vst [vmem:[#allocation91_spill] sm:$0xff] %v8650_v23  ;;  %v5599_v24 = vcombine.low %v4160_v40, %v4161_v30  ;;  %v2783_v5 = vadd.f32 %v8190_v19, %v7906_v39  ;;  %v8673_v46 = vadd.f32 %v7906_v39, %v8192_v11  ;;  %v5606_v20 = vrot.slane %v5598_v58, %v7918_v44 }
 0x83a   : > { %9966 = vst [vmem:[#allocation93_spill] sm:$0xff] %v8667_v1  ;;  %v4694_v59 = vcombine.high %v2943_v34, %v2943_v34  ;;  %v4701_v31 = vrot.slane %v2943_v34, %v7909_v21  ;;  %v4841_v62 = vcombine.high %v2954_v57, %v2954_v57  ;;  %v4848_v61 = vrot.slane %v2954_v57, %v7909_v21 }
 0x83b   : > { %v5613_v33 = vrot.slane %v5599_v24, %v7918_v44  ;;  %v4524_v16 = vcombine.high %v2783_v5, %v2783_v5  ;;  %v4531_v40 = vrot.slane %v2783_v5, %v7909_v21  ;;  %v4743_v4 = vcombine.high %v8673_v46, %v8673_v46 }
 0x83c   : > { %v4708_v30 = vrot.slane %v4694_v59, %v7909_v21  ;;  %v4709_v19 = vcombine.high %v4701_v31, %v4701_v31  ;;  %v4717_v49 = vrot.slane %v4701_v31, %v7909_v21  ;;  %v4855_v11 = vrot.slane %v4841_v62, %v7909_v21 }
 0x83d   : > { %v5614_v1 = vcombine.low %v5606_v20, %v5613_v33  ;;  %v4856_v58 = vcombine.high %v4848_v61, %v4848_v61  ;;  %v4864_v47 = vrot.slane %v4848_v61, %v7909_v21  ;;  %v4538_v34 = vrot.slane %v4524_v16, %v7909_v21 }
 0x83e   : > { %v4710_v23 = vcombine.high %v4708_v30, %v4708_v30  ;;  %v8686_v24 = vrot.slane %v4708_v30, %v7909_v21  ;;  %v8689_v57 = vrot.slane %v4709_v19, %v7909_v21  ;;  %v4739_v5 = vcombine.high %v4717_v49, %v4717_v49 }
 0x83f   : > { %6174 = vxpose.xlu0.b32.start [1/16] (narrow) %v5614_v1, 8  ;;  %v5089_v59 = vrot.slane %v4717_v49, %v6822_v38  ;;  %v4857_v31 = vcombine.high %v4855_v11, %v4855_v11  ;;  %v8693_v62 = vrot.slane %v4855_v11, %v7909_v21  ;;  %v8696_v20 = vrot.slane %v4856_v58, %v7909_v21 }
 0x840   : > { %v8699_v33 = vrot.slane %v4710_v23, %v7909_v21  ;;  %v4740_v61 = vcombine.high %v8686_v24, %v8686_v24  ;;  %v4741_v16 = vcombine.high %v8689_v57, %v8689_v57  ;;  %v8708_v30 = vrot.slane %v4739_v5, %v6822_v38 }
 0x841   : > { %9967 = vst [vmem:[#allocation94_spill] sm:$0xff] %v8693_v62  ;;  %9968 = vst [vmem:[#allocation95_spill] sm:$0xff] %v8696_v20  ;;  %v8714_v49 = vsel %vm4157_vm1, %v8534_v36, %v5089_v59  ;;  %v8717_v23 = vrot.slane %v4857_v31, %v7909_v21  ;;  %v4886_v19 = vcombine.high %v4864_v47, %v4864_v47 }
 0x842   : > { %v4742_v11 = vcombine.high %v8699_v33, %v8699_v33  ;;  %v8722_v58 = vrot.slane %v4741_v16, %v6822_v38  ;;  %v8727_v1 = vrot.slane %v4740_v61, %v6822_v38  ;;  %v4887_v59 = vcombine.high %v8693_v62, %v8693_v62 }
 0x843   : > { %9969 = vst [vmem:[#allocation96_spill] sm:$0xff] %v8717_v23  ;;  %v4888_v31 = vcombine.high %v8696_v20, %v8696_v20  ;;  %v4889_v6 = vcombine.high %v8717_v23, %v8717_v23  ;;  %v5185_v16 = vrot.slane %v4864_v47, %v6822_v38  ;;  %v8744_v55 = vrot.slane %v4886_v19, %v6822_v38 }
 0x844   : > { %v8736_v13 = vrot.slane %v4742_v11, %v6822_v38  ;;  %v8752_v11 = vrot.slane %v4887_v59, %v6822_v38  ;;  %v4539_v61 = vcombine.high %v4531_v40, %v4531_v40  ;;  %v4540_v62 = vcombine.high %v4538_v34, %v4538_v34 }
 0x845   : > { %9970 = vst [vmem:[#allocation97_spill] sm:$0xff] %v8744_v55  ;;  %v8747_v35 = vrot.slane %v4888_v31, %v6822_v38  ;;  %v8755_v47 = vrot.slane %v4889_v6, %v6822_v38  ;;  %v8759_v5 = vsel %vm4157_vm1, %v8555_v28, %v5185_v16  ;;  %v8762_v19 = vrot.slane %v4531_v40, %v7909_v21 }
 0x846   : > { %9972 = vst [vmem:[#allocation99_spill] sm:$0xff] %v8752_v11  ;;  %9974 = vst [vmem:[#allocation101_spill] sm:$0xff] %v8759_v5  ;;  %v8765_v31 = vrot.slane %v4538_v34, %v7909_v21  ;;  %v4750_v59 = vrot.slane %v8673_v46, %v7909_v21  ;;  %v8772_v6 = vrot.slane %v4539_v61, %v7909_v21 }
 0x847   : > { %9971 = vst [vmem:[#allocation98_spill] sm:$0xff] %v8747_v35  ;;  %9973 = vst [vmem:[#allocation100_spill] sm:$0xff] %v8755_v47  ;;  %v8775_v16 = vrot.slane %v4540_v62, %v7909_v21  ;;  %v2775_v47 = vadd.f32 %v7906_v39, %v8196_v48  ;;  %v9979_v40 = vrot.slane %v8199_v14, %v6822_v38 }
 0x848   : > { %9975 = vst [vmem:[#allocation102_spill] sm:$0xff] %v8762_v19  ;;  %9976 = vst [vmem:[#allocation103_spill] sm:$0xff] %v8765_v31  ;;  %v4757_v61 = vrot.slane %v4743_v4, %v7909_v21  ;;  %v4758_v23 = vcombine.high %v4750_v59, %v4750_v59  ;;  %v4766_v48 = vrot.slane %v4750_v59, %v7909_v21 }
 0x849   : > { %9977 = vst [vmem:[#allocation104_spill] sm:$0xff] %v8772_v6  ;;  %9978 = vst [vmem:[#allocation105_spill] sm:$0xff] %v8775_v16  ;;  %v4162_v34 = vsel %vm4157_vm1, %v7938_v9, %v9979_v40  ;;  %v4426_v14 = vcombine.high %v2775_v47, %v2775_v47  ;;  %v4433_v46 = vrot.slane %v2775_v47, %v7909_v21 }
 0x84a   : > { %v4759_v5 = vcombine.high %v4757_v61, %v4757_v61  ;;  %v8795_v40 = vrot.slane %v4757_v61, %v7909_v21  ;;  %v8798_v11 = vrot.slane %v4758_v23, %v7909_v21  ;;  %v4788_v4 = vcombine.high %v4766_v48, %v4766_v48 }
 0x84b   : > { %v5121_v35 = vrot.slane %v4766_v48, %v6822_v38  ;;  %v4440_v62 = vrot.slane %v4426_v14, %v7909_v21  ;;  %v9980_v39 = vrot.slane %v8219_v10, %v6822_v38  ;;  %v8837_v10 = vrot.slane %v4433_v46, %v7909_v21 }
 0x84c   : > { %v8809_v28 = vrot.slane %v4759_v5, %v7909_v21  ;;  %v4789_v23 = vcombine.high %v8795_v40, %v8795_v40  ;;  %v4790_v47 = vcombine.high %v8798_v11, %v8798_v11  ;;  %v8818_v48 = vrot.slane %v4788_v4, %v6822_v38 }
 0x84d   : > { %v4163_v59 = vsel %vm4157_vm1, %v7954_v22, %v9980_v39  ;;  %v8824_v39 = vsel %vm4157_vm1, %v8591_v56, %v5121_v35  ;;  %v4441_v5 = vcombine.high %v4433_v46, %v4433_v46  ;;  %v4442_v20 = vcombine.high %v4440_v62, %v4440_v62 }
 0x84e   : > { %v4791_v14 = vcombine.high %v8809_v28, %v8809_v28  ;;  %v8829_v55 = vrot.slane %v4790_v47, %v6822_v38  ;;  %v8834_v4 = vrot.slane %v4789_v23, %v6822_v38  ;;  %v8840_v35 = vrot.slane %v4440_v62, %v7909_v21 }
 0x84f   : > { %v8843_v16 = vrot.slane %v4441_v5, %v7909_v21  ;;  %v9981_v47 = vcombine.high %v7938_v9, %v7938_v9  ;;  %v9982_v46 = vcombine.high %v7954_v22, %v7954_v22  ;;  %v5615_v62 = vcombine.low %v4162_v34, %v4163_v59  ;;  %v8871_v22 = vld [vmem:[%s9750_s10] ss:$0 sm:$0xff] }
 0x850   : > { %v8846_v31 = vrot.slane %v4791_v14, %v6822_v38  ;;  %v8859_v6 = vrot.slane %v4442_v20, %v7909_v21  ;;  %v2778_v20 = vadd.f32 %v8871_v22, %v8216_v3  ;;  %v9983_v59 = vrot.slane %v8382_v60, %v6822_v38 }
 0x851   : > { %v4164_v23 = vsel %vm4157_vm1, %v9981_v47, %v8243_v2  ;;  %v4165_v61 = vsel %vm4157_vm1, %v9982_v46, %v8253_v63  ;;  %v5623_v47 = vrot.slane %v5615_v62, %v7918_v44  ;;  %v2786_v63 = vadd.f32 %v8871_v22, %v8206_v42 }
 0x852   : > { %v5616_v2 = vcombine.low %v4164_v23, %v4165_v61  ;;  %v4190_v61 = vsel %vm4157_vm1, %v8030_v54, %v9983_v59  ;;  %v9984_v23 = vrot.slane %v8390_v17, %v6822_v38  ;;  %v9985_v42 = vcombine.high %v8030_v54, %v8030_v54 }
 0x853   : > { %v4573_v34 = vcombine.high %v2786_v63, %v2786_v63  ;;  %v4580_v60 = vrot.slane %v2786_v63, %v7909_v21  ;;  %v4475_v14 = vcombine.high %v2778_v20, %v2778_v20  ;;  %v4482_v59 = vrot.slane %v2778_v20, %v7909_v21 }
 0x854   : > { %v4191_v46 = vsel %vm4157_vm1, %v8044_v12, %v9984_v23  ;;  %v4192_v3 = vsel %vm4157_vm1, %v9985_v42, %v8409_v15  ;;  %v5630_v62 = vrot.slane %v5616_v2, %v7918_v44  ;;  %v9986_v17 = vcombine.high %v8044_v12, %v8044_v12 }
 0x855   : > { %v5870_v9 = vcombine.low %v4190_v61, %v4191_v46  ;;  %v2967_v54 = vadd.f32 %v8871_v22, %v8262_v37  ;;  %v4587_v15 = vrot.slane %v4573_v34, %v7909_v21  ;;  %v4588_v2 = vcombine.high %v4580_v60, %v4580_v60 }
 0x856   : > { %v4193_v23 = vsel %vm4157_vm1, %v9986_v17, %v8422_v25  ;;  %v5631_v5 = vcombine.low %v5623_v47, %v5630_v62  ;;  %v8906_v42 = vrot.slane %v4580_v60, %v7909_v21  ;;  %v4489_v63 = vrot.slane %v4475_v14, %v7909_v21 }
 0x857   : > { %v4490_v20 = vcombine.high %v4482_v59, %v4482_v59  ;;  %v8910_v19 = vrot.slane %v4482_v59, %v7909_v21  ;;  %v5871_v12 = vcombine.low %v4192_v3, %v4193_v23  ;;  %v4589_v25 = vcombine.high %v4587_v15, %v4587_v15 }
 0x858   : > { %9987 = vst [vmem:[#allocation106_spill] sm:$0xff] %v8906_v42  ;;  %6175 = vxpose.xlu0.b32.cont [2/16] (narrow) %v5631_v5, 8  ;;  %v8913_v61 = vrot.slane %v4587_v15, %v7909_v21  ;;  %v8916_v37 = vrot.slane %v4588_v2, %v7909_v21  ;;  %v4491_v34 = vcombine.high %v4489_v63, %v4489_v63 }
 0x859   : > { %v8921_v46 = vrot.slane %v4489_v63, %v7909_v21  ;;  %v8924_v14 = vrot.slane %v4490_v20, %v7909_v21  ;;  %v8929_v3 = vrot.slane %v4589_v25, %v7909_v21  ;;  %v5878_v59 = vrot.slane %v5870_v9, %v7918_v44 }
 0x85a   : > { %9988 = vst [vmem:[#allocation107_spill] sm:$0xff] %v8913_v61  ;;  %9989 = vst [vmem:[#allocation108_spill] sm:$0xff] %v8916_v37  ;;  %v8937_v17 = vrot.slane %v4491_v34, %v7909_v21  ;;  %v5885_v2 = vrot.slane %v5871_v12, %v7918_v44  ;;  %v4988_v20 = vcombine.high %v2967_v54, %v2967_v54 }
 0x85b   : > { %9990 = vst [vmem:[#allocation109_spill] sm:$0xff] %v8929_v3  ;;  %v4995_v25 = vrot.slane %v2967_v54, %v7909_v21  ;;  %v2959_v9 = vadd.f32 %v8871_v22, %v8275_v53  ;;  %v9991_v60 = vrot.slane %v8386_v32, %v6822_v38  ;;  %v9992_v12 = vrot.slane %v8398_v27, %v6822_v38 }
 0x85c   : > { %v5886_v62 = vcombine.low %v5878_v59, %v5885_v2  ;;  %v5002_v54 = vrot.slane %v4988_v20, %v7909_v21  ;;  %v9993_v32 = vcombine.high %v8041_v0, %v8041_v0  ;;  %v9994_v27 = vcombine.high %v8053_v7, %v8053_v7 }
 0x85d   : > { %v4194_v47 = vsel %vm4157_vm1, %v8041_v0, %v9991_v60  ;;  %v4195_v63 = vsel %vm4157_vm1, %v8053_v7, %v9992_v12  ;;  %v5003_v23 = vcombine.high %v4995_v25, %v4995_v25  ;;  %v8963_v53 = vrot.slane %v4995_v25, %v7909_v21 }
 0x85e   : > { %v4890_v34 = vcombine.high %v2959_v9, %v2959_v9  ;;  %6206 = vxpose.xlu1.b32.start [1/16] (narrow) %v5886_v62, 8  ;;  %v4897_v59 = vrot.slane %v2959_v9, %v7909_v21  ;;  %v4196_v60 = vsel %vm4157_vm1, %v9993_v32, %v8416_v18  ;;  %v4197_v2 = vsel %vm4157_vm1, %v9994_v27, %v8434_v45 }
 0x85f   : > { %v5887_v20 = vcombine.low %v4194_v47, %v4195_v63  ;;  %v5004_v12 = vcombine.high %v5002_v54, %v5002_v54  ;;  %v8977_v25 = vrot.slane %v5002_v54, %v7909_v21  ;;  %v8980_v62 = vrot.slane %v5003_v23, %v7909_v21 }
 0x860   : > { %v5033_v9 = vcombine.high %v8963_v53, %v8963_v53  ;;  %v4904_v0 = vrot.slane %v4890_v34, %v7909_v21  ;;  %v4905_v32 = vcombine.high %v4897_v59, %v4897_v59  ;;  %v8988_v7 = vrot.slane %v4897_v59, %v7909_v21 }
 0x861   : > { %v8991_v45 = vrot.slane %v5004_v12, %v7909_v21  ;;  %v5034_v47 = vcombine.high %v8977_v25, %v8977_v25  ;;  %v5035_v23 = vcombine.high %v8980_v62, %v8980_v62  ;;  %v2962_v61 = vadd.f32 %v8871_v22, %v8297_v29 }
 0x862   : > { %v9000_v54 = vrot.slane %v5033_v9, %v6822_v38  ;;  %v4906_v59 = vcombine.high %v4904_v0, %v4904_v0  ;;  %v9005_v27 = vrot.slane %v4904_v0, %v7909_v21  ;;  %v9018_v9 = vrot.slane %v4905_v32, %v7909_v21 }
 0x863   : > { %v5036_v12 = vcombine.high %v8991_v45, %v8991_v45  ;;  %v9010_v18 = vrot.slane %v5035_v23, %v6822_v38  ;;  %v9015_v63 = vrot.slane %v5034_v47, %v6822_v38  ;;  %v4935_v0 = vcombine.high %v8988_v7, %v8988_v7 }
 0x864   : > { %v9021_v34 = vrot.slane %v4906_v59, %v7909_v21  ;;  %v4936_v5 = vcombine.high %v9005_v27, %v9005_v27  ;;  %v5888_v32 = vcombine.low %v4196_v60, %v4197_v2  ;;  %v4937_v59 = vcombine.high %v9018_v9, %v9018_v9 }
 0x865   : > { %v9028_v23 = vrot.slane %v5036_v12, %v6822_v38  ;;  %v9041_v37 = vrot.slane %v4935_v0, %v6822_v38  ;;  %v5895_v60 = vrot.slane %v5887_v20, %v7918_v44  ;;  %v2970_v0 = vadd.f32 %v8871_v22, %v8285_v51 }
 0x866   : > { %v4938_v3 = vcombine.high %v9021_v34, %v9021_v34  ;;  %v9046_v15 = vrot.slane %v4936_v5, %v6822_v38  ;;  %v5902_v2 = vrot.slane %v5888_v32, %v7918_v44  ;;  %v9051_v47 = vrot.slane %v4937_v59, %v6822_v38 }
 0x867   : > { %v9995_v5 = vrot.slane %v8689_v57, %v6822_v38  ;;  %v9996_v32 = vcombine.high %v8534_v36, %v8534_v36  ;;  %v9997_v51 = vcombine.high %v8545_v26, %v8545_v26  ;;  %v5037_v29 = vcombine.high %v2970_v0, %v2970_v0 }
 0x868   : > { %v9054_v42 = vrot.slane %v4938_v3, %v6822_v38  ;;  %v5903_v12 = vcombine.low %v5895_v60, %v5902_v2  ;;  %v5044_v22 = vrot.slane %v2970_v0, %v7909_v21  ;;  %v4939_v60 = vcombine.high %v2962_v61, %v2962_v61 }
 0x869   : > { %v5407_v20 = vsel %vm4157_vm1, %v8545_v26, %v9995_v5  ;;  %v5408_v3 = vsel %vm4157_vm1, %v9996_v32, %v8708_v30  ;;  %v5409_v59 = vsel %vm4157_vm1, %v9997_v51, %v8722_v58  ;;  %v4946_v57 = vrot.slane %v2962_v61, %v7909_v21 }
 0x86a   : > { %6207 = vxpose.xlu1.b32.cont [2/16] (narrow) %v5903_v12, 8  ;;  %v5632_v2 = vcombine.low %v8714_v49, %v5407_v20  ;;  %v5633_v5 = vcombine.low %v5408_v3, %v5409_v59  ;;  %v9998_v36 = vrot.slane %v8686_v24, %v6822_v38  ;;  %v9999_v26 = vrot.slane %v8699_v33, %v6822_v38 }
 0x86b   : > { %v5051_v0 = vrot.slane %v5037_v29, %v7909_v21  ;;  %v5052_v32 = vcombine.high %v5044_v22, %v5044_v22  ;;  %v9090_v61 = vrot.slane %v5044_v22, %v7909_v21  ;;  %v4953_v49 = vrot.slane %v4939_v60, %v7909_v21 }
 0x86c   : > { %v5410_v30 = vsel %vm4157_vm1, %v8539_v43, %v9998_v36  ;;  %v5411_v58 = vsel %vm4157_vm1, %v8550_v8, %v9999_v26  ;;  %v4954_v12 = vcombine.high %v4946_v57, %v4946_v57  ;;  %v9094_v24 = vrot.slane %v4946_v57, %v7909_v21 }
 0x86d   : > { %10000 = vst [vmem:[#allocation110_spill] sm:$0xff] %v9090_v61  ;;  %v5640_v20 = vrot.slane %v5632_v2, %v7918_v44  ;;  %v5647_v3 = vrot.slane %v5633_v5, %v7918_v44  ;;  %v5053_v33 = vcombine.high %v5051_v0, %v5051_v0  ;;  %v9099_v51 = vrot.slane %v5051_v0, %v7909_v21 }
 0x86e   : > { %v9102_v59 = vrot.slane %v5052_v32, %v7909_v21  ;;  %v5082_v29 = vcombine.high %v9090_v61, %v9090_v61  ;;  %v4955_v60 = vcombine.high %v4953_v49, %v4953_v49  ;;  %v9109_v57 = vrot.slane %v4953_v49, %v7909_v21 }
 0x86f   : > { %10001 = vst [vmem:[#allocation111_spill] sm:$0xff] %v9099_v51  ;;  %v9112_v2 = vrot.slane %v4954_v12, %v7909_v21  ;;  %v9115_v5 = vrot.slane %v5053_v33, %v7909_v21  ;;  %v5083_v36 = vcombine.high %v9099_v51, %v9099_v51  ;;  %v4984_v33 = vcombine.high %v9094_v24, %v9094_v24 }
 0x870   : > { %v5084_v26 = vcombine.high %v9102_v59, %v9102_v59  ;;  %v9124_v32 = vrot.slane %v5082_v29, %v6822_v38  ;;  %v9129_v12 = vrot.slane %v4955_v60, %v7909_v21  ;;  %v4985_v49 = vcombine.high %v9109_v57, %v9109_v57 }
 0x871   : > { %10002 = vst [vmem:[#allocation112_spill] sm:$0xff] %v9115_v5  ;;  %v5085_v22 = vcombine.high %v9115_v5, %v9115_v5  ;;  %v9141_v29 = vrot.slane %v5083_v36, %v6822_v38  ;;  %v4986_v21 = vcombine.high %v9112_v2, %v9112_v2  ;;  %v9157_v36 = vrot.slane %v4984_v33, %v6822_v38 }
 0x872   : > { %10003 = vst [vmem:[#allocation113_spill] sm:$0xff] %v9124_v32  ;;  %v9136_v61 = vrot.slane %v5084_v26, %v6822_v38  ;;  %v4987_v60 = vcombine.high %v9129_v12, %v9129_v12  ;;  %v9167_v51 = vrot.slane %v4985_v49, %v6822_v38  ;;  %v10007_v33 = vcombine.high %v8539_v43, %v8539_v43 }
 0x873   : > { %10005 = vst [vmem:[#allocation115_spill] sm:$0xff] %v9141_v29  ;;  %v9152_v26 = vrot.slane %v5085_v22, %v6822_v38  ;;  %v9162_v5 = vrot.slane %v4986_v21, %v6822_v38  ;;  %v10008_v21 = vcombine.high %v8550_v8, %v8550_v8  ;;  %v10009_v49 = vrot.slane %v8288_v52, %v6822_v38 }
 0x874   : > { %10004 = vst [vmem:[#allocation114_spill] sm:$0xff] %v9136_v61  ;;  %v9170_v22 = vrot.slane %v4987_v60, %v6822_v38  ;;  %v5412_v0 = vsel %vm4157_vm1, %v10007_v33, %v8727_v1  ;;  %v5649_v61 = vcombine.low %v5410_v30, %v5411_v58  ;;  %v10012_v60 = vld [vmem:[#allocation49_spill] sm:$0xff]  ;;  %v10013_v8 = vcombine.high %v7996_v41, %v7996_v41  ;;  %v10014_v58 = vld [vmem:[#allocation50_spill] sm:$0xff] }
 0x875   : > { %10006 = vst [vmem:[#allocation116_spill] sm:$0xff] %v9152_v26  ;;  %v5648_v26 = vcombine.low %v5640_v20, %v5647_v3  ;;  %v5413_v29 = vsel %vm4157_vm1, %v10008_v21, %v8736_v13  ;;  %v4167_v20 = vsel %vm4157_vm1, %v7996_v41, %v10009_v49  ;;  %v10010_v3 = vld [vmem:[#allocation14_spill] sm:$0xff]  ;;  %v10016_v21 = vrot.slane %v9018_v9, %v6822_v38 }
 0x876   : > { %v5650_v32 = vcombine.low %v5412_v0, %v5413_v29  ;;  %v10011_v43 = vcombine.high %v10010_v3, %v10010_v3  ;;  %v4169_v13 = vsel %vm4157_vm1, %v10013_v8, %v10012_v60  ;;  %v5657_v30 = vrot.slane %v5649_v61, %v7918_v44  ;;  %v10021_v8 = vld [vmem:[#allocation15_spill] sm:$0xff] }
 0x877   : > { %6176 = vxpose.xlu0.b32.cont [3/16] (narrow) %v5648_v26, 8  ;;  %v5666_v52 = vcombine.low %v10014_v58, %v4167_v20  ;;  %v10015_v29 = vrot.slane %v8988_v7, %v6822_v38  ;;  %v5439_v41 = vsel %vm4157_vm1, %v8843_v16, %v10016_v21  ;;  %v10017_v61 = vcombine.high %v8837_v10, %v8837_v10  ;;  %v10024_v58 = vld [vmem:[#allocation17_spill] sm:$0xff] }
 0x878   : > { %v4168_v1 = vsel %vm4157_vm1, %v10011_v43, %v8314_v50  ;;  %v5664_v50 = vrot.slane %v5650_v32, %v7918_v44  ;;  %v10018_v7 = vcombine.high %v8843_v16, %v8843_v16  ;;  %v10028_v21 = vcombine.high %v10024_v58, %v10024_v58 }
 0x879   : > { %v5667_v0 = vcombine.low %v4168_v1, %v4169_v13  ;;  %v5438_v33 = vsel %vm4157_vm1, %v8837_v10, %v10015_v29  ;;  %v5440_v26 = vsel %vm4157_vm1, %v10017_v61, %v9041_v37  ;;  %v5674_v32 = vrot.slane %v5666_v52, %v7918_v44  ;;  %v10019_v1 = vld [vmem:[#allocation45_spill] sm:$0xff]  ;;  %v10022_v37 = vld [vmem:[#allocation47_spill] sm:$0xff] }
 0x87a   : > { %v5441_v49 = vsel %vm4157_vm1, %v10018_v7, %v9051_v47  ;;  %v5904_v9 = vcombine.low %v5438_v33, %v5439_v41  ;;  %v5665_v43 = vcombine.low %v5657_v30, %v5664_v50  ;;  %v10020_v60 = vrot.slane %v10019_v1, %v6822_v38  ;;  %v10025_v47 = vld [vmem:[#allocation48_spill] sm:$0xff]  ;;  %v10027_v50 = vld [vmem:[#allocation53_spill] sm:$0xff] }
 0x87b   : > { %v5681_v20 = vrot.slane %v5667_v0, %v7918_v44  ;;  %v5905_v3 = vcombine.low %v5440_v26, %v5441_v49  ;;  %v10023_v13 = vrot.slane %v10022_v37, %v6822_v38  ;;  %v10026_v52 = vcombine.high %v10021_v8, %v10021_v8 }
 0x87c   : > { %v4170_v10 = vsel %vm4157_vm1, %v10021_v8, %v10020_v60  ;;  %v5912_v30 = vrot.slane %v5904_v9, %v7918_v44  ;;  %v4173_v41 = vsel %vm4157_vm1, %v10028_v21, %v10027_v50  ;;  %6177 = vxpose.xlu0.b32.cont [4/16] (narrow) %v5665_v43, 8  ;;  %v10029_v7 = vrot.slane %v9005_v27, %v6822_v38  ;;  %v10039_v50 = vld [vmem:[#allocation24_spill] sm:$0xff]  ;;  %v10040_v21 = vld [vmem:[#allocation69_spill] sm:$0xff] }
 0x87d   : > { %v4171_v16 = vsel %vm4157_vm1, %v10024_v58, %v10023_v13  ;;  %v4172_v0 = vsel %vm4157_vm1, %v10026_v52, %v10025_v47  ;;  %v5682_v29 = vcombine.low %v5674_v32, %v5681_v20  ;;  %v5919_v33 = vrot.slane %v5905_v3, %v7918_v44  ;;  %v10034_v13 = vld [vmem:[#allocation84_spill] sm:$0xff] }
 0x87e   : > { %v5683_v61 = vcombine.low %v4170_v10, %v4171_v16  ;;  %v5684_v26 = vcombine.low %v4172_v0, %v4173_v41  ;;  %v5442_v49 = vsel %vm4157_vm1, %v8840_v35, %v10029_v7  ;;  %v10030_v32 = vrot.slane %v9021_v34, %v6822_v38  ;;  %v10045_v7 = vld [vmem:[#allocation72_spill] sm:$0xff] }
 0x87f   : > { %v5920_v9 = vcombine.low %v5912_v30, %v5919_v33  ;;  %v10031_v3 = vcombine.high %v8840_v35, %v8840_v35  ;;  %v10032_v27 = vcombine.high %v8859_v6, %v8859_v6  ;;  %v10033_v37 = vrot.slane %v8798_v11, %v6822_v38  ;;  %v10037_v30 = vld [vmem:[#allocation67_spill] sm:$0xff] }
 0x880   : > { %v5443_v20 = vsel %vm4157_vm1, %v8859_v6, %v10030_v32  ;;  %v5691_v8 = vrot.slane %v5683_v61, %v7918_v44  ;;  %v5698_v34 = vrot.slane %v5684_v26, %v7918_v44  ;;  %v10035_v6 = vcombine.high %v8591_v56, %v8591_v56  ;;  %6178 = vxpose.xlu0.b32.cont [5/16] (narrow) %v5682_v29, 8  ;;  %v10042_v61 = vld [vmem:[#allocation27_spill] sm:$0xff] }
 0x881   : > { %v5444_v43 = vsel %vm4157_vm1, %v10031_v3, %v9046_v15  ;;  %v5445_v1 = vsel %vm4157_vm1, %v10032_v27, %v9054_v42  ;;  %v5921_v60 = vcombine.low %v5442_v49, %v5443_v20  ;;  %v5415_v35 = vsel %vm4157_vm1, %v10034_v13, %v10033_v37  ;;  %6208 = vxpose.xlu1.b32.cont [3/16] (narrow) %v5920_v9, 8 }
 0x882   : > { %v5922_v10 = vcombine.low %v5444_v43, %v5445_v1  ;;  %v5416_v42 = vsel %vm4157_vm1, %v10035_v6, %v8818_v48  ;;  %v10036_v58 = vcombine.high %v10034_v13, %v10034_v13  ;;  %v5700_v11 = vcombine.low %v8824_v39, %v5415_v35  ;;  %v10043_v39 = vld [vmem:[#allocation71_spill] sm:$0xff] }
 0x883   : > { %v5929_v15 = vrot.slane %v5921_v60, %v7918_v44  ;;  %v5699_v47 = vcombine.low %v5691_v8, %v5698_v34  ;;  %v10038_v33 = vrot.slane %v10037_v30, %v6822_v38  ;;  %v10041_v41 = vrot.slane %v10040_v21, %v6822_v38  ;;  %v10048_v1 = vld [vmem:[#allocation83_spill] sm:$0xff]  ;;  %v10061_v21 = vld [vmem:[#allocation74_spill] sm:$0xff] }
 0x884   : > { %v5417_v16 = vsel %vm4157_vm1, %v10036_v58, %v8829_v55  ;;  %v5936_v52 = vrot.slane %v5922_v10, %v7918_v44  ;;  %v5708_v48 = vrot.slane %v5700_v11, %v7918_v44  ;;  %v10044_v29 = vcombine.high %v10039_v50, %v10039_v50  ;;  %v10050_v34 = vld [vmem:[#allocation87_spill] sm:$0xff] }
 0x885   : > { %v5701_v0 = vcombine.low %v5416_v42, %v5417_v16  ;;  %v4198_v56 = vsel %vm4157_vm1, %v10039_v50, %v10038_v33  ;;  %v4199_v55 = vsel %vm4157_vm1, %v10042_v61, %v10041_v41  ;;  %v10046_v49 = vcombine.high %v10042_v61, %v10042_v61  ;;  %6179 = vxpose.xlu0.b32.cont [6/16] (narrow) %v5699_v47, 8  ;;  %v10053_v16 = vld [vmem:[#allocation68_spill] sm:$0xff]  ;;  %v10058_v33 = vld [vmem:[#allocation29_spill] sm:$0xff] }
 0x886   : > { %v4200_v26 = vsel %vm4157_vm1, %v10044_v29, %v10043_v39  ;;  %v5937_v20 = vcombine.low %v5929_v15, %v5936_v52  ;;  %v5938_v3 = vcombine.low %v4198_v56, %v4199_v55  ;;  %v10047_v27 = vrot.slane %v8795_v40, %v6822_v38  ;;  %v10055_v52 = vld [vmem:[#allocation26_spill] sm:$0xff]  ;;  %v10059_v50 = vld [vmem:[#allocation73_spill] sm:$0xff] }
 0x887   : > { %v4201_v32 = vsel %vm4157_vm1, %v10046_v49, %v10045_v7  ;;  %v5715_v9 = vrot.slane %v5701_v0, %v7918_v44  ;;  %v10049_v8 = vrot.slane %v8809_v28, %v6822_v38  ;;  %v10051_v37 = vcombine.high %v10048_v1, %v10048_v1  ;;  %v10056_v0 = vld [vmem:[#allocation70_spill] sm:$0xff] }
 0x888   : > { %v5939_v43 = vcombine.low %v4200_v26, %v4201_v32  ;;  %v5418_v60 = vsel %vm4157_vm1, %v10048_v1, %v10047_v27  ;;  %v10052_v35 = vcombine.high %v10050_v34, %v10050_v34  ;;  %6209 = vxpose.xlu1.b32.cont [4/16] (narrow) %v5937_v20, 8  ;;  %v5946_v28 = vrot.slane %v5938_v3, %v7918_v44  ;;  %v10063_v7 = vld [vmem:[#allocation30_spill] sm:$0xff]  ;;  %v10065_v32 = vld [vmem:[#allocation8_spill] sm:$0xff] }
 0x889   : > { %v5419_v10 = vsel %vm4157_vm1, %v10050_v34, %v10049_v8  ;;  %v5420_v13 = vsel %vm4157_vm1, %v10051_v37, %v8834_v4  ;;  %v5716_v15 = vcombine.low %v5708_v48, %v5715_v9  ;;  %v10054_v11 = vrot.slane %v10053_v16, %v6822_v38  ;;  %v10066_v3 = vld [vmem:[#allocation32_spill] sm:$0xff] }
 0x88a   : > { %v5421_v40 = vsel %vm4157_vm1, %v10052_v35, %v8846_v31  ;;  %v5953_v6 = vrot.slane %v5939_v43, %v7918_v44  ;;  %v5717_v42 = vcombine.low %v5418_v60, %v5419_v10  ;;  %v10057_v30 = vrot.slane %v10056_v0, %v6822_v38  ;;  %v10067_v43 = vld [vmem:[#allocation6_spill] sm:$0xff] }
 0x88b   : > { %v5718_v58 = vcombine.low %v5420_v13, %v5421_v40  ;;  %v4202_v4 = vsel %vm4157_vm1, %v10055_v52, %v10054_v11  ;;  %v10060_v56 = vcombine.high %v10055_v52, %v10055_v52  ;;  %v10062_v41 = vcombine.high %v10058_v33, %v10058_v33  ;;  %6180 = vxpose.xlu0.b32.cont [7/16] (narrow) %v5716_v15, 8  ;;  %v10069_v60 = vld [vmem:[#allocation34_spill] sm:$0xff]  ;;  %v10071_v13 = vld [vmem:[#allocation35_spill] sm:$0xff] }
 0x88c   : > { %v4203_v31 = vsel %vm4157_vm1, %v10058_v33, %v10057_v30  ;;  %v5954_v47 = vcombine.low %v5946_v28, %v5953_v6  ;;  %v5725_v39 = vrot.slane %v5717_v42, %v7918_v44  ;;  %v10064_v49 = vrot.slane %v10063_v7, %v6822_v38  ;;  %v10076_v33 = vld [vmem:[#allocation28_spill] sm:$0xff] }
 0x88d   : > { %v4204_v48 = vsel %vm4157_vm1, %v10060_v56, %v10059_v50  ;;  %v4205_v61 = vsel %vm4157_vm1, %v10062_v41, %v10061_v21  ;;  %v5955_v55 = vcombine.low %v4202_v4, %v4203_v31  ;;  %v5732_v29 = vrot.slane %v5718_v58, %v7918_v44  ;;  %v10082_v56 = vld [vmem:[#allocation33_spill] sm:$0xff] }
 0x88e   : > { %v5956_v26 = vcombine.low %v4204_v48, %v4205_v61  ;;  %v4175_v20 = vsel %vm4157_vm1, %v10065_v32, %v10064_v49  ;;  %6210 = vxpose.xlu1.b32.cont [5/16] (narrow) %v5954_v47, 8  ;;  %v10068_v27 = vcombine.high %v10067_v43, %v10067_v43  ;;  %v10070_v8 = vcombine.high %v10065_v32, %v10065_v32  ;;  %v10079_v47 = vld [vmem:[#allocation31_spill] sm:$0xff] }
 0x88f   : > { %v5963_v9 = vrot.slane %v5955_v55, %v7918_v44  ;;  %v5733_v10 = vcombine.low %v5725_v39, %v5732_v29  ;;  %v5734_v35 = vcombine.low %v10071_v13, %v4175_v20  ;;  %v10072_v15 = vrot.slane %v9094_v24, %v6822_v38  ;;  %v10084_v55 = vld [vmem:[#allocation36_spill] sm:$0xff] }
 0x890   : > { %v4176_v1 = vsel %vm4157_vm1, %v10068_v27, %v10066_v3  ;;  %v4177_v34 = vsel %vm4157_vm1, %v10070_v8, %v10069_v60  ;;  %v5970_v37 = vrot.slane %v5956_v26, %v7918_v44  ;;  %v10073_v6 = vrot.slane %v9112_v2, %v6822_v38 }
 0x891   : > { %v5735_v40 = vcombine.low %v4176_v1, %v4177_v34  ;;  %v5446_v28 = vsel %vm4157_vm1, %v8910_v19, %v10072_v15  ;;  %v10074_v58 = vcombine.high %v8910_v19, %v8910_v19  ;;  %v10075_v11 = vcombine.high %v8924_v14, %v8924_v14  ;;  %6181 = vxpose.xlu0.b32.cont [8/16] (narrow) %v5733_v10, 8  ;;  %v10078_v19 = vld [vmem:[#allocation7_spill] sm:$0xff] }
 0x892   : > { %v5447_v42 = vsel %vm4157_vm1, %v8924_v14, %v10073_v6  ;;  %v5971_v52 = vcombine.low %v5963_v9, %v5970_v37  ;;  %v5742_v4 = vrot.slane %v5734_v35, %v7918_v44  ;;  %v10077_v31 = vrot.slane %v10076_v33, %v6822_v38  ;;  %v10081_v14 = vld [vmem:[#allocation9_spill] sm:$0xff]  ;;  %v10090_v37 = vld [vmem:[#allocation86_spill] sm:$0xff]  ;;  %v10094_v15 = vld [vmem:[#allocation75_spill] sm:$0xff] }
 0x893   : > { %v5448_v16 = vsel %vm4157_vm1, %v10074_v58, %v9157_v36  ;;  %v5449_v24 = vsel %vm4157_vm1, %v10075_v11, %v9162_v5  ;;  %v5749_v2 = vrot.slane %v5735_v40, %v7918_v44  ;;  %v5972_v0 = vcombine.low %v5446_v28, %v5447_v42  ;;  %v10092_v35 = vld [vmem:[#allocation77_spill] sm:$0xff]  ;;  %v10096_v28 = vld [vmem:[#allocation91_spill] sm:$0xff]  ;;  %v10098_v58 = vld [vmem:[#allocation90_spill] sm:$0xff] }
 0x894   : > { %v5973_v30 = vcombine.low %v5448_v16, %v5449_v24  ;;  %v4178_v36 = vsel %vm4157_vm1, %v10078_v19, %v10077_v31  ;;  %v10080_v50 = vrot.slane %v10079_v47, %v6822_v38  ;;  %v10083_v48 = vcombine.high %v10078_v19, %v10078_v19  ;;  %6211 = vxpose.xlu1.b32.cont [6/16] (narrow) %v5971_v52, 8  ;;  %v10093_v40 = vld [vmem:[#allocation89_spill] sm:$0xff]  ;;  %v10102_v31 = vld [vmem:[#allocation52_spill] sm:$0xff] }
 0x895   : > { %v5750_v41 = vcombine.low %v5742_v4, %v5749_v2  ;;  %v5980_v61 = vrot.slane %v5972_v0, %v7918_v44  ;;  %v10085_v39 = vcombine.high %v10081_v14, %v10081_v14  ;;  %v10086_v32 = vrot.slane %v9109_v57, %v6822_v38  ;;  %v10099_v4 = vld [vmem:[#allocation46_spill] sm:$0xff]  ;;  %v10101_v0 = vld [vmem:[#allocation16_spill] sm:$0xff] }
 0x896   : > { %v4179_v5 = vsel %vm4157_vm1, %v10081_v14, %v10080_v50  ;;  %v4180_v21 = vsel %vm4157_vm1, %v10083_v48, %v10082_v56  ;;  %v5987_v7 = vrot.slane %v5973_v30, %v7918_v44  ;;  %v10087_v9 = vrot.slane %v9129_v12, %v6822_v38  ;;  %v10105_v50 = vld [vmem:[#allocation55_spill] sm:$0xff]  ;;  %v10107_v56 = vld [vmem:[#allocation56_spill] sm:$0xff] }
 0x897   : > { %v4181_v29 = vsel %vm4157_vm1, %v10085_v39, %v10084_v55  ;;  %v5751_v26 = vcombine.low %v4178_v36, %v4179_v5  ;;  %v5450_v20 = vsel %vm4157_vm1, %v8921_v46, %v10086_v32  ;;  %v10088_v27 = vcombine.high %v8921_v46, %v8921_v46  ;;  %6182 = vxpose.xlu0.b32.cont [9/16] (narrow) %v5750_v41, 8  ;;  %v10104_v36 = vld [vmem:[#allocation19_spill] sm:$0xff]  ;;  %v10112_v32 = vld [vmem:[#allocation88_spill] sm:$0xff] }
 0x898   : > { %v5752_v49 = vcombine.low %v4180_v21, %v4181_v29  ;;  %v5451_v3 = vsel %vm4157_vm1, %v8937_v17, %v10087_v9  ;;  %v10089_v57 = vcombine.high %v8937_v17, %v8937_v17  ;;  %v5988_v12 = vcombine.low %v5980_v61, %v5987_v7  ;;  %v10109_v29 = vld [vmem:[#allocation85_spill] sm:$0xff]  ;;  %v10111_v7 = vld [vmem:[#allocation76_spill] sm:$0xff]  ;;  %v10114_v9 = vld [vmem:[#allocation78_spill] sm:$0xff] }
 0x899   : > { %v5759_v43 = vrot.slane %v5751_v26, %v7918_v44  ;;  %v5452_v1 = vsel %vm4157_vm1, %v10088_v27, %v9167_v51  ;;  %v5989_v8 = vcombine.low %v5450_v20, %v5451_v3  ;;  %v10091_v13 = vrot.slane %v10090_v37, %v6822_v38 }
 0x89a   : > { %v5453_v60 = vsel %vm4157_vm1, %v10089_v57, %v9170_v22  ;;  %v5766_v34 = vrot.slane %v5752_v49, %v7918_v44  ;;  %v10095_v17 = vcombine.high %v10094_v15, %v10094_v15  ;;  %v10097_v6 = vcombine.high %v10092_v35, %v10092_v35  ;;  %6212 = vxpose.xlu1.b32.cont [7/16] (narrow) %v5988_v12, 8  ;;  %v10117_v57 = vld [vmem:[#allocation93_spill] sm:$0xff]  ;;  %v10122_v15 = vld [vmem:[#allocation54_spill] sm:$0xff] }
 0x89b   : > { %v5990_v10 = vcombine.low %v5452_v1, %v5453_v60  ;;  %v5423_v46 = vsel %vm4157_vm1, %v10092_v35, %v10091_v13  ;;  %v5997_v51 = vrot.slane %v5989_v8, %v7918_v44  ;;  %v10100_v2 = vrot.slane %v10099_v4, %v6822_v38  ;;  %v10119_v35 = vld [vmem:[#allocation51_spill] sm:$0xff] }
 0x89c   : > { %v5424_v22 = vsel %vm4157_vm1, %v10095_v17, %v10093_v40  ;;  %v5425_v42 = vsel %vm4157_vm1, %v10097_v6, %v10096_v28  ;;  %v5768_v16 = vcombine.low %v10098_v58, %v5423_v46  ;;  %v5767_v11 = vcombine.low %v5759_v43, %v5766_v34  ;;  %v10115_v43 = vld [vmem:[#allocation92_spill] sm:$0xff]  ;;  %v10125_v6 = vld [vmem:[#allocation57_spill] sm:$0xff] }
 0x89d   : > { %v6004_v24 = vrot.slane %v5990_v10, %v7918_v44  ;;  %v5769_v52 = vcombine.low %v5424_v22, %v5425_v42  ;;  %v4206_v30 = vsel %vm4157_vm1, %v10101_v0, %v10100_v2  ;;  %v10103_v19 = vrot.slane %v10102_v31, %v6822_v38  ;;  %v10124_v22 = vld [vmem:[#allocation20_spill] sm:$0xff] }
 0x89e   : > { %v5776_v33 = vrot.slane %v5768_v16, %v7918_v44  ;;  %v10106_v14 = vcombine.high %v10101_v0, %v10101_v0  ;;  %v10108_v48 = vcombine.high %v10104_v36, %v10104_v36  ;;  %6183 = vxpose.xlu0.b32.cont [10/16] (narrow) %v5767_v11, 8  ;;  %v10110_v26 = vrot.slane %v10109_v29, %v6822_v38  ;;  %v10139_v29 = vld [vmem:[#allocation102_spill] sm:$0xff] }
 0x89f   : > { %v4207_v47 = vsel %vm4157_vm1, %v10104_v36, %v10103_v19  ;;  %v6005_v41 = vcombine.low %v5997_v51, %v6004_v24  ;;  %v5783_v61 = vrot.slane %v5769_v52, %v7918_v44  ;;  %v10113_v20 = vrot.slane %v10112_v32, %v6822_v38  ;;  %v10121_v51 = vld [vmem:[#allocation18_spill] sm:$0xff]  ;;  %v10131_v19 = vld [vmem:[#allocation12_spill] sm:$0xff] }
 0x8a0   : > { %v4208_v5 = vsel %vm4157_vm1, %v10106_v14, %v10105_v50  ;;  %v4209_v21 = vsel %vm4157_vm1, %v10108_v48, %v10107_v56  ;;  %v6006_v55 = vcombine.low %v4206_v30, %v4207_v47  ;;  %v5426_v49 = vsel %vm4157_vm1, %v10111_v7, %v10110_v26  ;;  %v10127_v24 = vld [vmem:[#allocation58_spill] sm:$0xff]  ;;  %v10132_v47 = vld [vmem:[#allocation40_spill] sm:$0xff]  ;;  %v10135_v48 = vld [vmem:[#allocation41_spill] sm:$0xff] }
 0x8a1   : > { %v6007_v39 = vcombine.low %v4208_v5, %v4209_v21  ;;  %v5427_v3 = vsel %vm4157_vm1, %v10114_v9, %v10113_v20  ;;  %v10116_v27 = vcombine.high %v10111_v7, %v10111_v7  ;;  %v10118_v60 = vcombine.high %v10114_v9, %v10114_v9  ;;  %6213 = vxpose.xlu1.b32.cont [8/16] (narrow) %v6005_v41, 8  ;;  %v10133_v50 = vld [vmem:[#allocation10_spill] sm:$0xff]  ;;  %v10141_v9 = vld [vmem:[#allocation104_spill] sm:$0xff] }
 0x8a2   : > { %v5784_v12 = vcombine.low %v5776_v33, %v5783_v61  ;;  %v6014_v34 = vrot.slane %v6006_v55, %v7918_v44  ;;  %v5785_v37 = vcombine.low %v5426_v49, %v5427_v3  ;;  %v10120_v46 = vrot.slane %v10119_v35, %v6822_v38  ;;  %v10129_v33 = vld [vmem:[#allocation38_spill] sm:$0xff]  ;;  %v10137_v61 = vld [vmem:[#allocation44_spill] sm:$0xff]  ;;  %v10147_v35 = vld [vmem:[#allocation39_spill] sm:$0xff] }
 0x8a3   : > { %v5428_v1 = vsel %vm4157_vm1, %v10116_v27, %v10115_v43  ;;  %v5429_v8 = vsel %vm4157_vm1, %v10118_v60, %v10117_v57  ;;  %v6021_v10 = vrot.slane %v6007_v39, %v7918_v44  ;;  %v10123_v17 = vrot.slane %v10122_v15, %v6822_v38 }
 0x8a4   : > { %v5786_v13 = vcombine.low %v5428_v1, %v5429_v8  ;;  %v4210_v40 = vsel %vm4157_vm1, %v10121_v51, %v10120_v46  ;;  %v10126_v42 = vcombine.high %v10121_v51, %v10121_v51  ;;  %6184 = vxpose.xlu0.b32.cont [11/16] (narrow) %v5784_v12, 8  ;;  %v5793_v11 = vrot.slane %v5785_v37, %v7918_v44  ;;  %v10146_v37 = vld [vmem:[#allocation11_spill] sm:$0xff]  ;;  %v10149_v51 = vld [vmem:[#allocation13_spill] sm:$0xff] }
 0x8a5   : > { %v4211_v28 = vsel %vm4157_vm1, %v10124_v22, %v10123_v17  ;;  %v6022_v16 = vcombine.low %v6014_v34, %v6021_v10  ;;  %v10128_v52 = vcombine.high %v10124_v22, %v10124_v22  ;;  %v10130_v31 = vrot.slane %v10129_v33, %v6822_v38  ;;  %v10144_v34 = vld [vmem:[#allocation37_spill] sm:$0xff]  ;;  %v10152_v22 = vld [vmem:[#allocation43_spill] sm:$0xff] }
 0x8a6   : > { %v4212_v58 = vsel %vm4157_vm1, %v10126_v42, %v10125_v6  ;;  %v6023_v2 = vcombine.low %v4210_v40, %v4211_v28  ;;  %v5800_v0 = vrot.slane %v5786_v13, %v7918_v44  ;;  %v10134_v14 = vcombine.high %v10133_v50, %v10133_v50  ;;  %v10150_v40 = vld [vmem:[#allocation42_spill] sm:$0xff] }
 0x8a7   : > { %v4213_v4 = vsel %vm4157_vm1, %v10128_v52, %v10127_v24  ;;  %v4183_v36 = vsel %vm4157_vm1, %v10131_v19, %v10130_v31  ;;  %6214 = vxpose.xlu1.b32.cont [9/16] (narrow) %v6022_v16, 8  ;;  %v10136_v21 = vcombine.high %v10131_v19, %v10131_v19  ;;  %v10138_v39 = vrot.slane %v8963_v53, %v6822_v38  ;;  %v10155_v52 = vld [vmem:[#allocation103_spill] sm:$0xff] }
 0x8a8   : > { %v6024_v30 = vcombine.low %v4212_v58, %v4213_v4  ;;  %v4184_v5 = vsel %vm4157_vm1, %v10134_v14, %v10132_v47  ;;  %v6031_v56 = vrot.slane %v6023_v2, %v7918_v44  ;;  %v5802_v55 = vcombine.low %v10137_v61, %v4183_v36 }
 0x8a9   : > { %v4185_v41 = vsel %vm4157_vm1, %v10136_v21, %v10135_v48  ;;  %v5454_v26 = vsel %vm4157_vm1, %v10139_v29, %v10138_v39  ;;  %v5801_v7 = vcombine.low %v5793_v11, %v5800_v0  ;;  %v10140_v20 = vrot.slane %v8980_v62, %v6822_v38  ;;  %v10157_v0 = vld [vmem:[#allocation105_spill] sm:$0xff] }
 0x8aa   : > { %v6038_v49 = vrot.slane %v6024_v30, %v7918_v44  ;;  %v5803_v32 = vcombine.low %v4184_v5, %v4185_v41  ;;  %v5810_v43 = vrot.slane %v5802_v55, %v7918_v44  ;;  %v10142_v27 = vcombine.high %v10139_v29, %v10139_v29  ;;  %v10160_v5 = vld [vmem:[#allocation95_spill] sm:$0xff]  ;;  %v10162_v48 = vld [vmem:[#allocation81_spill] sm:$0xff]  ;;  %v10166_v55 = vld [vmem:[#allocation98_spill] sm:$0xff] }
 0x8ab   : > { %v5455_v3 = vsel %vm4157_vm1, %v10141_v9, %v10140_v20  ;;  %v10143_v1 = vcombine.high %v10141_v9, %v10141_v9  ;;  %6185 = vxpose.xlu0.b32.cont [12/16] (narrow) %v5801_v7, 8  ;;  %v10145_v10 = vrot.slane %v10144_v34, %v6822_v38  ;;  %v10148_v46 = vrot.slane %v10147_v35, %v6822_v38  ;;  %v10163_v21 = vld [vmem:[#allocation97_spill] sm:$0xff]  ;;  %v10164_v41 = vld [vmem:[#allocation79_spill] sm:$0xff] }
 0x8ac   : > { %v5456_v53 = vsel %vm4157_vm1, %v10142_v27, %v9000_v54  ;;  %v6040_v60 = vcombine.low %v5454_v26, %v5455_v3  ;;  %v6039_v62 = vcombine.low %v6031_v56, %v6038_v49  ;;  %v5817_v8 = vrot.slane %v5803_v32, %v7918_v44  ;;  %v10168_v49 = vld [vmem:[#allocation101_spill] sm:$0xff]  ;;  %v10169_v3 = vld [vmem:[#allocation59_spill] sm:$0xff] }
 0x8ad   : > { %v5457_v57 = vsel %vm4157_vm1, %v10143_v1, %v9010_v18  ;;  %v4186_v13 = vsel %vm4157_vm1, %v10146_v37, %v10145_v10  ;;  %v4187_v18 = vsel %vm4157_vm1, %v10149_v51, %v10148_v46  ;;  %v10151_v15 = vcombine.high %v10146_v37, %v10146_v37  ;;  %v10171_v27 = vld [vmem:[#allocation21_spill] sm:$0xff] }
 0x8ae   : > { %v6041_v12 = vcombine.low %v5456_v53, %v5457_v57  ;;  %v6048_v54 = vrot.slane %v6040_v60, %v7918_v44  ;;  %v10153_v28 = vcombine.high %v10149_v51, %v10149_v51  ;;  %6215 = vxpose.xlu1.b32.cont [10/16] (narrow) %v6039_v62, 8  ;;  %v5818_v42 = vcombine.low %v5810_v43, %v5817_v8  ;;  %v10172_v1 = vld [vmem:[#allocation61_spill] sm:$0xff]  ;;  %v10174_v60 = vld [vmem:[#allocation23_spill] sm:$0xff] }
 0x8af   : > { %v4188_v17 = vsel %vm4157_vm1, %v10151_v15, %v10150_v40  ;;  %v5819_v16 = vcombine.low %v4186_v13, %v4187_v18  ;;  %v10154_v24 = vrot.slane %v8977_v25, %v6822_v38  ;;  %v10156_v2 = vrot.slane %v8991_v45, %v6822_v38  ;;  %v10175_v8 = vld [vmem:[#allocation63_spill] sm:$0xff]  ;;  %v10177_v13 = vld [vmem:[#allocation64_spill] sm:$0xff]  ;;  %v10179_v40 = vld [vmem:[#allocation94_spill] sm:$0xff] }
 0x8b0   : > { %v4189_v6 = vsel %vm4157_vm1, %v10153_v28, %v10152_v22  ;;  %v6055_v58 = vrot.slane %v6041_v12, %v7918_v44  ;;  %v10158_v33 = vcombine.high %v10155_v52, %v10155_v52  ;;  %v10159_v19 = vcombine.high %v10157_v0, %v10157_v0  ;;  %6186 = vxpose.xlu0.b32.cont [13/16] (narrow) %v5818_v42, 8  ;;  %v10182_v28 = vld [vmem:[#allocation96_spill] sm:$0xff]  ;;  %v10184_v42 = vld [vmem:[#allocation82_spill] sm:$0xff] }
 0x8b1   : > { %v5820_v11 = vcombine.low %v4188_v17, %v4189_v6  ;;  %v5458_v4 = vsel %vm4157_vm1, %v10155_v52, %v10154_v24  ;;  %v5459_v30 = vsel %vm4157_vm1, %v10157_v0, %v10156_v2  ;;  %v5827_v47 = vrot.slane %v5819_v16, %v7918_v44  ;;  %v10181_v17 = vld [vmem:[#allocation80_spill] sm:$0xff]  ;;  %v10185_v24 = vld [vmem:[#allocation99_spill] sm:$0xff] }
 0x8b2   : > { %v5460_v31 = vsel %vm4157_vm1, %v10158_v33, %v9015_v63  ;;  %v5461_v25 = vsel %vm4157_vm1, %v10159_v19, %v9028_v23  ;;  %v6056_v36 = vcombine.low %v6048_v54, %v6055_v58  ;;  %v6057_v50 = vcombine.low %v5458_v4, %v5459_v30  ;;  %v10187_v2 = vld [vmem:[#allocation100_spill] sm:$0xff] }
 0x8b3   : > { %v5834_v45 = vrot.slane %v5820_v11, %v7918_v44  ;;  %v6058_v14 = vcombine.low %v5460_v31, %v5461_v25  ;;  %v10161_v56 = vrot.slane %v10160_v5, %v6822_v38  ;;  %v10165_v61 = vcombine.high %v10164_v41, %v10164_v41  ;;  %v10189_v25 = vld [vmem:[#allocation60_spill] sm:$0xff]  ;;  %v10194_v5 = vld [vmem:[#allocation25_spill] sm:$0xff]  ;;  %v10197_v41 = vld [vmem:[#allocation66_spill] sm:$0xff] }
 0x8b4   : > { %v10167_v39 = vcombine.high %v10162_v48, %v10162_v48  ;;  %6216 = vxpose.xlu1.b32.cont [11/16] (narrow) %v6056_v36, 8  ;;  %v6065_v7 = vrot.slane %v6057_v50, %v7918_v44  ;;  %v10170_v43 = vrot.slane %v10169_v3, %v6822_v38  ;;  %v10173_v57 = vrot.slane %v10172_v1, %v6822_v38  ;;  %v10192_v50 = vld [vmem:[#allocation62_spill] sm:$0xff] }
 0x8b5   : > { %v5431_v63 = vsel %vm4157_vm1, %v10162_v48, %v10161_v56  ;;  %v5432_v23 = vsel %vm4157_vm1, %v10165_v61, %v10163_v21  ;;  %v5835_v26 = vcombine.low %v5827_v47, %v5834_v45  ;;  %v6072_v9 = vrot.slane %v6058_v14, %v7918_v44  ;;  %v10191_v47 = vld [vmem:[#allocation22_spill] sm:$0xff]  ;;  %v10195_v48 = vld [vmem:[#allocation65_spill] sm:$0xff] }
 0x8b6   : > { %v5433_v29 = vsel %vm4157_vm1, %v10167_v39, %v10166_v55  ;;  %v5836_v32 = vcombine.low %v10168_v49, %v5431_v63  ;;  %v4214_v53 = vsel %vm4157_vm1, %v10171_v27, %v10170_v43  ;;  %v4215_v62 = vsel %vm4157_vm1, %v10174_v60, %v10173_v57  ;;  %v10199_v55 = vld [vmem:[#allocation110_spill] sm:$0xff]  ;;  %v10203_v43 = vld [vmem:[#allocation108_spill] sm:$0xff] }
 0x8b7   : > { %v5837_v20 = vcombine.low %v5432_v23, %v5433_v29  ;;  %v10176_v12 = vcombine.high %v10171_v27, %v10171_v27  ;;  %6187 = vxpose.xlu0.b32.cont [14/16] (narrow) %v5835_v26, 8  ;;  %v10178_v54 = vcombine.high %v10174_v60, %v10174_v60  ;;  %v6074_v46 = vcombine.low %v4214_v53, %v4215_v62  ;;  %v10201_v29 = vld [vmem:[#allocation106_spill] sm:$0xff]  ;;  %v10204_v53 = vld [vmem:[#allocation113_spill] sm:$0xff] }
 0x8b8   : > { %v5844_v10 = vrot.slane %v5836_v32, %v7918_v44  ;;  %v6073_v51 = vcombine.low %v6065_v7, %v6072_v9  ;;  %v10180_v15 = vrot.slane %v10179_v40, %v6822_v38  ;;  %v10183_v6 = vrot.slane %v10182_v28, %v6822_v38  ;;  %v10206_v60 = vld [vmem:[#allocation114_spill] sm:$0xff]  ;;  %v10213_v40 = vld [vmem:[#allocation109_spill] sm:$0xff] }
 0x8b9   : > { %v4216_v34 = vsel %vm4157_vm1, %v10176_v12, %v10175_v8  ;;  %v5851_v37 = vrot.slane %v5837_v20, %v7918_v44  ;;  %v4217_v35 = vsel %vm4157_vm1, %v10178_v54, %v10177_v13  ;;  %v6082_v11 = vrot.slane %v6074_v46, %v7918_v44  ;;  %v10208_v13 = vld [vmem:[#allocation111_spill] sm:$0xff] }
 0x8ba   : > { %v6075_v18 = vcombine.low %v4216_v34, %v4217_v35  ;;  %v5434_v22 = vsel %vm4157_vm1, %v10181_v17, %v10180_v15  ;;  %v5435_v58 = vsel %vm4157_vm1, %v10184_v42, %v10183_v6  ;;  %v10186_v52 = vcombine.high %v10181_v17, %v10181_v17  ;;  %6217 = vxpose.xlu1.b32.cont [12/16] (narrow) %v6073_v51, 8  ;;  %v10210_v35 = vld [vmem:[#allocation107_spill] sm:$0xff]  ;;  %v10211_v51 = vld [vmem:[#allocation112_spill] sm:$0xff] }
 0x8bb   : > { %v5852_v16 = vcombine.low %v5844_v10, %v5851_v37  ;;  %v10188_v0 = vcombine.high %v10184_v42, %v10184_v42  ;;  %v5853_v31 = vcombine.low %v5434_v22, %v5435_v58  ;;  %v10190_v36 = vrot.slane %v10189_v25, %v6822_v38  ;;  %v10214_v17 = vld [vmem:[#allocation115_spill] sm:$0xff]  ;;  %v10216_v58 = vld [vmem:[#allocation116_spill] sm:$0xff] }
 0x8bc   : > { %v5436_v4 = vsel %vm4157_vm1, %v10186_v52, %v10185_v24  ;;  %v6089_v33 = vrot.slane %v6075_v18, %v7918_v44  ;;  %v10193_v14 = vrot.slane %v10192_v50, %v6822_v38  ;;  %v10196_v63 = vcombine.high %v10191_v47, %v10191_v47 }
 0x8bd   : > { %v5437_v30 = vsel %vm4157_vm1, %v10188_v0, %v10187_v2  ;;  %v4218_v45 = vsel %vm4157_vm1, %v10191_v47, %v10190_v36  ;;  %6188 = vxpose.xlu0.b32.cont [15/16] (narrow) %v5852_v16, 8  ;;  %v10198_v61 = vcombine.high %v10194_v5, %v10194_v5  ;;  %v10200_v39 = vrot.slane %v10199_v55, %v6822_v38 }
 0x8be   : > { %v5854_v19 = vcombine.low %v5436_v4, %v5437_v30  ;;  %v4219_v56 = vsel %vm4157_vm1, %v10194_v5, %v10193_v14  ;;  %v4220_v21 = vsel %vm4157_vm1, %v10196_v63, %v10195_v48  ;;  %v6090_v7 = vcombine.low %v6082_v11, %v6089_v33 }
 0x8bf   : > { %v4221_v23 = vsel %vm4157_vm1, %v10198_v61, %v10197_v41  ;;  %v5462_v26 = vsel %vm4157_vm1, %v10201_v29, %v10200_v39  ;;  %v5861_v49 = vrot.slane %v5853_v31, %v7918_v44  ;;  %v6091_v20 = vcombine.low %v4218_v45, %v4219_v56 }
 0x8c0   : > { %v5868_v32 = vrot.slane %v5854_v19, %v7918_v44  ;;  %v6092_v9 = vcombine.low %v4220_v21, %v4221_v23  ;;  %v10202_v3 = vrot.slane %v9102_v59, %v6822_v38  ;;  %v10205_v1 = vcombine.high %v10201_v29, %v10201_v29  ;;  %6218 = vxpose.xlu1.b32.cont [13/16] (narrow) %v6090_v7, 8 }
 0x8c1   : > { %v10207_v62 = vcombine.high %v10203_v43, %v10203_v43  ;;  %v6099_v34 = vrot.slane %v6091_v20, %v7918_v44  ;;  %v10209_v54 = vrot.slane %v10208_v13, %v6822_v38  ;;  %v10212_v18 = vrot.slane %v10211_v51, %v6822_v38 }
 0x8c2   : > { %v5463_v27 = vsel %vm4157_vm1, %v10203_v43, %v10202_v3  ;;  %v5464_v57 = vsel %vm4157_vm1, %v10205_v1, %v10204_v53  ;;  %v5869_v12 = vcombine.low %v5861_v49, %v5868_v32  ;;  %v6106_v37 = vrot.slane %v6092_v9, %v7918_v44 }
 0x8c3   : > { %v5465_v8 = vsel %vm4157_vm1, %v10207_v62, %v10206_v60  ;;  %v6108_v59 = vcombine.low %v5462_v26, %v5463_v27  ;;  %v5466_v46 = vsel %vm4157_vm1, %v10210_v35, %v10209_v54  ;;  %v5467_v15 = vsel %vm4157_vm1, %v10213_v40, %v10212_v18 }
 0x8c4   : > { %v6109_v10 = vcombine.low %v5464_v57, %v5465_v8  ;;  %v10215_v22 = vcombine.high %v10210_v35, %v10210_v35  ;;  %6189 = vxpose.xlu0.b32.end [16/16] (narrow) %v5869_v12, 8  ;;  %v10217_v16 = vcombine.high %v10213_v40, %v10213_v40  ;;  %v6125_v11 = vcombine.low %v5466_v46, %v5467_v15 }
 0x8c5   : > { %v6116_v6 = vrot.slane %v6108_v59, %v7918_v44  ;;  %v6107_v24 = vcombine.low %v6099_v34, %v6106_v37 }
 0x8c6   : > { %v5468_v28 = vsel %vm4157_vm1, %v10215_v22, %v10214_v17  ;;  %v6123_v42 = vrot.slane %v6109_v10, %v7918_v44  ;;  %v5469_v38 = vsel %vm4157_vm1, %v10217_v16, %v10216_v58  ;;  %v6133_v2 = vrot.slane %v6125_v11, %v7918_v44 }
 0x8c7   : > { %v6126_v52 = vcombine.low %v5468_v28, %v5469_v38  ;;  %6219 = vxpose.xlu1.b32.cont [14/16] (narrow) %v6107_v24, 8 }
 0x8c8   : > { %v6124_v4 = vcombine.low %v6116_v6, %v6123_v42 }
 0x8c9   : > { %v6140_v0 = vrot.slane %v6126_v52, %v7918_v44 }
 0x8cb   : > { %v6141_v30 = vcombine.low %v6133_v2, %v6140_v0  ;;  %6220 = vxpose.xlu1.b32.cont [15/16] (narrow) %v6124_v4, 8 }
 0x8cf   : > { %6221 = vxpose.xlu1.b32.end [16/16] (narrow) %v6141_v30, 8 }
 0x908   : > { %v6190_v33 = vpop.trf.xlu0 }
 0x909   : > { %6238 = vst [vmem:[%s386_s29] sm:$0xff] %v6190_v33 }
 0x913   : > { %v6222_v31 = vpop.trf.xlu1 }
 0x914   : > { %6239 = vst [vmem:[%s386_s29 + $0x8] sm:$0xff] %v6222_v31 }
 0x915 PF: > { %s21_s17 = sadd.s32 1, %s6706_s17  }
 0x916   : > { %p18_p4 = scmp.ge.s32.totalorder %s21_s17, 4  }
 0x918   :  { %20 = sbr.rel (!%p18_p4) target bundleno = 1 (0x1), region = 101 }

</bundles_post_ra>
